<compile_context>
chip_gen: v7x
topology: tpu7x:2x2x1
jax: 0.10.0
libtpu: 0.0.40
codegen_flags: <defaults>
</compile_context>

<pallas_src>
import math
import numpy as np
import jax
import jax.numpy as jnp
from jax import lax
from jax.experimental import pallas as pl
from jax.experimental.pallas import tpu as pltpu

# ---------------- AST / Kaldi / torchaudio constants ----------------
INITIAL_SR = 44100
AST_SR = 16000
NUM_MEL_BINS = 128
MAX_LENGTH = 1024                 # ASTFeatureExtractor default
AST_MEAN = -4.2677393             # ASTFeatureExtractor default mean
AST_STD = 4.5689974               # ASTFeatureExtractor default std
KALDI_EPS = 1.1920929e-07         # torch.finfo(torch.float32).eps
PREEMPH = 0.97
FRAME_LEN = 400                   # 25 ms @ 16 kHz
FRAME_SHIFT = 160                 # 10 ms @ 16 kHz
PADDED_WIN = 512                  # next power of two (round_to_power_of_two=True)
NUM_FFT_BINS = PADDED_WIN // 2 + 1  # 257
FFT_PAD = 384                     # 257 padded to a multiple of 128 (zero cols / rows)
TM_MAX = 256                      # max row tile (multiple of 256 for v6e/v7x MXU, 2x128 for v5e)

HIGHEST = jax.lax.Precision.HIGHEST


def _round_up(x, m):
    return ((x + m - 1) // m) * m


# ---------------- parameter construction (deterministic, in-script) ----------------
def _build_resample_kernel(orig_freq=INITIAL_SR, new_freq=AST_SR,
                           lowpass_filter_width=6, rolloff=0.99):
    """Replicates torchaudio._get_sinc_resample_kernel (sinc_interp_hann)."""
    g = math.gcd(orig_freq, new_freq)
    orig, new = orig_freq // g, new_freq // g                 # 441, 160
    base_freq = min(orig, new) * rolloff
    width = int(math.ceil(lowpass_filter_width * orig / base_freq))
    idx = np.arange(-width, width + orig, dtype=np.float64) / orig
    t = np.arange(0, -new, -1, dtype=np.float64)[:, None] / new + idx[None, :]
    t = np.clip(t * base_freq, -lowpass_filter_width, lowpass_filter_width)
    window = np.cos(t * np.pi / lowpass_filter_width / 2.0) ** 2
    t = t * np.pi
    scale = base_freq / orig
    safe_t = np.where(t == 0.0, 1.0, t)
    kern = np.where(t == 0.0, 1.0, np.sin(safe_t) / safe_t) * window * scale  # (new, klen)
    klen = kern.shape[1]                                      # 2*width + orig = 475
    kern_t = kern.T.astype(np.float32)                        # (klen, new)
    kpad = _round_up(klen, 128)                               # 512 (zero-pad K dim)
    npad = _round_up(new, 128)                                # 256 (zero-pad N dim -> lane-dense stores)
    kern_t = np.pad(kern_t, ((0, kpad - klen), (0, npad - new)))
    return jnp.asarray(kern_t), width, orig, new, klen


def _kaldi_mel_banks(num_bins=NUM_MEL_BINS, padded_window_size=PADDED_WIN,
                     sample_freq=float(AST_SR), low_freq=20.0, high_freq=0.0):
    """Replicates torchaudio.compliance.kaldi.get_mel_banks (vtln_warp=1.0)."""
    num_fft_bins = padded_window_size // 2
    nyquist = 0.5 * sample_freq
    if high_freq <= 0.0:
        high_freq += nyquist
    fft_bin_width = sample_freq / padded_window_size

    def mel(f):
        return 1127.0 * np.log(1.0 + f / 700.0)

    mel_low, mel_high = mel(low_freq), mel(high_freq)
    mel_delta = (mel_high - mel_low) / (num_bins + 1)
    b = np.arange(num_bins, dtype=np.float64)[:, None]
    left = mel_low + b * mel_delta
    center = mel_low + (b + 1) * mel_delta
    right = mel_low + (b + 2) * mel_delta
    m = mel(fft_bin_width * np.arange(num_fft_bins, dtype=np.float64))[None, :]
    up = (m - left) / (center - left)
    down = (right - m) / (right - center)
    return np.maximum(0.0, np.minimum(up, down))              # (128, 256)


def _build_fbank_consts():
    """Fold remove_dc_offset, pre-emphasis and the Hann window into the real-DFT matrices (fp64)."""
    # hanning window, periodic=False (torch.hann_window default in kaldi compliance)
    n = np.arange(FRAME_LEN, dtype=np.float64)
    hann = 0.5 - 0.5 * np.cos(2.0 * np.pi * n / (FRAME_LEN - 1))

    # row-vector linear pre-processing: y = x @ (D @ P @ W)
    # D: remove DC offset, P: pre-emphasis with replicated first sample, W: Hann window
    D = np.eye(FRAME_LEN) - np.full((FRAME_LEN, FRAME_LEN), 1.0 / FRAME_LEN)
    P = np.eye(FRAME_LEN)
    P[0, 0] -= PREEMPH                      # y[0] = x[0] - 0.97*x[0]
    for j in range(1, FRAME_LEN):
        P[j - 1, j] -= PREEMPH              # y[j] = x[j] - 0.97*x[j-1]
    W = np.diag(hann)
    pre = D @ P @ W                         # (400, 400)

    # real-DFT matrices for a 512-point rfft of the zero-padded 400-sample frame:
    # only the first 400 rows of the DFT matter (padding samples are zero after the window).
    k = np.arange(FRAME_LEN, dtype=np.float64)[:, None]
    f = np.arange(NUM_FFT_BINS, dtype=np.float64)[None, :]
    ang = 2.0 * np.pi * k * f / PADDED_WIN
    cos_m = np.zeros((FRAME_LEN, FFT_PAD), np.float64)
    sin_m = np.zeros((FRAME_LEN, FFT_PAD), np.float64)
    cos_m[:, :NUM_FFT_BINS] = np.cos(ang)
    sin_m[:, :NUM_FFT_BINS] = np.sin(ang)
    cos_c = pre @ cos_m                     # (400, 384) combined preprocess + DFT (real part)
    sin_c = pre @ sin_m                     # (400, 384) combined preprocess + DFT (imag part, sign-free)

    mel = _kaldi_mel_banks()                                  # (128, 256)
    mel = np.pad(mel, ((0, 0), (0, 1)))                       # kaldi pads one zero column -> (128, 257)
    mel_t = np.zeros((FFT_PAD, NUM_MEL_BINS), np.float64)
    mel_t[:NUM_FFT_BINS, :] = mel.T
    return (jnp.asarray(cos_c, jnp.float32), jnp.asarray(sin_c, jnp.float32),
            jnp.asarray(mel_t, jnp.float32))


# ---------------- Pallas kernels ----------------
def _resample_matmul_kernel(frames_ref, kern_ref, out_ref):
    # (tm, 512) @ (512, 256) -> (tm, 256): the strided conv1d of torchaudio Resample.
    out_ref[...] = jnp.dot(frames_ref[...], kern_ref[...],
                           preferred_element_type=jnp.float32, precision=HIGHEST)


def _fbank_kernel(frames_ref, cos_ref, sin_ref, mel_ref, out_ref):
    # Pure MXU body: all linear preprocessing is folded into cos/sin matrices.
    x = frames_ref[...]                                         # (tm, 400)
    re = jnp.dot(x, cos_ref[...], preferred_element_type=jnp.float32, precision=HIGHEST)
    im = jnp.dot(x, sin_ref[...], preferred_element_type=jnp.float32, precision=HIGHEST)
    power = re * re + im * im                                   # (tm, 384), cols >=257 are zero
    mel = jnp.dot(power, mel_ref[...], preferred_element_type=jnp.float32, precision=HIGHEST)
    logmel = jnp.log(jnp.maximum(mel, KALDI_EPS))
    out_ref[...] = (logmel - AST_MEAN) / (2.0 * AST_STD)


# ---------------- Pallas wrappers ----------------
def _pick_tile(rows):
    """Row tile: as large as possible (up to TM_MAX), multiple of 8; pad rows to a multiple of it."""
    tm = min(TM_MAX, _round_up(rows, 8))
    rp = _round_up(rows, tm)
    return tm, rp


def resample_pallas(frames, kern_t):
    rows = frames.shape[0]
    tm, rp = _pick_tile(rows)
    frames_p = jnp.pad(frames, ((0, rp - rows), (0, 0)))
    K = frames_p.shape[1]                      # 512
    N = kern_t.shape[1]                        # 256 (lane-dense padded)
    out = pl.pallas_call(
        _resample_matmul_kernel,
        out_shape=jax.ShapeDtypeStruct((rp, N), jnp.float32),
        grid=(rp // tm,),
        in_specs=[pl.BlockSpec((tm, K), lambda i: (i, 0)),
                  pl.BlockSpec((K, N), lambda i: (0, 0))],
        out_specs=pl.BlockSpec((tm, N), lambda i: (i, 0)),
        compiler_params=pltpu.CompilerParams(dimension_semantics=("parallel",)),
    )(frames_p, kern_t)
    return out[:rows]


def fbank_pallas(frames, cos_c, sin_c, mel_t):
    rows = frames.shape[0]
    tm, rp = _pick_tile(rows)
    frames_p = jnp.pad(frames, ((0, rp - rows), (0, 0)))
    out = pl.pallas_call(
        _fbank_kernel,
        out_shape=jax.ShapeDtypeStruct((rp, NUM_MEL_BINS), jnp.float32),
        grid=(rp // tm,),
        in_specs=[pl.BlockSpec((tm, FRAME_LEN), lambda i: (i, 0)),
                  pl.BlockSpec((FRAME_LEN, FFT_PAD), lambda i: (0, 0)),
                  pl.BlockSpec((FRAME_LEN, FFT_PAD), lambda i: (0, 0)),
                  pl.BlockSpec((FFT_PAD, NUM_MEL_BINS), lambda i: (0, 0))],
        out_specs=pl.BlockSpec((tm, NUM_MEL_BINS), lambda i: (i, 0)),
        compiler_params=pltpu.CompilerParams(dimension_semantics=("parallel",)),
    )(frames_p, cos_c, sin_c, mel_t)
    return out[:rows]


# ---------------- module parameters (deterministic) ----------------
RESAMPLE_PARAMS = _build_resample_kernel()
DFT_COS_C, DFT_SIN_C, MEL_T = _build_fbank_consts()


# ---------------- forward ----------------
def ast_feature_zero(waveform):
    """waveform: (B, 1, T) float32 @ 44.1 kHz -> (B, MAX_LENGTH, NUM_MEL_BINS) float32
    (the `input_values` of ASTFeatureExtractor's BatchFeature)."""
    B, C, T = waveform.shape
    assert C == 1
    wave = waveform[:, 0, :]

    # --- torchaudio.transforms.Resample(44100 -> 16000) as strided-conv matmul ---
    kern_t, width, orig, new, klen = RESAMPLE_PARAMS
    padded = jnp.pad(wave, ((0, 0), (width, width + orig)))
    P = (padded.shape[1] - klen) // orig + 1
    ridx = np.arange(P)[:, None] * orig + np.arange(klen)[None, :]
    frames = padded[:, ridx].reshape(B * P, klen)                       # glue gather
    frames = jnp.pad(frames, ((0, 0), (0, kern_t.shape[0] - klen)))     # K -> 512 (zero taps)
    res = resample_pallas(frames, kern_t)[:, :new]                      # (B*P, 160)
    res = res.reshape(B, P * new)
    target_len = -(-new * T // orig)                                    # ceil(new*T/orig)
    res = res[:, :target_len]                                           # (B, T@16k)

    # --- Kaldi fbank (ASTFeatureExtractor._extract_fbank_features) ---
    L16 = res.shape[1]
    assert L16 >= FRAME_LEN, "waveform too short for one 25 ms frame"
    M = 1 + (L16 - FRAME_LEN) // FRAME_SHIFT                            # snip_edges=True
    fidx = np.arange(M)[:, None] * FRAME_SHIFT + np.arange(FRAME_LEN)[None, :]
    fr = res[:, fidx].reshape(B * M, FRAME_LEN)                         # (B*M, 400) raw frames
    fb = fbank_pallas(fr, DFT_COS_C, DFT_SIN_C, MEL_T)                  # normalized log-mel
    fb = fb.reshape(B, M, NUM_MEL_BINS)

    # --- pad / truncate to MAX_LENGTH frames (AST pads fbank with 0, then normalizes) ---
    pad_val = (0.0 - AST_MEAN) / (2.0 * AST_STD)
    n = min(M, MAX_LENGTH)
    out = jnp.pad(fb[:, :n, :], ((0, 0), (0, MAX_LENGTH - n), (0, 0)),
                  constant_values=pad_val)
    return out


if __name__ == "__main__":
    key = jax.random.PRNGKey(0)
    B = 2
    num_samples = 8820                     # 0.2 s @ 44.1 kHz
    waveform = jax.random.normal(key, (B, 1, num_samples), dtype=jnp.float32)
    out = ast_feature_zero(waveform)
    out = jax.block_until_ready(out)
    assert out.shape == (B, MAX_LENGTH, NUM_MEL_BINS)
    assert out.dtype == jnp.float32
    assert bool(jnp.all(jnp.isfinite(out)))
    print("KERNEL_OK")
</pallas_src>

<mosaic_0001>
module attributes {stable_mosaic.version = 11 : i64} {
  func.func @_resample_matmul_kernel(%arg0: i32, %arg1: memref<48x512xf32, #tpu.memory_space<vmem>>, %arg2: memref<512x256xf32, #tpu.memory_space<vmem>>, %arg3: memref<48x256xf32, #tpu.memory_space<vmem>>) attributes {dimension_semantics = [#tpu.dimension_semantics<parallel>], iteration_bounds = array<i64: 1>, scalar_prefetch = 0 : i64, scratch_operands = 0 : i64, tpu.core_type = #tpu.core_type<tc>, window_params = [{transform_indices = @transform_0, window_bounds = array<i64: 48, 512>}, {pipeline_mode = #tpu.pipeline_mode<synchronous>, transform_indices = @transform_1, window_bounds = array<i64: 512, 256>}, {transform_indices = @transform_2, window_bounds = array<i64: 48, 256>}]} {
    %c0 = arith.constant 0 : index
    %c0_0 = arith.constant 0 : index
    %0 = vector.load %arg1[%c0, %c0_0] : memref<48x512xf32, #tpu.memory_space<vmem>>, vector<48x512xf32>
    %c0_1 = arith.constant 0 : index
    %c0_2 = arith.constant 0 : index
    %1 = vector.load %arg2[%c0_1, %c0_2] : memref<512x256xf32, #tpu.memory_space<vmem>>, vector<512x256xf32>
    %cst = arith.constant dense<0.000000e+00> : vector<48x256xf32>
    %2 = tpu.matmul %0, %1, %cst {dimension_numbers = #tpu.dot_dimension_numbers<[1], [0], [0], [1], [0, 0, 1, 1], [], []>, precision = #tpu.contract_precision<fp32>} : vector<48x512xf32>, vector<512x256xf32>, vector<48x256xf32> -> vector<48x256xf32>
    %c0_3 = arith.constant 0 : index
    %c0_4 = arith.constant 0 : index
    %3 = vector.load %arg3[%c0_3, %c0_4] : memref<48x256xf32, #tpu.memory_space<vmem>>, vector<48x256xf32>
    tpu.vector_store %arg3[%c0_3, %c0_4], %2 {strides = array<i32>} : memref<48x256xf32, #tpu.memory_space<vmem>>, vector<48x256xf32>,
    return
  }
  func.func @transform_0(%arg0: i32) -> (i32, i32) {
    %c0_i32 = arith.constant 0 : i32
    %c0_i32_0 = arith.constant 0 : i32
    return %arg0, %c0_i32 : i32, i32
  }
  func.func @transform_1(%arg0: i32) -> (i32, i32) {
    %c0_i32 = arith.constant 0 : i32
    %c0_i32_0 = arith.constant 0 : i32
    %c0_i32_1 = arith.constant 0 : i32
    return %c0_i32, %c0_i32_0 : i32, i32
  }
  func.func @transform_2(%arg0: i32) -> (i32, i32) {
    %c0_i32 = arith.constant 0 : i32
    %c0_i32_0 = arith.constant 0 : i32
    return %arg0, %c0_i32 : i32, i32
  }
}

</mosaic_0001>

<bundles_post_ra>
// kernel: tpu_custom_call.1
= control target key start
LH: loop header
LB: loop body
LE: loop exit
PB: predicated region body
PF: predicated region fallthrough
CT: control target
= control target key end

     0   :  { %7 = vsyncpa [#allocation3], 0  ;;  %s6333_s0 = inlined_call_operand.hbm [shape: f32[48,512], index: 0, kind: input, shape index: {}]   ;;  %s6334_s1 = inlined_call_operand.hbm [shape: f32[512,256], index: 1, kind: input, shape index: {}]   ;;  %s6335_s2 = inlined_call_operand.hbm [shape: f32[48,256], index: 2, kind: output, shape index: {}]  }
   0x1   :  { %8 = vsyncpa [#allocation6], 0 }
   0x2   :  { %9 = vsyncpa [#allocation4], 0  ;;  %s4389_s9 = smov [#allocation2]   ;;  %s4317_s13 = scalar_lea.hbm %s6333_s0, 3072 }
   0x3   :  { %s15_s10 = sshll.u32 %s4389_s9, 4  ;;  %p4318_p0 = scmp.ne.s32.totalorder %s6333_s0, %s4317_s13  ;;  %s16_s10 = int_to_ptr.vmem [resolvable:$true] %s15_s10 }
   0x4   :  { %p4321_p1 = scmp.lt.u32.totalorder %s4317_s13, %s6333_s0 }
   0x6   :  { %p4323_p2 = pnand %p4321_p1, %p4318_p0 }
   0x8   :  { %4326 = shalt.err (!%p4323_p2)
}
   0x9   :  { %s4327_s18 = scalar_lea.vmem %s16_s10, 3072  ;;  %p4332_p4 = scmp.lt.s32.totalorder %s16_s10, %s16_s10 }
   0xa   :  { %p4328_p3 = scmp.ne.s32.totalorder %s16_s10, %s4327_s18  ;;  %p4333_p5 = scmp.lt.s32.totalorder %s4327_s18, %s4327_s18 }
   0xc   :  { %p4334_p6 = por %p4333_p5, %p4332_p4 }
   0xe   :  { %p4335_p7 = pnand %p4334_p6, %p4328_p3 }
  0x10   :  { %4338 = shalt.err (!%p4335_p7)
}
  0x11   :  { %s4390_s19 = smov 512   ;;  %s4391_s20 = smov 32  }
  0x12   :  { %21 = dma.hbm_to_vmem [thread:$0]  %s6333_s0, 3072, %s16_s10, [#allocation3], %s4390_s19, %s4390_s19, %s4391_s20  }
  0x13   :  { %s4392_s23 = smov [#allocation5]   ;;  %s4339_s27 = scalar_lea.hbm %s6334_s1, 16384 }
  0x14   :  { %s27_s24 = sshll.u32 %s4392_s23, 4  ;;  %p4340_p8 = scmp.ne.s32.totalorder %s6334_s1, %s4339_s27  ;;  %s28_s24 = int_to_ptr.vmem [resolvable:$true] %s27_s24 }
  0x15   :  { %p4343_p9 = scmp.lt.u32.totalorder %s4339_s27, %s6334_s1 }
  0x17   :  { %p4345_p10 = pnand %p4343_p9, %p4340_p8 }
  0x19   :  { %4348 = shalt.err (!%p4345_p10)
}
  0x1a   :  { %s4349_s4 = scalar_lea.vmem %s28_s24, 16384  ;;  %p4354_p12 = scmp.lt.s32.totalorder %s28_s24, %s28_s24 }
  0x1b   :  { %p4350_p11 = scmp.ne.s32.totalorder %s28_s24, %s4349_s4  ;;  %p4355_p13 = scmp.lt.s32.totalorder %s4349_s4, %s4349_s4 }
  0x1d   :  { %p4356_p0 = por %p4355_p13, %p4354_p12 }
  0x1f   :  { %p4357_p1 = pnand %p4356_p0, %p4350_p11 }
  0x21   :  { %4360 = shalt.err (!%p4357_p1)
}
  0x22   :  { %s4393_s0 = smov 256   ;;  %s4394_s5 = smov 16  }
  0x23   :  { %33 = dma.hbm_to_vmem [thread:$0]  %s6334_s1, 16384, %s28_s24, [#allocation6], %s4393_s0, %s4393_s0, %s4394_s5  }
  0x24   :  { %4383 = dma.done.wait [#allocation3], 3072  }
  0x25   :  { %4384 = vsyncadd [#allocation3], 4294964224 }
  0x26   :  { %4385 = dma.done.wait [#allocation6], 16384  }
  0x27   :  { %4386 = vsyncadd [#allocation6], 4294950912  ;;  %v65_v0 = vld [vmem:[#allocation5 + $0x8] sm:$0xff]  ;;  %v67_v1 = vld [vmem:[#allocation5 + $0x18] sm:$0xff]  ;;  %s4395_s1 = smov [#allocation7]  }
  0x28   :  { %v129_v2 = vld [vmem:[#allocation5 + $0x208] sm:$0xff]  ;;  %v192_v3 = vand.u32 4294901760, %v65_v0  ;;  %v196_v4 = vand.u32 4294901760, %v67_v1  ;;  %v131_v5 = vld [vmem:[#allocation5 + $0x218] sm:$0xff]  ;;  %v64_v7 = vld [vmem:[#allocation5] sm:$0xff]  ;;  %s3397_s8 = sshll.u32 %s4395_s1, 4  ;;  %s3398_s8 = int_to_ptr.vmem [resolvable:$true] %s3397_s8 }
  0x29   :  { %v1786_v6 = vand.u32 4294901760, %v129_v2  ;;  %v66_v8 = vld [vmem:[#allocation5 + $0x10] sm:$0xff]  ;;  %v1790_v9 = vand.u32 4294901760, %v131_v5  ;;  %v194_v10 = vand.u32 4294901760, %v64_v7  ;;  %v128_v12 = vld [vmem:[#allocation5 + $0x200] sm:$0xff]  ;;  %v69_v14 = vld [vmem:[#allocation5 + $0x28] sm:$0xff]  ;;  %p4366_p3 = scmp.lt.s32.totalorder %s3398_s8, %s3398_s8 }
  0x2a   :  { %v198_v11 = vand.u32 4294901760, %v66_v8  ;;  %v130_v13 = vld [vmem:[#allocation5 + $0x210] sm:$0xff]  ;;  %v4438_v15 = vpack.c.bf16 %v196_v4, %v192_v3  ;;  %v4440_v16 = vsub.f32 %v65_v0, %v192_v3  ;;  %v4442_v17 = vsub.f32 %v67_v1, %v196_v4  ;;  %v71_v19 = vld [vmem:[#allocation5 + $0x38] sm:$0xff]  ;;  %v133_v20 = vld [vmem:[#allocation5 + $0x228] sm:$0xff]  ;;  %s4361_s9 = scalar_lea.vmem %s3398_s8, 1536 }
  0x2b   :  { %v4444_v18 = vsub.f32 %v129_v2, %v1786_v6  ;;  %v135_v21 = vld [vmem:[#allocation5 + $0x238] sm:$0xff]  ;;  %v4446_v22 = vpack.c.bf16 %v1790_v9, %v1786_v6  ;;  %v4448_v23 = vsub.f32 %v131_v5, %v1790_v9  ;;  %v4452_v25 = vsub.f32 %v64_v7, %v194_v10  ;;  %v68_v26 = vld [vmem:[#allocation5 + $0x20] sm:$0xff]  ;;  %v70_v31 = vld [vmem:[#allocation5 + $0x30] sm:$0xff]  ;;  %p4362_p2 = scmp.ne.s32.totalorder %s3398_s8, %s4361_s9  ;;  %p4367_p4 = scmp.lt.s32.totalorder %s4361_s9, %s4361_s9 }
  0x2c   :  { %6932 = vst [vmem:[#allocation11_spill] sm:$0xff] %v4438_v15  ;;  %6933 = vst [vmem:[#allocation12_spill] sm:$0xff] %v4442_v17  ;;  %v4450_v24 = vpack.c.bf16 %v198_v11, %v194_v10  ;;  %3411 = vmatprep.subr.bf16.mxu1 %v4438_v15  ;;  %v4455_v27 = vsub.f32 %v66_v8, %v198_v11  ;;  %v1788_v28 = vand.u32 4294901760, %v128_v12  ;;  %v1792_v29 = vand.u32 4294901760, %v130_v13  ;;  %v132_v36 = vld [vmem:[#allocation5 + $0x220] sm:$0xff]  ;;  %v134_v37 = vld [vmem:[#allocation5 + $0x230] sm:$0xff] }
  0x2d   :  { %6934 = vst [vmem:[#allocation13_spill] sm:$0xff] %v4444_v18  ;;  %6935 = vst [vmem:[#allocation14_spill] sm:$0xff] %v4446_v22  ;;  %v200_v30 = vand.u32 4294901760, %v69_v14  ;;  %3795 = vmatprep.subr.bf16.mxu0 %v4446_v22  ;;  %v204_v32 = vand.u32 4294901760, %v71_v19  ;;  %v1794_v33 = vand.u32 4294901760, %v133_v20  ;;  %v1798_v34 = vand.u32 4294901760, %v135_v21  ;;  %p4368_p5 = por %p4367_p4, %p4366_p3 }
  0x2e   :  { %6936 = vst [vmem:[#allocation15_spill] sm:$0xff] %v4448_v23  ;;  %6937 = vst [vmem:[#allocation16_spill] sm:$0xff] %v4450_v24  ;;  %3413 = vmatpush1.bf16.msra.mxu1 %v4450_v24  ;;  %v202_v35 = vand.u32 4294901760, %v68_v26  ;;  %v4459_v38 = vpack.c.bf16 %v1792_v29, %v1788_v28  ;;  %v4461_v39 = vsub.f32 %v128_v12, %v1788_v28  ;;  %v73_v42 = vld [vmem:[#allocation5 + $0x48] sm:$0xff]  ;;  %v75_v43 = vld [vmem:[#allocation5 + $0x58] sm:$0xff]  ;;  %v206_v51 = vand.u32 4294901760, %v70_v31 }
  0x2f   :  { %v4463_v40 = vsub.f32 %v130_v13, %v1792_v29  ;;  %v4465_v41 = vsub.f32 %v69_v14, %v200_v30  ;;  %v137_v44 = vld [vmem:[#allocation5 + $0x248] sm:$0xff]  ;;  %v4467_v45 = vpack.c.bf16 %v204_v32, %v200_v30  ;;  %v4469_v46 = vsub.f32 %v71_v19, %v204_v32  ;;  %v139_v49 = vld [vmem:[#allocation5 + $0x258] sm:$0xff]  ;;  %v72_v58 = vld [vmem:[#allocation5 + $0x40] sm:$0xff]  ;;  %p4369_p6 = pnand %p4368_p5, %p4362_p2 }
  0x30   :  { %6938 = vst [vmem:[#allocation17_spill] sm:$0xff] %v4459_v38  ;;  %v4471_v47 = vpack.c.bf16 %v1798_v34, %v1794_v33  ;;  %v4473_v48 = vsub.f32 %v133_v20, %v1794_v33  ;;  %3797 = vmatpush1.bf16.msra.mxu0 %v4459_v38  ;;  %v4476_v50 = vsub.f32 %v135_v21, %v1798_v34  ;;  %v1796_v53 = vand.u32 4294901760, %v132_v36  ;;  %v74_v59 = vld [vmem:[#allocation5 + $0x50] sm:$0xff]  ;;  %v136_v0 = vld [vmem:[#allocation5 + $0x240] sm:$0xff]  ;;  %v77_v2 = vld [vmem:[#allocation5 + $0x68] sm:$0xff] }
  0x31   :  { %6939 = vst [vmem:[#allocation18_spill] sm:$0xff] %v4467_v45  ;;  %v4478_v52 = vsub.f32 %v68_v26, %v202_v35  ;;  %3415 = vmatprep.subr.bf16.mxu1 %v4467_v45  ;;  %v1800_v54 = vand.u32 4294901760, %v134_v37  ;;  %v208_v55 = vand.u32 4294901760, %v73_v42  ;;  %v212_v56 = vand.u32 4294901760, %v75_v43  ;;  %v138_v1 = vld [vmem:[#allocation5 + $0x250] sm:$0xff]  ;;  %v79_v7 = vld [vmem:[#allocation5 + $0x78] sm:$0xff] }
  0x32   :  { %6940 = vst [vmem:[#allocation19_spill] sm:$0xff] %v4471_v47  ;;  %6941 = vst [vmem:[#allocation20_spill] sm:$0xff] %v4473_v48  ;;  %3799 = vmatprep.subr.bf16.mxu0 %v4471_v47  ;;  %v1802_v57 = vand.u32 4294901760, %v137_v44  ;;  %v4482_v60 = vpack.c.bf16 %v206_v51, %v202_v35  ;;  %v4484_v61 = vsub.f32 %v70_v31, %v206_v51  ;;  %v1806_v63 = vand.u32 4294901760, %v139_v49  ;;  %v141_v8 = vld [vmem:[#allocation5 + $0x268] sm:$0xff]  ;;  %v143_v9 = vld [vmem:[#allocation5 + $0x278] sm:$0xff] }
  0x33   :  { %6942 = vst [vmem:[#allocation21_spill] sm:$0xff] %v4476_v50  ;;  %6943 = vst [vmem:[#allocation22_spill] sm:$0xff] %v4478_v52  ;;  %v4486_v62 = vsub.f32 %v132_v36, %v1796_v53  ;;  %v4488_v3 = vpack.c.bf16 %v1800_v54, %v1796_v53  ;;  %v4490_v4 = vsub.f32 %v134_v37, %v1800_v54  ;;  %v210_v14 = vand.u32 4294901760, %v72_v58  ;;  %v76_v31 = vld [vmem:[#allocation5 + $0x60] sm:$0xff]  ;;  %v78_v36 = vld [vmem:[#allocation5 + $0x70] sm:$0xff] }
  0x34   :  { %6944 = vst [vmem:[#allocation23_spill] sm:$0xff] %v4482_v60  ;;  %6945 = vst [vmem:[#allocation24_spill] sm:$0xff] %v4484_v61  ;;  %v4492_v5 = vpack.c.bf16 %v212_v56, %v208_v55  ;;  %v4494_v6 = vsub.f32 %v73_v42, %v208_v55  ;;  %3417 = vmatpush1.bf16.msra.mxu1 %v4482_v60  ;;  %v4497_v10 = vsub.f32 %v75_v43, %v212_v56  ;;  %v140_v37 = vld [vmem:[#allocation5 + $0x260] sm:$0xff]  ;;  %v142_v42 = vld [vmem:[#allocation5 + $0x270] sm:$0xff] }
  0x35   :  { %6946 = vst [vmem:[#allocation25_spill] sm:$0xff] %v4486_v62  ;;  %6947 = vst [vmem:[#allocation26_spill] sm:$0xff] %v4488_v3  ;;  %v4499_v11 = vpack.c.bf16 %v1806_v63, %v1802_v57  ;;  %v4501_v12 = vsub.f32 %v137_v44, %v1802_v57  ;;  %v4503_v13 = vsub.f32 %v139_v49, %v1806_v63  ;;  %3801 = vmatpush1.bf16.msra.mxu0 %v4488_v3  ;;  %v81_v53 = vld [vmem:[#allocation5 + $0x88] sm:$0xff]  ;;  %v83_v54 = vld [vmem:[#allocation5 + $0x98] sm:$0xff] }
  0x36   :  { %6948 = vst [vmem:[#allocation27_spill] sm:$0xff] %v4490_v4  ;;  %6949 = vst [vmem:[#allocation28_spill] sm:$0xff] %v4492_v5  ;;  %3419 = vmatprep.subr.bf16.mxu1 %v4492_v5  ;;  %v214_v19 = vand.u32 4294901760, %v74_v59  ;;  %v1804_v20 = vand.u32 4294901760, %v136_v0  ;;  %v1808_v21 = vand.u32 4294901760, %v138_v1  ;;  %v216_v26 = vand.u32 4294901760, %v77_v2 }
  0x37   :  { %6950 = vst [vmem:[#allocation29_spill] sm:$0xff] %v4494_v6  ;;  %6951 = vst [vmem:[#allocation30_spill] sm:$0xff] %v4497_v10  ;;  %3803 = vmatprep.subr.bf16.mxu0 %v4499_v11  ;;  %v220_v28 = vand.u32 4294901760, %v79_v7  ;;  %v1810_v29 = vand.u32 4294901760, %v141_v8  ;;  %v1814_v30 = vand.u32 4294901760, %v143_v9  ;;  %v4510_v33 = vsub.f32 %v72_v58, %v210_v14  ;;  %v145_v55 = vld [vmem:[#allocation5 + $0x288] sm:$0xff] }
  0x38   :  { %6952 = vst [vmem:[#allocation31_spill] sm:$0xff] %v4499_v11  ;;  %6953 = vst [vmem:[#allocation32_spill] sm:$0xff] %v4501_v12  ;;  %v4508_v32 = vpack.c.bf16 %v214_v19, %v210_v14  ;;  %v4512_v34 = vsub.f32 %v74_v59, %v214_v19  ;;  %v4514_v35 = vpack.c.bf16 %v1808_v21, %v1804_v20  ;;  %v218_v59 = vand.u32 4294901760, %v76_v31  ;;  %v147_v14 = vld [vmem:[#allocation5 + $0x298] sm:$0xff]  ;;  %v149_v47 = vld [vmem:[#allocation5 + $0x2a8] sm:$0xff] }
  0x39   :  { %6954 = vst [vmem:[#allocation33_spill] sm:$0xff] %v4503_v13  ;;  %6956 = vst [vmem:[#allocation35_spill] sm:$0xff] %v4510_v33  ;;  %v4516_v43 = vsub.f32 %v136_v0, %v1804_v20  ;;  %v4518_v44 = vsub.f32 %v138_v1, %v1808_v21  ;;  %v4520_v49 = vpack.c.bf16 %v220_v28, %v216_v26  ;;  %v222_v0 = vand.u32 4294901760, %v78_v36  ;;  %v87_v11 = vld [vmem:[#allocation5 + $0xb8] sm:$0xff]  ;;  %v148_v38 = vld [vmem:[#allocation5 + $0x2a0] sm:$0xff] }
  0x3a   :  { %6955 = vst [vmem:[#allocation34_spill] sm:$0xff] %v4508_v32  ;;  %6957 = vst [vmem:[#allocation36_spill] sm:$0xff] %v4512_v34  ;;  %v4522_v51 = vsub.f32 %v77_v2, %v216_v26  ;;  %3421 = vmatpush1.bf16.msra.mxu1 %v4508_v32  ;;  %3805 = vmatpush1.bf16.msra.mxu0 %v4514_v35  ;;  %v4526_v56 = vsub.f32 %v79_v7, %v220_v28  ;;  %v1812_v1 = vand.u32 4294901760, %v140_v37  ;;  %v80_v26 = vld [vmem:[#allocation5 + $0x80] sm:$0xff]  ;;  %v82_v28 = vld [vmem:[#allocation5 + $0x90] sm:$0xff] }
  0x3b   :  { %6958 = vst [vmem:[#allocation37_spill] sm:$0xff] %v4514_v35  ;;  %6959 = vst [vmem:[#allocation38_spill] sm:$0xff] %v4516_v43  ;;  %v4528_v57 = vpack.c.bf16 %v1814_v30, %v1810_v29  ;;  %v4530_v58 = vsub.f32 %v141_v8, %v1810_v29  ;;  %3423 = vmatprep.subr.bf16.mxu1 %v4520_v49  ;;  %v4533_v63 = vsub.f32 %v143_v9, %v1814_v30  ;;  %v144_v8 = vld [vmem:[#allocation5 + $0x280] sm:$0xff]  ;;  %v85_v32 = vld [vmem:[#allocation5 + $0xa8] sm:$0xff] }
  0x3c   :  { %6960 = vst [vmem:[#allocation39_spill] sm:$0xff] %v4518_v44  ;;  %6961 = vst [vmem:[#allocation40_spill] sm:$0xff] %v4520_v49  ;;  %v1816_v2 = vand.u32 4294901760, %v142_v42  ;;  %v4536_v19 = vsub.f32 %v76_v31, %v218_v59  ;;  %v224_v20 = vand.u32 4294901760, %v81_v53  ;;  %v228_v7 = vand.u32 4294901760, %v83_v54  ;;  %v146_v49 = vld [vmem:[#allocation5 + $0x290] sm:$0xff] }
  0x3d   :  { %6962 = vst [vmem:[#allocation41_spill] sm:$0xff] %v4522_v51  ;;  %6963 = vst [vmem:[#allocation42_spill] sm:$0xff] %v4526_v56  ;;  %3807 = vmatprep.subr.bf16.mxu0 %v4528_v57  ;;  %v1818_v21 = vand.u32 4294901760, %v145_v55  ;;  %v4538_v29 = vpack.c.bf16 %v222_v0, %v218_v59  ;;  %v4540_v35 = vsub.f32 %v78_v36, %v222_v0  ;;  %v1822_v36 = vand.u32 4294901760, %v147_v14  ;;  %v150_v15 = vld [vmem:[#allocation5 + $0x2b0] sm:$0xff] }
  0x3e   :  { %6964 = vst [vmem:[#allocation43_spill] sm:$0xff] %v4528_v57  ;;  %6965 = vst [vmem:[#allocation44_spill] sm:$0xff] %v4530_v58  ;;  %v4542_v9 = vpack.c.bf16 %v1816_v2, %v1812_v1  ;;  %v4544_v30 = vsub.f32 %v140_v37, %v1812_v1  ;;  %v4546_v57 = vsub.f32 %v142_v42, %v1816_v2  ;;  %v226_v37 = vand.u32 4294901760, %v80_v26 }
  0x3f   :  { %6966 = vst [vmem:[#allocation45_spill] sm:$0xff] %v4533_v63  ;;  %6967 = vst [vmem:[#allocation46_spill] sm:$0xff] %v4536_v19  ;;  %v4548_v31 = vpack.c.bf16 %v228_v7, %v224_v20  ;;  %v4550_v3 = vsub.f32 %v81_v53, %v224_v20  ;;  %v4552_v5 = vsub.f32 %v83_v54, %v228_v7  ;;  %3425 = vmatpush1.bf16.msra.mxu1 %v4538_v29  ;;  %v151_v53 = vld [vmem:[#allocation5 + $0x2b8] sm:$0xff] }
  0x40   :  { %6968 = vst [vmem:[#allocation47_spill] sm:$0xff] %v4538_v29  ;;  %6969 = vst [vmem:[#allocation48_spill] sm:$0xff] %v4540_v35  ;;  %3809 = vmatpush1.bf16.msra.mxu0 %v4542_v9  ;;  %v4556_v59 = vsub.f32 %v145_v55, %v1818_v21  ;;  %v230_v0 = vand.u32 4294901760, %v82_v28  ;;  %v1820_v1 = vand.u32 4294901760, %v144_v8  ;;  %v1824_v42 = vand.u32 4294901760, %v146_v49  ;;  %v84_v55 = vld [vmem:[#allocation5 + $0xa0] sm:$0xff] }
  0x41   :  { %6970 = vst [vmem:[#allocation49_spill] sm:$0xff] %v4542_v9  ;;  %6971 = vst [vmem:[#allocation50_spill] sm:$0xff] %v4544_v30  ;;  %3427 = vmatprep.subr.bf16.mxu1 %v4548_v31  ;;  %v232_v2 = vand.u32 4294901760, %v85_v32  ;;  %v236_v60 = vand.u32 4294901760, %v87_v11  ;;  %v4559_v20 = vpack.c.bf16 %v1822_v36, %v1818_v21  ;;  %v4561_v54 = vsub.f32 %v147_v14, %v1822_v36  ;;  %v86_v29 = vld [vmem:[#allocation5 + $0xb0] sm:$0xff]  ;;  %v89_v21 = vld [vmem:[#allocation5 + $0xc8] sm:$0xff] }
  0x42   :  { %6972 = vst [vmem:[#allocation51_spill] sm:$0xff] %v4546_v57  ;;  %6973 = vst [vmem:[#allocation52_spill] sm:$0xff] %v4548_v31  ;;  %v4563_v7 = vpack.c.bf16 %v230_v0, %v226_v37  ;;  %v4565_v9 = vsub.f32 %v80_v26, %v226_v37  ;;  %v4567_v45 = vsub.f32 %v82_v28, %v230_v0  ;;  %v1826_v28 = vand.u32 4294901760, %v149_v47 }
  0x43   :  { %6974 = vst [vmem:[#allocation53_spill] sm:$0xff] %v4550_v3  ;;  %6975 = vst [vmem:[#allocation54_spill] sm:$0xff] %v4552_v5  ;;  %v4569_v31 = vpack.c.bf16 %v1824_v42, %v1820_v1  ;;  %v4571_v24 = vsub.f32 %v144_v8, %v1820_v1  ;;  %v4573_v22 = vsub.f32 %v146_v49, %v1824_v42  ;;  %3811 = vmatprep.subr.bf16.mxu0 %v4559_v20 }
  0x44   :  { %6976 = vst [vmem:[#allocation55_spill] sm:$0xff] %v4556_v59  ;;  %6977 = vst [vmem:[#allocation56_spill] sm:$0xff] %v4559_v20  ;;  %v91_v59 = vld [vmem:[#allocation5 + $0xd8] sm:$0xff]  ;;  %3429 = vmatpush1.bf16.msra.mxu1 %v4563_v7  ;;  %v4577_v14 = vpack.c.bf16 %v236_v60, %v232_v2  ;;  %v4579_v26 = vsub.f32 %v85_v32, %v232_v2  ;;  %v4581_v36 = vsub.f32 %v87_v11, %v236_v60 }
  0x45   :  { %6978 = vst [vmem:[#allocation57_spill] sm:$0xff] %v4561_v54  ;;  %6979 = vst [vmem:[#allocation58_spill] sm:$0xff] %v4563_v7  ;;  %3813 = vmatpush1.bf16.msra.mxu0 %v4569_v31  ;;  %v1830_v8 = vand.u32 4294901760, %v151_v53  ;;  %v234_v37 = vand.u32 4294901760, %v84_v55  ;;  %v238_v49 = vand.u32 4294901760, %v86_v29  ;;  %v1828_v0 = vand.u32 4294901760, %v148_v38 }
  0x46   :  { %6980 = vst [vmem:[#allocation59_spill] sm:$0xff] %v4565_v9  ;;  %6981 = vst [vmem:[#allocation60_spill] sm:$0xff] %v4567_v45  ;;  %3431 = vmatprep.subr.bf16.mxu1 %v4577_v14  ;;  %v4585_v1 = vsub.f32 %v149_v47, %v1826_v28  ;;  %v1832_v42 = vand.u32 4294901760, %v150_v15  ;;  %v240_v20 = vand.u32 4294901760, %v89_v21  ;;  %v244_v7 = vand.u32 4294901760, %v91_v59  ;;  %v154_v9 = vld [vmem:[#allocation5 + $0x2d0] sm:$0xff] }
  0x47   :  { %6982 = vst [vmem:[#allocation61_spill] sm:$0xff] %v4569_v31  ;;  %6983 = vst [vmem:[#allocation62_spill] sm:$0xff] %v4571_v24  ;;  %v155_v24 = vld [vmem:[#allocation5 + $0x2d8] sm:$0xff]  ;;  %v4587_v32 = vpack.c.bf16 %v1830_v8, %v1826_v28  ;;  %v4589_v60 = vsub.f32 %v151_v53, %v1830_v8  ;;  %v4591_v11 = vpack.c.bf16 %v238_v49, %v234_v37  ;;  %v88_v31 = vld [vmem:[#allocation5 + $0xc0] sm:$0xff] }
  0x48   :  { %6984 = vst [vmem:[#allocation63_spill] sm:$0xff] %v4573_v22  ;;  %6985 = vst [vmem:[#allocation64_spill] sm:$0xff] %v4577_v14  ;;  %v153_v22 = vld [vmem:[#allocation5 + $0x2c8] sm:$0xff]  ;;  %v4593_v2 = vsub.f32 %v84_v55, %v234_v37  ;;  %v4595_v45 = vsub.f32 %v86_v29, %v238_v49  ;;  %v4597_v47 = vpack.c.bf16 %v1832_v42, %v1828_v0  ;;  %v95_v54 = vld [vmem:[#allocation5 + $0xf8] sm:$0xff]  ;;  %v242_v37 = vand.u32 4294901760, %v88_v31 }
  0x49   :  { %6986 = vst [vmem:[#allocation65_spill] sm:$0xff] %v4579_v26  ;;  %6987 = vst [vmem:[#allocation66_spill] sm:$0xff] %v4581_v36  ;;  %v90_v36 = vld [vmem:[#allocation5 + $0xd0] sm:$0xff]  ;;  %v152_v26 = vld [vmem:[#allocation5 + $0x2c0] sm:$0xff]  ;;  %v4599_v14 = vsub.f32 %v148_v38, %v1828_v0  ;;  %3815 = vmatprep.subr.bf16.mxu0 %v4587_v32  ;;  %3433 = vmatpush1.bf16.msra.mxu1 %v4591_v11  ;;  %v4605_v53 = vpack.c.bf16 %v244_v7, %v240_v20  ;;  %v1834_v29 = vand.u32 4294901760, %v153_v22 }
  0x4a   :  { %6988 = vst [vmem:[#allocation67_spill] sm:$0xff] %v4585_v1  ;;  %6989 = vst [vmem:[#allocation68_spill] sm:$0xff] %v4587_v32  ;;  %v4601_v1 = vsub.f32 %v150_v15, %v1832_v42  ;;  %v93_v28 = vld [vmem:[#allocation5 + $0xe8] sm:$0xff]  ;;  %v4607_v55 = vsub.f32 %v89_v21, %v240_v20  ;;  %v4609_v8 = vsub.f32 %v91_v59, %v244_v7  ;;  %3817 = vmatpush1.bf16.msra.mxu0 %v4597_v47 }
  0x4b   :  { %6990 = vst [vmem:[#allocation69_spill] sm:$0xff] %v4589_v60  ;;  %6991 = vst [vmem:[#allocation70_spill] sm:$0xff] %v4591_v11  ;;  %v1838_v38 = vand.u32 4294901760, %v155_v24  ;;  %v246_v15 = vand.u32 4294901760, %v90_v36  ;;  %v1836_v49 = vand.u32 4294901760, %v152_v26  ;;  %3435 = vmatprep.subr.bf16.mxu1 %v4605_v53  ;;  %v4613_v0 = vsub.f32 %v153_v22, %v1834_v29  ;;  %v99_v60 = vld [vmem:[#allocation5 + $0x118] sm:$0xff] }
  0x4c   :  { %6992 = vst [vmem:[#allocation71_spill] sm:$0xff] %v4593_v2  ;;  %6993 = vst [vmem:[#allocation72_spill] sm:$0xff] %v4595_v45  ;;  %v1840_v42 = vand.u32 4294901760, %v154_v9  ;;  %v248_v32 = vand.u32 4294901760, %v93_v28  ;;  %v252_v11 = vand.u32 4294901760, %v95_v54  ;;  %v4621_v21 = vsub.f32 %v88_v31, %v242_v37  ;;  %v158_v2 = vld [vmem:[#allocation5 + $0x2f0] sm:$0xff] }
  0x4d   :  { %6994 = vst [vmem:[#allocation73_spill] sm:$0xff] %v4597_v47  ;;  %6995 = vst [vmem:[#allocation74_spill] sm:$0xff] %v4599_v14  ;;  %v159_v14 = vld [vmem:[#allocation5 + $0x2f8] sm:$0xff]  ;;  %v4615_v20 = vpack.c.bf16 %v1838_v38, %v1834_v29  ;;  %v4617_v59 = vsub.f32 %v155_v24, %v1838_v38  ;;  %v4619_v7 = vpack.c.bf16 %v246_v15, %v242_v37  ;;  %v92_v47 = vld [vmem:[#allocation5 + $0xe0] sm:$0xff] }
  0x4e   :  { %6996 = vst [vmem:[#allocation75_spill] sm:$0xff] %v4601_v1  ;;  %6997 = vst [vmem:[#allocation76_spill] sm:$0xff] %v4605_v53  ;;  %v157_v1 = vld [vmem:[#allocation5 + $0x2e8] sm:$0xff]  ;;  %v4623_v45 = vsub.f32 %v90_v36, %v246_v15  ;;  %v4625_v22 = vpack.c.bf16 %v1840_v42, %v1836_v49  ;;  %v4627_v53 = vsub.f32 %v152_v26, %v1836_v49  ;;  %v1846_v26 = vand.u32 4294901760, %v159_v14 }
  0x4f   :  { %6998 = vst [vmem:[#allocation77_spill] sm:$0xff] %v4607_v55  ;;  %6999 = vst [vmem:[#allocation78_spill] sm:$0xff] %v4609_v8  ;;  %v94_v8 = vld [vmem:[#allocation5 + $0xf0] sm:$0xff]  ;;  %v156_v55 = vld [vmem:[#allocation5 + $0x2e0] sm:$0xff]  ;;  %3819 = vmatprep.subr.bf16.mxu0 %v4615_v20  ;;  %3437 = vmatpush1.bf16.msra.mxu1 %v4619_v7  ;;  %v4633_v24 = vpack.c.bf16 %v252_v11, %v248_v32  ;;  %v4635_v31 = vsub.f32 %v93_v28, %v248_v32  ;;  %v1842_v36 = vand.u32 4294901760, %v157_v1 }
  0x50   :  { %7000 = vst [vmem:[#allocation79_spill] sm:$0xff] %v4613_v0  ;;  %7001 = vst [vmem:[#allocation80_spill] sm:$0xff] %v4615_v20  ;;  %v4629_v0 = vsub.f32 %v154_v9, %v1840_v42  ;;  %v97_v29 = vld [vmem:[#allocation5 + $0x108] sm:$0xff]  ;;  %v4637_v38 = vsub.f32 %v95_v54, %v252_v11  ;;  %3821 = vmatpush1.bf16.msra.mxu0 %v4625_v22  ;;  %v250_v37 = vand.u32 4294901760, %v92_v47  ;;  %v254_v9 = vand.u32 4294901760, %v94_v8 }
  0x51   :  { %7002 = vst [vmem:[#allocation81_spill] sm:$0xff] %v4617_v59  ;;  %7003 = vst [vmem:[#allocation82_spill] sm:$0xff] %v4619_v7  ;;  %v1844_v15 = vand.u32 4294901760, %v156_v55  ;;  %3439 = vmatprep.subr.bf16.mxu1 %v4633_v24  ;;  %v4641_v49 = vsub.f32 %v157_v1, %v1842_v36  ;;  %v1848_v42 = vand.u32 4294901760, %v158_v2  ;;  %v256_v20 = vand.u32 4294901760, %v97_v29  ;;  %v103_v59 = vld [vmem:[#allocation5 + $0x138] sm:$0xff] }
  0x52   :  { %7004 = vst [vmem:[#allocation83_spill] sm:$0xff] %v4621_v21  ;;  %7005 = vst [vmem:[#allocation84_spill] sm:$0xff] %v4623_v45  ;;  %v260_v7 = vand.u32 4294901760, %v99_v60  ;;  %v4643_v32 = vpack.c.bf16 %v1846_v26, %v1842_v36  ;;  %v4645_v54 = vsub.f32 %v159_v14, %v1846_v26  ;;  %v4647_v11 = vpack.c.bf16 %v254_v9, %v250_v37  ;;  %v162_v21 = vld [vmem:[#allocation5 + $0x310] sm:$0xff]  ;;  %v101_v36 = vld [vmem:[#allocation5 + $0x128] sm:$0xff] }
  0x53   :  { %7006 = vst [vmem:[#allocation85_spill] sm:$0xff] %v4625_v22  ;;  %7007 = vst [vmem:[#allocation86_spill] sm:$0xff] %v4627_v53  ;;  %v163_v53 = vld [vmem:[#allocation5 + $0x318] sm:$0xff]  ;;  %v4649_v28 = vsub.f32 %v92_v47, %v250_v37  ;;  %v96_v22 = vld [vmem:[#allocation5 + $0x100] sm:$0xff]  ;;  %v4651_v45 = vsub.f32 %v94_v8, %v254_v9  ;;  %v4653_v1 = vpack.c.bf16 %v1848_v42, %v1844_v15 }
  0x54   :  { %7008 = vst [vmem:[#allocation87_spill] sm:$0xff] %v4629_v0  ;;  %7009 = vst [vmem:[#allocation88_spill] sm:$0xff] %v4633_v24  ;;  %v161_v0 = vld [vmem:[#allocation5 + $0x308] sm:$0xff]  ;;  %v4655_v24 = vsub.f32 %v156_v55, %v1844_v15  ;;  %3823 = vmatprep.subr.bf16.mxu0 %v4643_v32  ;;  %3441 = vmatpush1.bf16.msra.mxu1 %v4647_v11  ;;  %v4661_v14 = vpack.c.bf16 %v260_v7, %v256_v20  ;;  %v1854_v55 = vand.u32 4294901760, %v163_v53 }
  0x55   :  { %7010 = vst [vmem:[#allocation89_spill] sm:$0xff] %v4635_v31  ;;  %7011 = vst [vmem:[#allocation90_spill] sm:$0xff] %v4637_v38  ;;  %v98_v38 = vld [vmem:[#allocation5 + $0x110] sm:$0xff]  ;;  %v160_v31 = vld [vmem:[#allocation5 + $0x300] sm:$0xff]  ;;  %v4663_v47 = vsub.f32 %v97_v29, %v256_v20  ;;  %v4665_v26 = vsub.f32 %v99_v60, %v260_v7  ;;  %v1850_v8 = vand.u32 4294901760, %v161_v0  ;;  %3825 = vmatpush1.bf16.msra.mxu0 %v4653_v1  ;;  %v258_v37 = vand.u32 4294901760, %v96_v22 }
  0x56   :  { %7012 = vst [vmem:[#allocation91_spill] sm:$0xff] %v4641_v49  ;;  %7013 = vst [vmem:[#allocation92_spill] sm:$0xff] %v4643_v32  ;;  %v4657_v49 = vsub.f32 %v158_v2, %v1848_v42  ;;  %v262_v2 = vand.u32 4294901760, %v98_v38  ;;  %v1852_v9 = vand.u32 4294901760, %v160_v31  ;;  %3443 = vmatprep.subr.bf16.mxu1 %v4661_v14  ;;  %v1856_v42 = vand.u32 4294901760, %v162_v21 }
  0x57   :  { %7014 = vst [vmem:[#allocation93_spill] sm:$0xff] %v4645_v54  ;;  %7015 = vst [vmem:[#allocation94_spill] sm:$0xff] %v4647_v11  ;;  %v4669_v15 = vsub.f32 %v161_v0, %v1850_v8  ;;  %v264_v32 = vand.u32 4294901760, %v101_v36  ;;  %v268_v11 = vand.u32 4294901760, %v103_v59  ;;  %v4671_v20 = vpack.c.bf16 %v1854_v55, %v1850_v8  ;;  %v105_v8 = vld [vmem:[#allocation5 + $0x148] sm:$0xff]  ;;  %v107_v54 = vld [vmem:[#allocation5 + $0x158] sm:$0xff] }
  0x58   :  { %7016 = vst [vmem:[#allocation95_spill] sm:$0xff] %v4649_v28  ;;  %7017 = vst [vmem:[#allocation96_spill] sm:$0xff] %v4651_v45  ;;  %v4673_v60 = vsub.f32 %v163_v53, %v1854_v55  ;;  %v4675_v7 = vpack.c.bf16 %v262_v2, %v258_v37  ;;  %v4677_v29 = vsub.f32 %v96_v22, %v258_v37  ;;  %v166_v28 = vld [vmem:[#allocation5 + $0x330] sm:$0xff] }
  0x59   :  { %7018 = vst [vmem:[#allocation97_spill] sm:$0xff] %v4653_v1  ;;  %7019 = vst [vmem:[#allocation98_spill] sm:$0xff] %v4655_v24  ;;  %v167_v24 = vld [vmem:[#allocation5 + $0x338] sm:$0xff]  ;;  %v100_v1 = vld [vmem:[#allocation5 + $0x120] sm:$0xff]  ;;  %v4679_v45 = vsub.f32 %v98_v38, %v262_v2  ;;  %v4681_v0 = vpack.c.bf16 %v1856_v42, %v1852_v9  ;;  %3827 = vmatprep.subr.bf16.mxu0 %v4671_v20  ;;  %v4689_v53 = vpack.c.bf16 %v268_v11, %v264_v32 }
  0x5a   :  { %7020 = vst [vmem:[#allocation99_spill] sm:$0xff] %v4657_v49  ;;  %7021 = vst [vmem:[#allocation100_spill] sm:$0xff] %v4661_v14  ;;  %v165_v49 = vld [vmem:[#allocation5 + $0x328] sm:$0xff]  ;;  %v4683_v14 = vsub.f32 %v160_v31, %v1852_v9  ;;  %3445 = vmatpush1.bf16.msra.mxu1 %v4675_v7  ;;  %v4691_v22 = vsub.f32 %v101_v36, %v264_v32  ;;  %v4693_v55 = vsub.f32 %v103_v59, %v268_v11 }
  0x5b   :  { %7022 = vst [vmem:[#allocation101_spill] sm:$0xff] %v4663_v47  ;;  %7023 = vst [vmem:[#allocation102_spill] sm:$0xff] %v4665_v26  ;;  %v102_v26 = vld [vmem:[#allocation5 + $0x130] sm:$0xff]  ;;  %v164_v47 = vld [vmem:[#allocation5 + $0x320] sm:$0xff]  ;;  %v1858_v38 = vand.u32 4294901760, %v165_v49  ;;  %3829 = vmatpush1.bf16.msra.mxu0 %v4681_v0  ;;  %v1862_v31 = vand.u32 4294901760, %v167_v24  ;;  %3447 = vmatprep.subr.bf16.mxu1 %v4689_v53 }
  0x5c   :  { %7024 = vst [vmem:[#allocation103_spill] sm:$0xff] %v4669_v15  ;;  %7025 = vst [vmem:[#allocation104_spill] sm:$0xff] %v4671_v20  ;;  %v4685_v15 = vsub.f32 %v162_v21, %v1856_v42  ;;  %v266_v37 = vand.u32 4294901760, %v100_v1  ;;  %v270_v21 = vand.u32 4294901760, %v102_v26  ;;  %v1860_v2 = vand.u32 4294901760, %v164_v47 }
  0x5d   :  { %7026 = vst [vmem:[#allocation105_spill] sm:$0xff] %v4673_v60  ;;  %7027 = vst [vmem:[#allocation106_spill] sm:$0xff] %v4675_v7  ;;  %v4697_v9 = vsub.f32 %v165_v49, %v1858_v38  ;;  %v1864_v42 = vand.u32 4294901760, %v166_v28  ;;  %v272_v20 = vand.u32 4294901760, %v105_v8  ;;  %v276_v7 = vand.u32 4294901760, %v107_v54  ;;  %v111_v60 = vld [vmem:[#allocation5 + $0x178] sm:$0xff] }
  0x5e   :  { %7028 = vst [vmem:[#allocation107_spill] sm:$0xff] %v4677_v29  ;;  %7029 = vst [vmem:[#allocation108_spill] sm:$0xff] %v4679_v45  ;;  %v4699_v32 = vpack.c.bf16 %v1862_v31, %v1858_v38  ;;  %v4701_v59 = vsub.f32 %v167_v24, %v1862_v31  ;;  %v4703_v11 = vpack.c.bf16 %v270_v21, %v266_v37  ;;  %v170_v29 = vld [vmem:[#allocation5 + $0x350] sm:$0xff]  ;;  %v109_v38 = vld [vmem:[#allocation5 + $0x168] sm:$0xff] }
  0x5f   :  { %7030 = vst [vmem:[#allocation109_spill] sm:$0xff] %v4681_v0  ;;  %7031 = vst [vmem:[#allocation110_spill] sm:$0xff] %v4683_v14  ;;  %v171_v14 = vld [vmem:[#allocation5 + $0x358] sm:$0xff]  ;;  %v4705_v36 = vsub.f32 %v100_v1, %v266_v37  ;;  %v104_v0 = vld [vmem:[#allocation5 + $0x140] sm:$0xff]  ;;  %v4707_v45 = vsub.f32 %v102_v26, %v270_v21  ;;  %v4709_v49 = vpack.c.bf16 %v1864_v42, %v1860_v2 }
  0x60   :  { %7032 = vst [vmem:[#allocation111_spill] sm:$0xff] %v4685_v15  ;;  %7033 = vst [vmem:[#allocation112_spill] sm:$0xff] %v4689_v53  ;;  %v169_v15 = vld [vmem:[#allocation5 + $0x348] sm:$0xff]  ;;  %v4711_v53 = vsub.f32 %v164_v47, %v1860_v2  ;;  %3831 = vmatprep.subr.bf16.mxu0 %v4699_v32  ;;  %3449 = vmatpush1.bf16.msra.mxu1 %v4703_v11  ;;  %v4717_v24 = vpack.c.bf16 %v276_v7, %v272_v20  ;;  %v1870_v47 = vand.u32 4294901760, %v171_v14 }
  0x61   :  { %7034 = vst [vmem:[#allocation113_spill] sm:$0xff] %v4691_v22  ;;  %7035 = vst [vmem:[#allocation114_spill] sm:$0xff] %v4693_v55  ;;  %v106_v55 = vld [vmem:[#allocation5 + $0x150] sm:$0xff]  ;;  %v168_v22 = vld [vmem:[#allocation5 + $0x340] sm:$0xff]  ;;  %v4719_v1 = vsub.f32 %v105_v8, %v272_v20  ;;  %v4721_v31 = vsub.f32 %v107_v54, %v276_v7  ;;  %v1866_v26 = vand.u32 4294901760, %v169_v15  ;;  %3833 = vmatpush1.bf16.msra.mxu0 %v4709_v49  ;;  %v274_v37 = vand.u32 4294901760, %v104_v0 }
  0x62   :  { %7036 = vst [vmem:[#allocation115_spill] sm:$0xff] %v4697_v9  ;;  %7037 = vst [vmem:[#allocation116_spill] sm:$0xff] %v4699_v32  ;;  %v4713_v9 = vsub.f32 %v166_v28, %v1864_v42  ;;  %v278_v28 = vand.u32 4294901760, %v106_v55  ;;  %v1868_v21 = vand.u32 4294901760, %v168_v22  ;;  %3451 = vmatprep.subr.bf16.mxu1 %v4717_v24  ;;  %v1872_v42 = vand.u32 4294901760, %v170_v29 }
  0x63   :  { %7038 = vst [vmem:[#allocation117_spill] sm:$0xff] %v4701_v59  ;;  %7039 = vst [vmem:[#allocation118_spill] sm:$0xff] %v4703_v11  ;;  %v4725_v2 = vsub.f32 %v169_v15, %v1866_v26  ;;  %v280_v32 = vand.u32 4294901760, %v109_v38  ;;  %v284_v11 = vand.u32 4294901760, %v111_v60  ;;  %v4727_v20 = vpack.c.bf16 %v1870_v47, %v1866_v26  ;;  %v113_v26 = vld [vmem:[#allocation5 + $0x188] sm:$0xff]  ;;  %v115_v59 = vld [vmem:[#allocation5 + $0x198] sm:$0xff] }
  0x64   :  { %7040 = vst [vmem:[#allocation119_spill] sm:$0xff] %v4705_v36  ;;  %7041 = vst [vmem:[#allocation120_spill] sm:$0xff] %v4707_v45  ;;  %v4729_v54 = vsub.f32 %v171_v14, %v1870_v47  ;;  %v4731_v7 = vpack.c.bf16 %v278_v28, %v274_v37  ;;  %v4733_v8 = vsub.f32 %v104_v0, %v274_v37  ;;  %v174_v36 = vld [vmem:[#allocation5 + $0x370] sm:$0xff] }
  0x65   :  { %7042 = vst [vmem:[#allocation121_spill] sm:$0xff] %v4709_v49  ;;  %7043 = vst [vmem:[#allocation122_spill] sm:$0xff] %v4711_v53  ;;  %v175_v53 = vld [vmem:[#allocation5 + $0x378] sm:$0xff]  ;;  %v108_v49 = vld [vmem:[#allocation5 + $0x160] sm:$0xff]  ;;  %v4735_v45 = vsub.f32 %v106_v55, %v278_v28  ;;  %v4737_v15 = vpack.c.bf16 %v1872_v42, %v1868_v21  ;;  %3835 = vmatprep.subr.bf16.mxu0 %v4727_v20  ;;  %v4745_v14 = vpack.c.bf16 %v284_v11, %v280_v32 }
  0x66   :  { %7044 = vst [vmem:[#allocation123_spill] sm:$0xff] %v4713_v9  ;;  %7045 = vst [vmem:[#allocation124_spill] sm:$0xff] %v4717_v24  ;;  %v173_v9 = vld [vmem:[#allocation5 + $0x368] sm:$0xff]  ;;  %v4739_v24 = vsub.f32 %v168_v22, %v1868_v21  ;;  %3453 = vmatpush1.bf16.msra.mxu1 %v4731_v7  ;;  %v4747_v0 = vsub.f32 %v109_v38, %v280_v32  ;;  %v4749_v47 = vsub.f32 %v111_v60, %v284_v11 }
  0x67   :  { %7046 = vst [vmem:[#allocation125_spill] sm:$0xff] %v4719_v1  ;;  %7047 = vst [vmem:[#allocation126_spill] sm:$0xff] %v4721_v31  ;;  %v110_v31 = vld [vmem:[#allocation5 + $0x170] sm:$0xff]  ;;  %v172_v1 = vld [vmem:[#allocation5 + $0x360] sm:$0xff]  ;;  %v1874_v55 = vand.u32 4294901760, %v173_v9  ;;  %3837 = vmatpush1.bf16.msra.mxu0 %v4737_v15  ;;  %v1878_v22 = vand.u32 4294901760, %v175_v53  ;;  %3455 = vmatprep.subr.bf16.mxu1 %v4745_v14 }
  0x68   :  { %7048 = vst [vmem:[#allocation127_spill] sm:$0xff] %v4725_v2  ;;  %7049 = vst [vmem:[#allocation128_spill] sm:$0xff] %v4727_v20  ;;  %v4741_v2 = vsub.f32 %v170_v29, %v1872_v42  ;;  %v282_v37 = vand.u32 4294901760, %v108_v49  ;;  %v286_v29 = vand.u32 4294901760, %v110_v31  ;;  %v1876_v28 = vand.u32 4294901760, %v172_v1 }
  0x69   :  { %7050 = vst [vmem:[#allocation129_spill] sm:$0xff] %v4729_v54  ;;  %7051 = vst [vmem:[#allocation130_spill] sm:$0xff] %v4731_v7  ;;  %v4753_v21 = vsub.f32 %v173_v9, %v1874_v55  ;;  %v1880_v42 = vand.u32 4294901760, %v174_v36  ;;  %v288_v20 = vand.u32 4294901760, %v113_v26  ;;  %v292_v7 = vand.u32 4294901760, %v115_v59  ;;  %v119_v54 = vld [vmem:[#allocation5 + $0x1b8] sm:$0xff] }
  0x6a   :  { %7052 = vst [vmem:[#allocation131_spill] sm:$0xff] %v4733_v8  ;;  %7053 = vst [vmem:[#allocation132_spill] sm:$0xff] %v4735_v45  ;;  %v4755_v32 = vpack.c.bf16 %v1878_v22, %v1874_v55  ;;  %v4757_v60 = vsub.f32 %v175_v53, %v1878_v22  ;;  %v4759_v11 = vpack.c.bf16 %v286_v29, %v282_v37  ;;  %v178_v8 = vld [vmem:[#allocation5 + $0x390] sm:$0xff]  ;;  %v117_v55 = vld [vmem:[#allocation5 + $0x1a8] sm:$0xff] }
  0x6b   :  { %7054 = vst [vmem:[#allocation133_spill] sm:$0xff] %v4737_v15  ;;  %7055 = vst [vmem:[#allocation134_spill] sm:$0xff] %v4739_v24  ;;  %v179_v24 = vld [vmem:[#allocation5 + $0x398] sm:$0xff]  ;;  %v4761_v38 = vsub.f32 %v108_v49, %v282_v37  ;;  %v112_v15 = vld [vmem:[#allocation5 + $0x180] sm:$0xff]  ;;  %v4763_v45 = vsub.f32 %v110_v31, %v286_v29  ;;  %v4765_v9 = vpack.c.bf16 %v1880_v42, %v1876_v28 }
  0x6c   :  { %7056 = vst [vmem:[#allocation135_spill] sm:$0xff] %v4741_v2  ;;  %7057 = vst [vmem:[#allocation136_spill] sm:$0xff] %v4745_v14  ;;  %v177_v2 = vld [vmem:[#allocation5 + $0x388] sm:$0xff]  ;;  %v4767_v14 = vsub.f32 %v172_v1, %v1876_v28  ;;  %3839 = vmatprep.subr.bf16.mxu0 %v4755_v32  ;;  %3457 = vmatpush1.bf16.msra.mxu1 %v4759_v11  ;;  %v4773_v53 = vpack.c.bf16 %v292_v7, %v288_v20  ;;  %v1886_v1 = vand.u32 4294901760, %v179_v24 }
  0x6d   :  { %7058 = vst [vmem:[#allocation137_spill] sm:$0xff] %v4747_v0  ;;  %7059 = vst [vmem:[#allocation138_spill] sm:$0xff] %v4749_v47  ;;  %v114_v47 = vld [vmem:[#allocation5 + $0x190] sm:$0xff]  ;;  %v176_v0 = vld [vmem:[#allocation5 + $0x380] sm:$0xff]  ;;  %v4775_v49 = vsub.f32 %v113_v26, %v288_v20  ;;  %v4777_v22 = vsub.f32 %v115_v59, %v292_v7  ;;  %v1882_v31 = vand.u32 4294901760, %v177_v2  ;;  %3841 = vmatpush1.bf16.msra.mxu0 %v4765_v9  ;;  %v290_v37 = vand.u32 4294901760, %v112_v15 }
  0x6e   :  { %7060 = vst [vmem:[#allocation139_spill] sm:$0xff] %v4753_v21  ;;  %7061 = vst [vmem:[#allocation140_spill] sm:$0xff] %v4755_v32  ;;  %v4769_v21 = vsub.f32 %v174_v36, %v1880_v42  ;;  %v294_v36 = vand.u32 4294901760, %v114_v47  ;;  %v1884_v29 = vand.u32 4294901760, %v176_v0  ;;  %3459 = vmatprep.subr.bf16.mxu1 %v4773_v53  ;;  %v1888_v42 = vand.u32 4294901760, %v178_v8 }
  0x6f   :  { %7062 = vst [vmem:[#allocation141_spill] sm:$0xff] %v4757_v60  ;;  %7063 = vst [vmem:[#allocation142_spill] sm:$0xff] %v4759_v11  ;;  %v4781_v28 = vsub.f32 %v177_v2, %v1882_v31  ;;  %v296_v32 = vand.u32 4294901760, %v117_v55  ;;  %v300_v11 = vand.u32 4294901760, %v119_v54  ;;  %v4783_v20 = vpack.c.bf16 %v1886_v1, %v1882_v31  ;;  %v121_v31 = vld [vmem:[#allocation5 + $0x1c8] sm:$0xff]  ;;  %v123_v60 = vld [vmem:[#allocation5 + $0x1d8] sm:$0xff] }
  0x70   :  { %7064 = vst [vmem:[#allocation143_spill] sm:$0xff] %v4761_v38  ;;  %7065 = vst [vmem:[#allocation144_spill] sm:$0xff] %v4763_v45  ;;  %v4785_v59 = vsub.f32 %v179_v24, %v1886_v1  ;;  %v4787_v7 = vpack.c.bf16 %v294_v36, %v290_v37  ;;  %v4789_v26 = vsub.f32 %v112_v15, %v290_v37  ;;  %v182_v38 = vld [vmem:[#allocation5 + $0x3b0] sm:$0xff] }
  0x71   :  { %7066 = vst [vmem:[#allocation145_spill] sm:$0xff] %v4765_v9  ;;  %7067 = vst [vmem:[#allocation146_spill] sm:$0xff] %v4767_v14  ;;  %v183_v14 = vld [vmem:[#allocation5 + $0x3b8] sm:$0xff]  ;;  %v116_v9 = vld [vmem:[#allocation5 + $0x1a0] sm:$0xff]  ;;  %v4791_v45 = vsub.f32 %v114_v47, %v294_v36  ;;  %v4793_v2 = vpack.c.bf16 %v1888_v42, %v1884_v29  ;;  %3843 = vmatprep.subr.bf16.mxu0 %v4783_v20  ;;  %v4801_v24 = vpack.c.bf16 %v300_v11, %v296_v32 }
  0x72   :  { %7068 = vst [vmem:[#allocation147_spill] sm:$0xff] %v4769_v21  ;;  %7069 = vst [vmem:[#allocation148_spill] sm:$0xff] %v4773_v53  ;;  %v181_v21 = vld [vmem:[#allocation5 + $0x3a8] sm:$0xff]  ;;  %v4795_v53 = vsub.f32 %v176_v0, %v1884_v29  ;;  %3461 = vmatpush1.bf16.msra.mxu1 %v4787_v7  ;;  %v4803_v15 = vsub.f32 %v117_v55, %v296_v32  ;;  %v4805_v1 = vsub.f32 %v119_v54, %v300_v11 }
  0x73   :  { %7070 = vst [vmem:[#allocation149_spill] sm:$0xff] %v4775_v49  ;;  %7071 = vst [vmem:[#allocation150_spill] sm:$0xff] %v4777_v22  ;;  %v118_v22 = vld [vmem:[#allocation5 + $0x1b0] sm:$0xff]  ;;  %v180_v49 = vld [vmem:[#allocation5 + $0x3a0] sm:$0xff]  ;;  %v1890_v47 = vand.u32 4294901760, %v181_v21  ;;  %3845 = vmatpush1.bf16.msra.mxu0 %v4793_v2  ;;  %v1894_v0 = vand.u32 4294901760, %v183_v14  ;;  %3463 = vmatprep.subr.bf16.mxu1 %v4801_v24 }
  0x74   :  { %7072 = vst [vmem:[#allocation151_spill] sm:$0xff] %v4781_v28  ;;  %7073 = vst [vmem:[#allocation152_spill] sm:$0xff] %v4783_v20  ;;  %v4797_v28 = vsub.f32 %v178_v8, %v1888_v42  ;;  %v298_v37 = vand.u32 4294901760, %v116_v9  ;;  %v302_v8 = vand.u32 4294901760, %v118_v22  ;;  %v1892_v36 = vand.u32 4294901760, %v180_v49 }
  0x75   :  { %7074 = vst [vmem:[#allocation153_spill] sm:$0xff] %v4785_v59  ;;  %7075 = vst [vmem:[#allocation154_spill] sm:$0xff] %v4787_v7  ;;  %v4809_v29 = vsub.f32 %v181_v21, %v1890_v47  ;;  %v1896_v42 = vand.u32 4294901760, %v182_v38  ;;  %v304_v20 = vand.u32 4294901760, %v121_v31  ;;  %v308_v7 = vand.u32 4294901760, %v123_v60  ;;  %v127_v59 = vld [vmem:[#allocation5 + $0x1f8] sm:$0xff] }
  0x76   :  { %7076 = vst [vmem:[#allocation155_spill] sm:$0xff] %v4789_v26  ;;  %7077 = vst [vmem:[#allocation156_spill] sm:$0xff] %v4791_v45  ;;  %v4811_v32 = vpack.c.bf16 %v1894_v0, %v1890_v47  ;;  %v4813_v54 = vsub.f32 %v183_v14, %v1894_v0  ;;  %v4815_v11 = vpack.c.bf16 %v302_v8, %v298_v37  ;;  %v186_v26 = vld [vmem:[#allocation5 + $0x3d0] sm:$0xff]  ;;  %v125_v47 = vld [vmem:[#allocation5 + $0x1e8] sm:$0xff] }
  0x77   :  { %7078 = vst [vmem:[#allocation157_spill] sm:$0xff] %v4793_v2  ;;  %7079 = vst [vmem:[#allocation158_spill] sm:$0xff] %v4795_v53  ;;  %v187_v53 = vld [vmem:[#allocation5 + $0x3d8] sm:$0xff]  ;;  %v4817_v55 = vsub.f32 %v116_v9, %v298_v37  ;;  %v120_v2 = vld [vmem:[#allocation5 + $0x1c0] sm:$0xff]  ;;  %v4819_v45 = vsub.f32 %v118_v22, %v302_v8  ;;  %v4821_v21 = vpack.c.bf16 %v1896_v42, %v1892_v36 }
  0x78   :  { %7080 = vst [vmem:[#allocation159_spill] sm:$0xff] %v4797_v28  ;;  %7081 = vst [vmem:[#allocation160_spill] sm:$0xff] %v4801_v24  ;;  %v185_v28 = vld [vmem:[#allocation5 + $0x3c8] sm:$0xff]  ;;  %v4823_v24 = vsub.f32 %v180_v49, %v1892_v36  ;;  %3847 = vmatprep.subr.bf16.mxu0 %v4811_v32  ;;  %3465 = vmatpush1.bf16.msra.mxu1 %v4815_v11  ;;  %v4829_v14 = vpack.c.bf16 %v308_v7, %v304_v20  ;;  %v1902_v49 = vand.u32 4294901760, %v187_v53 }
  0x79   :  { %7082 = vst [vmem:[#allocation161_spill] sm:$0xff] %v4803_v15  ;;  %7083 = vst [vmem:[#allocation162_spill] sm:$0xff] %v4805_v1  ;;  %v122_v1 = vld [vmem:[#allocation5 + $0x1d0] sm:$0xff]  ;;  %v184_v15 = vld [vmem:[#allocation5 + $0x3c0] sm:$0xff]  ;;  %v4831_v9 = vsub.f32 %v121_v31, %v304_v20  ;;  %v4833_v0 = vsub.f32 %v123_v60, %v308_v7  ;;  %v1898_v22 = vand.u32 4294901760, %v185_v28  ;;  %3849 = vmatpush1.bf16.msra.mxu0 %v4821_v21  ;;  %v306_v37 = vand.u32 4294901760, %v120_v2 }
  0x7a   :  { %7084 = vst [vmem:[#allocation163_spill] sm:$0xff] %v4809_v29  ;;  %7085 = vst [vmem:[#allocation164_spill] sm:$0xff] %v4811_v32  ;;  %v4825_v29 = vsub.f32 %v182_v38, %v1896_v42  ;;  %v310_v38 = vand.u32 4294901760, %v122_v1  ;;  %v1900_v8 = vand.u32 4294901760, %v184_v15  ;;  %3467 = vmatprep.subr.bf16.mxu1 %v4829_v14  ;;  %v1904_v42 = vand.u32 4294901760, %v186_v26 }
  0x7b   :  { %7086 = vst [vmem:[#allocation165_spill] sm:$0xff] %v4813_v54  ;;  %7087 = vst [vmem:[#allocation166_spill] sm:$0xff] %v4815_v11  ;;  %v4837_v36 = vsub.f32 %v185_v28, %v1898_v22  ;;  %v312_v32 = vand.u32 4294901760, %v125_v47  ;;  %v316_v11 = vand.u32 4294901760, %v127_v59  ;;  %v4839_v20 = vpack.c.bf16 %v1902_v49, %v1898_v22  ;;  %v41_v22 = vld [vmem:[#allocation2 + $0x8] sm:$0xff] }
  0x7c   :  { %7088 = vst [vmem:[#allocation167_spill] sm:$0xff] %v4817_v55  ;;  %7089 = vst [vmem:[#allocation168_spill] sm:$0xff] %v4819_v45  ;;  %v4841_v60 = vsub.f32 %v187_v53, %v1902_v49  ;;  %v4843_v7 = vpack.c.bf16 %v310_v38, %v306_v37  ;;  %v4845_v31 = vsub.f32 %v120_v2, %v306_v37  ;;  %v190_v55 = vld [vmem:[#allocation5 + $0x3f0] sm:$0xff] }
  0x7d   :  { %7090 = vst [vmem:[#allocation169_spill] sm:$0xff] %v4821_v21  ;;  %7091 = vst [vmem:[#allocation170_spill] sm:$0xff] %v4823_v24  ;;  %v191_v24 = vld [vmem:[#allocation5 + $0x3f8] sm:$0xff]  ;;  %v124_v21 = vld [vmem:[#allocation5 + $0x1e0] sm:$0xff]  ;;  %v4847_v45 = vsub.f32 %v122_v1, %v310_v38  ;;  %v4849_v28 = vpack.c.bf16 %v1904_v42, %v1900_v8  ;;  %3851 = vmatprep.subr.bf16.mxu0 %v4839_v20  ;;  %v4857_v53 = vpack.c.bf16 %v316_v11, %v312_v32 }
  0x7e   :  { %7092 = vst [vmem:[#allocation171_spill] sm:$0xff] %v4825_v29  ;;  %7093 = vst [vmem:[#allocation172_spill] sm:$0xff] %v4829_v14  ;;  %v189_v29 = vld [vmem:[#allocation5 + $0x3e8] sm:$0xff]  ;;  %v4851_v14 = vsub.f32 %v184_v15, %v1900_v8  ;;  %3469 = vmatpush1.bf16.msra.mxu1 %v4843_v7  ;;  %v4859_v2 = vsub.f32 %v125_v47, %v312_v32  ;;  %v4861_v49 = vsub.f32 %v127_v59, %v316_v11  ;;  %v43_v32 = vld [vmem:[#allocation2 + $0x18] sm:$0xff] }
  0x7f   :  { %7094 = vst [vmem:[#allocation173_spill] sm:$0xff] %v4831_v9  ;;  %7095 = vst [vmem:[#allocation174_spill] sm:$0xff] %v4833_v0  ;;  %v126_v0 = vld [vmem:[#allocation5 + $0x1f0] sm:$0xff]  ;;  %v188_v9 = vld [vmem:[#allocation5 + $0x3e0] sm:$0xff]  ;;  %v1906_v1 = vand.u32 4294901760, %v189_v29  ;;  %3853 = vmatpush1.bf16.msra.mxu0 %v4849_v28  ;;  %v1910_v37 = vand.u32 4294901760, %v191_v24  ;;  %3471 = vmatprep.subr.bf16.mxu1 %v4857_v53 }
  0x80   :  { %7096 = vst [vmem:[#allocation175_spill] sm:$0xff] %v4837_v36  ;;  %7097 = vst [vmem:[#allocation176_spill] sm:$0xff] %v4839_v20  ;;  %v4853_v36 = vsub.f32 %v186_v26, %v1904_v42  ;;  %v314_v15 = vand.u32 4294901760, %v124_v21  ;;  %v318_v38 = vand.u32 4294901760, %v126_v0  ;;  %v1908_v26 = vand.u32 4294901760, %v188_v9 }
  0x81   :  { %7098 = vst [vmem:[#allocation177_spill] sm:$0xff] %v4841_v60  ;;  %7099 = vst [vmem:[#allocation178_spill] sm:$0xff] %v4843_v7  ;;  %v4865_v8 = vsub.f32 %v189_v29, %v1906_v1  ;;  %v1912_v42 = vand.u32 4294901760, %v190_v55  ;;  %v4867_v20 = vand.u32 4294901760, %v41_v22  ;;  %v6541_v7 = vand.u32 4294901760, %v4440_v16 }
  0x82   :  { %7100 = vst [vmem:[#allocation179_spill] sm:$0xff] %v4845_v31  ;;  %7101 = vst [vmem:[#allocation180_spill] sm:$0xff] %v4847_v45  ;;  %v4870_v47 = vpack.c.bf16 %v1910_v37, %v1906_v1  ;;  %v4872_v59 = vsub.f32 %v191_v24, %v1910_v37  ;;  %v4874_v11 = vpack.c.bf16 %v318_v38, %v314_v15  ;;  %v4895_v1 = vand.u32 4294901760, %v43_v32 }
  0x83   :  { %7102 = vst [vmem:[#allocation181_spill] sm:$0xff] %v4849_v28  ;;  %7103 = vst [vmem:[#allocation182_spill] sm:$0xff] %v4851_v14  ;;  %v4876_v28 = vsub.f32 %v124_v21, %v314_v15  ;;  %v4882_v29 = vsub.f32 %v188_v9, %v1908_v26  ;;  %v4889_v24 = vsub.f32 %v41_v22, %v4867_v20  ;;  %v6556_v9 = vand.u32 4294901760, %v4448_v23 }
  0x84   :  { %7104 = vst [vmem:[#allocation183_spill] sm:$0xff] %v4853_v36  ;;  %7105 = vst [vmem:[#allocation184_spill] sm:$0xff] %v4857_v53  ;;  %v4880_v53 = vpack.c.bf16 %v1912_v42, %v1908_v26  ;;  %3855 = vmatprep.subr.bf16.mxu0 %v4870_v47  ;;  %3473 = vmatpush1.bf16.msra.mxu1 %v4874_v11  ;;  %v420_v21 = vsub.f32 %v4440_v16, %v6541_v7 }
  0x85   :  { %7106 = vst [vmem:[#allocation185_spill] sm:$0xff] %v4859_v2  ;;  %7107 = vst [vmem:[#allocation186_spill] sm:$0xff] %v4861_v49  ;;  %v40_v49 = vld [vmem:[#allocation2] sm:$0xff]  ;;  %v4878_v2 = vsub.f32 %v126_v0, %v318_v38  ;;  %v6544_v0 = vand.u32 4294901760, %v4442_v17 }
  0x86   :  { %7108 = vst [vmem:[#allocation187_spill] sm:$0xff] %v4865_v8  ;;  %7109 = vst [vmem:[#allocation188_spill] sm:$0xff] %v4867_v20  ;;  %v4884_v8 = vsub.f32 %v190_v55, %v1912_v42  ;;  %3857 = vmatpush1.bf16.msra.mxu0 %v4880_v53  ;;  %v6549_v55 = vand.u32 4294901760, %v4444_v18  ;;  %v4900_v37 = vand.u32 4294901760, %v40_v49  ;;  %v421_v38 = vand.u32 4294901760, %v420_v21 }
  0x87   :  { %7110 = vst [vmem:[#allocation189_spill] sm:$0xff] %v4870_v47  ;;  %7111 = vst [vmem:[#allocation190_spill] sm:$0xff] %v4872_v59  ;;  %v432_v26 = vsub.f32 %v4442_v17, %v6544_v0  ;;  %v4908_v42 = vsub.f32 %v43_v32, %v4895_v1  ;;  %v7123_v21 = vand.u32 4294901760, %v4452_v25  ;;  %v7124_v0 = vand.u32 4294901760, %v4889_v24 }
  0x88   :  { %7112 = vst [vmem:[#allocation191_spill] sm:$0xff] %v4874_v11  ;;  %7113 = vst [vmem:[#allocation192_spill] sm:$0xff] %v4876_v28  ;;  %v2014_v7 = vsub.f32 %v4444_v18, %v6549_v55  ;;  %v4917_v15 = vsub.f32 %v40_v49, %v4900_v37  ;;  %v6570_v55 = vand.u32 4294901760, %v4455_v27 }
  0x89   :  { %7114 = vst [vmem:[#allocation193_spill] sm:$0xff] %v4878_v2  ;;  %7115 = vst [vmem:[#allocation194_spill] sm:$0xff] %v4880_v53  ;;  %v2026_v53 = vsub.f32 %v4448_v23, %v6556_v9  ;;  %v426_v22 = vsub.f32 %v4452_v25, %v7123_v21  ;;  %v323_v32 = vsub.f32 %v4889_v24, %v7124_v0  ;;  %v433_v11 = vand.u32 4294901760, %v432_v26 }
  0x8a   :  { %7116 = vst [vmem:[#allocation195_spill] sm:$0xff] %v4882_v29  ;;  %7117 = vst [vmem:[#allocation196_spill] sm:$0xff] %v4884_v8  ;;  %v6563_v47 = vand.u32 4294901760, %v4908_v42  ;;  %v2015_v20 = vand.u32 4294901760, %v2014_v7  ;;  %v6564_v9 = vand.u32 4294901760, %v4917_v15  ;;  %v438_v0 = vsub.f32 %v4455_v27, %v6570_v55 }
  0x8b   :  { %7118 = vst [vmem:[#allocation197_spill] sm:$0xff] %v4889_v24  ;;  %7119 = vst [vmem:[#allocation198_spill] sm:$0xff] %v4895_v1  ;;  %v42_v1 = vld [vmem:[#allocation2 + $0x10] sm:$0xff]  ;;  %v2027_v18 = vand.u32 4294901760, %v2026_v53  ;;  %v427_v49 = vand.u32 4294901760, %v426_v22  ;;  %v3474_v23 = vpack.c.bf16 %v433_v11, %v421_v38  ;;  %v6566_v53 = vand.u32 4294901760, %v4461_v39 }
  0x8c   :  { %7120 = vst [vmem:[#allocation199_spill] sm:$0xff] %v4900_v37  ;;  %7121 = vst [vmem:[#allocation200_spill] sm:$0xff] %v4908_v42  ;;  %v324_v37 = vand.u32 4294901760, %v323_v32  ;;  %v1917_v21 = vsub.f32 %v4908_v42, %v6563_v47  ;;  %v329_v24 = vsub.f32 %v4917_v15, %v6564_v9  ;;  %v4937_v7 = vand.u32 4294901760, %v42_v1 }
  0x8d   :  { %7122 = vst [vmem:[#allocation201_spill] sm:$0xff] %v4917_v15  ;;  %v3858_v26 = vpack.c.bf16 %v2027_v18, %v2015_v20  ;;  %3475 = vmatprep.subr.bf16.mxu1 %v3474_v23  ;;  %v439_v22 = vand.u32 4294901760, %v438_v0  ;;  %v6565_v38 = vand.u32 4294901760, %v4463_v40  ;;  %v6568_v32 = vand.u32 4294901760, %v4465_v41 }
  0x8e   :  { %7125 = vst [vmem:[#allocation202_spill] sm:$0xff] %v4937_v7  ;;  %325 = vmatprep.mubr.f32.mxu1 %v324_v37  ;;  %v1918_v11 = vand.u32 4294901760, %v1917_v21  ;;  %v330_v47 = vand.u32 4294901760, %v329_v24  ;;  %v4943_v18 = vsub.f32 %v42_v1, %v4937_v7  ;;  %v2020_v20 = vsub.f32 %v4461_v39, %v6566_v53 }
  0x8f   :  { %3859 = vmatprep.subr.bf16.mxu0 %v3858_v26  ;;  %v6567_v9 = vand.u32 4294901760, %v4469_v46  ;;  %v3476_v37 = vpack.c.bf16 %v439_v22, %v427_v49  ;;  %v2032_v23 = vsub.f32 %v4463_v40, %v6565_v38  ;;  %v444_v21 = vsub.f32 %v4465_v41, %v6568_v32 }
  0x90   :  { %7126 = vst [vmem:[#allocation203_spill] sm:$0xff] %v4943_v18  ;;  %1919 = vmatprep.mubr.f32.mxu0 %v1918_v11  ;;  %v6569_v24 = vand.u32 4294901760, %v4473_v48  ;;  %331 = vmatmul.mubr.f32.vlgmr.msra.gmra.mrb[0].mxu1 %v330_v47  ;;  %v6575_v1 = vand.u32 4294901760, %v4943_v18  ;;  %v2021_v0 = vand.u32 4294901760, %v2020_v20  ;;  %v6576_v49 = vand.u32 4294901760, %v4476_v50 }
  0x91   :  { %v456_v26 = vsub.f32 %v4469_v46, %v6567_v9  ;;  %3477 = vmatpush1.bf16.msra.mxu1 %v3476_v37  ;;  %v2033_v11 = vand.u32 4294901760, %v2032_v23  ;;  %v445_v22 = vand.u32 4294901760, %v444_v21  ;;  %v6577_v53 = vand.u32 4294901760, %v4478_v52 }
  0x92   :  { %v2038_v38 = vsub.f32 %v4473_v48, %v6569_v24  ;;  %v1923_v47 = vsub.f32 %v4943_v18, %v6575_v1  ;;  %v2050_v9 = vsub.f32 %v4476_v50, %v6576_v49  ;;  %v6584_v32 = vand.u32 4294901760, %v4484_v61 }
  0x93   :  { %v457_v20 = vand.u32 4294901760, %v456_v26  ;;  %v3860_v37 = vpack.c.bf16 %v2033_v11, %v2021_v0  ;;  %v450_v21 = vsub.f32 %v4478_v52, %v6577_v53  ;;  %v6578_v24 = vand.u32 4294901760, %v4486_v62 }
  0x94   :  { %v2039_v23 = vand.u32 4294901760, %v2038_v38  ;;  %v1924_v55 = vand.u32 4294901760, %v1923_v47  ;;  %v2051_v42 = vand.u32 4294901760, %v2050_v9  ;;  %v462_v26 = vsub.f32 %v4484_v61, %v6584_v32 }
  0x95   :  { %v3478_v15 = vpack.c.bf16 %v457_v20, %v445_v22  ;;  %v451_v1 = vand.u32 4294901760, %v450_v21  ;;  %v2044_v49 = vsub.f32 %v4486_v62, %v6578_v24  ;;  %v6579_v38 = vand.u32 4294901760, %v4490_v4 }
  0x96   :  { %v6582_v0 = vand.u32 4294901760, %v4494_v6  ;;  %1925 = vmatmul.mubr.f32.vlgmr.msra.gmra.mrb[0].mxu0 %v1924_v55  ;;  %v3862_v11 = vpack.c.bf16 %v2051_v42, %v2039_v23  ;;  %v463_v53 = vand.u32 4294901760, %v462_v26  ;;  %v6580_v22 = vand.u32 4294901760, %v4497_v10 }
  0x97   :  { %3479 = vmatprep.subr.bf16.mxu1 %v3478_v15  ;;  %v6581_v9 = vand.u32 4294901760, %v4501_v12  ;;  %3861 = vmatpush1.bf16.msra.mxu0 %v3860_v37  ;;  %v2045_v47 = vand.u32 4294901760, %v2044_v49  ;;  %v2056_v20 = vsub.f32 %v4490_v4, %v6579_v38  ;;  %v6583_v24 = vand.u32 4294901760, %v4503_v13 }
  0x98   :  { %v468_v21 = vsub.f32 %v4494_v6, %v6582_v0  ;;  %3863 = vmatprep.subr.bf16.mxu0 %v3862_v11  ;;  %v3480_v55 = vpack.c.bf16 %v463_v53, %v451_v1  ;;  %v480_v15 = vsub.f32 %v4497_v10, %v6580_v22  ;;  %v6585_v49 = vand.u32 4294901760, %v4510_v33 }
  0x99   :  { %v2062_v42 = vsub.f32 %v4501_v12, %v6581_v9  ;;  %v2057_v37 = vand.u32 4294901760, %v2056_v20  ;;  %v2074_v26 = vsub.f32 %v4503_v13, %v6583_v24  ;;  %v6592_v38 = vand.u32 4294901760, %v4512_v34 }
  0x9a   :  { %v469_v23 = vand.u32 4294901760, %v468_v21  ;;  %3481 = vmatpush1.bf16.msra.mxu1 %v3480_v55  ;;  %v481_v53 = vand.u32 4294901760, %v480_v15  ;;  %v474_v11 = vsub.f32 %v4510_v33, %v6585_v49  ;;  %v6587_v22 = vand.u32 4294901760, %v4516_v43 }
  0x9b   :  { %v2063_v1 = vand.u32 4294901760, %v2062_v42  ;;  %v3864_v9 = vpack.c.bf16 %v2057_v37, %v2045_v47  ;;  %v2075_v0 = vand.u32 4294901760, %v2074_v26  ;;  %v486_v20 = vsub.f32 %v4512_v34, %v6592_v38 }
  0x9c   :  { %v6586_v21 = vand.u32 4294901760, %v4518_v44  ;;  %v3482_v24 = vpack.c.bf16 %v481_v53, %v469_v23  ;;  %v475_v32 = vand.u32 4294901760, %v474_v11  ;;  %v2068_v55 = vsub.f32 %v4516_v43, %v6587_v22 }
  0x9d   :  { %v6590_v15 = vand.u32 4294901760, %v4522_v51  ;;  %3865 = vmatpush1.bf16.msra.mxu0 %v3864_v9  ;;  %v3866_v42 = vpack.c.bf16 %v2075_v0, %v2063_v1  ;;  %v487_v49 = vand.u32 4294901760, %v486_v20  ;;  %v6588_v37 = vand.u32 4294901760, %v4526_v56 }
  0x9e   :  { %v2080_v47 = vsub.f32 %v4518_v44, %v6586_v21  ;;  %3483 = vmatprep.subr.bf16.mxu1 %v3482_v24  ;;  %v2069_v26 = vand.u32 4294901760, %v2068_v55  ;;  %v6589_v53 = vand.u32 4294901760, %v4530_v58  ;;  %v6591_v11 = vand.u32 4294901760, %v4533_v63 }
  0x9f   :  { %v492_v23 = vsub.f32 %v4522_v51, %v6590_v15  ;;  %3867 = vmatprep.subr.bf16.mxu0 %v3866_v42  ;;  %v3484_v9 = vpack.c.bf16 %v487_v49, %v475_v32  ;;  %v504_v1 = vsub.f32 %v4526_v56, %v6588_v37  ;;  %v6595_v20 = vand.u32 4294901760, %v4536_v19 }
  0xa0   :  { %v2081_v0 = vand.u32 4294901760, %v2080_v47  ;;  %v2086_v24 = vsub.f32 %v4530_v58, %v6589_v53  ;;  %v2098_v55 = vsub.f32 %v4533_v63, %v6591_v11  ;;  %v6593_v22 = vand.u32 4294901760, %v4540_v35 }
  0xa1   :  { %v493_v21 = vand.u32 4294901760, %v492_v23  ;;  %3485 = vmatpush1.bf16.msra.mxu1 %v3484_v9  ;;  %v505_v49 = vand.u32 4294901760, %v504_v1  ;;  %v498_v42 = vsub.f32 %v4536_v19, %v6595_v20  ;;  %v6594_v47 = vand.u32 4294901760, %v4544_v30 }
  0xa2   :  { %v3868_v32 = vpack.c.bf16 %v2081_v0, %v2069_v26  ;;  %v2087_v23 = vand.u32 4294901760, %v2086_v24  ;;  %v2099_v37 = vand.u32 4294901760, %v2098_v55  ;;  %v510_v53 = vsub.f32 %v4540_v35, %v6593_v22 }
  0xa3   :  { %v6596_v15 = vand.u32 4294901760, %v4546_v57  ;;  %v3486_v11 = vpack.c.bf16 %v505_v49, %v493_v21  ;;  %v499_v38 = vand.u32 4294901760, %v498_v42  ;;  %v2092_v26 = vsub.f32 %v4544_v30, %v6594_v47  ;;  %v7128_v42 = vld [vmem:[#allocation57_spill] sm:$0xff] }
  0xa4   :  { %3869 = vmatpush1.bf16.msra.mxu0 %v3868_v32  ;;  %v6599_v9 = vand.u32 4294901760, %v4550_v3  ;;  %v3870_v0 = vpack.c.bf16 %v2099_v37, %v2087_v23  ;;  %v511_v1 = vand.u32 4294901760, %v510_v53  ;;  %v6602_v55 = vand.u32 4294901760, %v4552_v5  ;;  %v7127_v32 = vld [vmem:[#allocation55_spill] sm:$0xff] }
  0xa5   :  { %v2104_v24 = vsub.f32 %v4546_v57, %v6596_v15  ;;  %3487 = vmatprep.subr.bf16.mxu1 %v3486_v11  ;;  %v2093_v22 = vand.u32 4294901760, %v2092_v26  ;;  %v6605_v49 = vand.u32 4294901760, %v7127_v32  ;;  %v6609_v47 = vand.u32 4294901760, %v7128_v42  ;;  %v7129_v23 = vld [vmem:[#allocation59_spill] sm:$0xff] }
  0xa6   :  { %v516_v21 = vsub.f32 %v4550_v3, %v6599_v9  ;;  %3871 = vmatprep.subr.bf16.mxu0 %v3870_v0  ;;  %v3488_v20 = vpack.c.bf16 %v511_v1, %v499_v38  ;;  %v528_v53 = vsub.f32 %v4552_v5, %v6602_v55  ;;  %v6611_v15 = vand.u32 4294901760, %v7129_v23  ;;  %v7130_v9 = vld [vmem:[#allocation60_spill] sm:$0xff] }
  0xa7   :  { %v2105_v37 = vand.u32 4294901760, %v2104_v24  ;;  %v2110_v11 = vsub.f32 %v7127_v32, %v6605_v49  ;;  %v2122_v26 = vsub.f32 %v7128_v42, %v6609_v47  ;;  %v6613_v3 = vand.u32 4294901760, %v7130_v9  ;;  %v7131_v24 = vld [vmem:[#allocation62_spill] sm:$0xff]  ;;  %v7132_v32 = vld [vmem:[#allocation63_spill] sm:$0xff] }
  0xa8   :  { %v517_v18 = vand.u32 4294901760, %v516_v21  ;;  %3489 = vmatpush1.bf16.msra.mxu1 %v3488_v20  ;;  %v529_v0 = vand.u32 4294901760, %v528_v53  ;;  %v522_v1 = vsub.f32 %v7129_v23, %v6611_v15  ;;  %v6614_v55 = vand.u32 4294901760, %v7131_v24  ;;  %v7133_v20 = vld [vmem:[#allocation65_spill] sm:$0xff] }
  0xa9   :  { %v3872_v38 = vpack.c.bf16 %v2105_v37, %v2093_v22  ;;  %v2111_v21 = vand.u32 4294901760, %v2110_v11  ;;  %v2123_v5 = vand.u32 4294901760, %v2122_v26  ;;  %v534_v49 = vsub.f32 %v7130_v9, %v6613_v3  ;;  %v7134_v26 = vld [vmem:[#allocation66_spill] sm:$0xff] }
  0xaa   :  { %v6616_v57 = vand.u32 4294901760, %v7132_v32  ;;  %v3490_v47 = vpack.c.bf16 %v529_v0, %v517_v18  ;;  %v523_v42 = vand.u32 4294901760, %v522_v1  ;;  %v2116_v22 = vsub.f32 %v7131_v24, %v6614_v55  ;;  %v7136_v1 = vld [vmem:[#allocation69_spill] sm:$0xff] }
  0xab   :  { %3873 = vmatpush1.bf16.msra.mxu0 %v3872_v38  ;;  %v6618_v37 = vand.u32 4294901760, %v7133_v20  ;;  %v3874_v53 = vpack.c.bf16 %v2123_v5, %v2111_v21  ;;  %v535_v15 = vand.u32 4294901760, %v534_v49  ;;  %v6620_v23 = vand.u32 4294901760, %v7134_v26  ;;  %v7135_v38 = vld [vmem:[#allocation67_spill] sm:$0xff] }
  0xac   :  { %v2128_v11 = vsub.f32 %v7132_v32, %v6616_v57  ;;  %3491 = vmatprep.subr.bf16.mxu1 %v3490_v47  ;;  %v2117_v3 = vand.u32 4294901760, %v2116_v22  ;;  %v6622_v0 = vand.u32 4294901760, %v7135_v38  ;;  %v6625_v55 = vand.u32 4294901760, %v7136_v1  ;;  %v7137_v21 = vld [vmem:[#allocation71_spill] sm:$0xff] }
  0xad   :  { %v540_v18 = vsub.f32 %v7133_v20, %v6618_v37  ;;  %3875 = vmatprep.subr.bf16.mxu0 %v3874_v53  ;;  %v3492_v24 = vpack.c.bf16 %v535_v15, %v523_v42  ;;  %v552_v49 = vsub.f32 %v7134_v26, %v6620_v23  ;;  %v6627_v57 = vand.u32 4294901760, %v7137_v21  ;;  %v7138_v37 = vld [vmem:[#allocation72_spill] sm:$0xff] }
  0xae   :  { %v2129_v5 = vand.u32 4294901760, %v2128_v11  ;;  %v2134_v47 = vsub.f32 %v7135_v38, %v6622_v0  ;;  %v2146_v22 = vsub.f32 %v7136_v1, %v6625_v55  ;;  %v6629_v20 = vand.u32 4294901760, %v7138_v37  ;;  %v7139_v11 = vld [vmem:[#allocation74_spill] sm:$0xff]  ;;  %v7140_v38 = vld [vmem:[#allocation75_spill] sm:$0xff] }
  0xaf   :  { %v541_v32 = vand.u32 4294901760, %v540_v18  ;;  %3493 = vmatpush1.bf16.msra.mxu1 %v3492_v24  ;;  %v553_v42 = vand.u32 4294901760, %v552_v49  ;;  %v546_v53 = vsub.f32 %v7137_v21, %v6627_v57  ;;  %v6630_v23 = vand.u32 4294901760, %v7139_v11  ;;  %v7141_v24 = vld [vmem:[#allocation77_spill] sm:$0xff] }
  0xb0   :  { %v3876_v15 = vpack.c.bf16 %v2129_v5, %v2117_v3  ;;  %v2135_v18 = vand.u32 4294901760, %v2134_v47  ;;  %v2147_v26 = vand.u32 4294901760, %v2146_v22  ;;  %v558_v0 = vsub.f32 %v7138_v37, %v6629_v20  ;;  %v7142_v22 = vld [vmem:[#allocation78_spill] sm:$0xff] }
  0xb1   :  { %v6632_v9 = vand.u32 4294901760, %v7140_v38  ;;  %v3494_v55 = vpack.c.bf16 %v553_v42, %v541_v32  ;;  %v547_v1 = vand.u32 4294901760, %v546_v53  ;;  %v2140_v3 = vsub.f32 %v7139_v11, %v6630_v23  ;;  %v7144_v53 = vld [vmem:[#allocation81_spill] sm:$0xff] }
  0xb2   :  { %3877 = vmatpush1.bf16.msra.mxu0 %v3876_v15  ;;  %v6634_v5 = vand.u32 4294901760, %v7141_v24  ;;  %v3878_v49 = vpack.c.bf16 %v2147_v26, %v2135_v18  ;;  %v559_v57 = vand.u32 4294901760, %v558_v0  ;;  %v6636_v21 = vand.u32 4294901760, %v7142_v22  ;;  %v7143_v15 = vld [vmem:[#allocation79_spill] sm:$0xff] }
  0xb3   :  { %v2152_v47 = vsub.f32 %v7140_v38, %v6632_v9  ;;  %3495 = vmatprep.subr.bf16.mxu1 %v3494_v55  ;;  %v2141_v20 = vand.u32 4294901760, %v2140_v3  ;;  %v6638_v42 = vand.u32 4294901760, %v7143_v15  ;;  %v6641_v23 = vand.u32 4294901760, %v7144_v53  ;;  %v7145_v18 = vld [vmem:[#allocation83_spill] sm:$0xff] }
  0xb4   :  { %v564_v32 = vsub.f32 %v7141_v24, %v6634_v5  ;;  %3879 = vmatprep.subr.bf16.mxu0 %v3878_v49  ;;  %v3496_v11 = vpack.c.bf16 %v559_v57, %v547_v1  ;;  %v576_v0 = vsub.f32 %v7142_v22, %v6636_v21  ;;  %v6643_v9 = vand.u32 4294901760, %v7145_v18  ;;  %v7146_v5 = vld [vmem:[#allocation84_spill] sm:$0xff] }
  0xb5   :  { %v2153_v26 = vand.u32 4294901760, %v2152_v47  ;;  %v2158_v55 = vsub.f32 %v7143_v15, %v6638_v42  ;;  %v2170_v3 = vsub.f32 %v7144_v53, %v6641_v23  ;;  %v6645_v24 = vand.u32 4294901760, %v7146_v5  ;;  %v7147_v47 = vld [vmem:[#allocation86_spill] sm:$0xff]  ;;  %v7148_v15 = vld [vmem:[#allocation87_spill] sm:$0xff] }
  0xb6   :  { %v565_v38 = vand.u32 4294901760, %v564_v32  ;;  %3497 = vmatpush1.bf16.msra.mxu1 %v3496_v11  ;;  %v577_v1 = vand.u32 4294901760, %v576_v0  ;;  %v570_v49 = vsub.f32 %v7145_v18, %v6643_v9  ;;  %v6646_v21 = vand.u32 4294901760, %v7147_v47  ;;  %v7149_v11 = vld [vmem:[#allocation89_spill] sm:$0xff] }
  0xb7   :  { %v3880_v57 = vpack.c.bf16 %v2153_v26, %v2141_v20  ;;  %v2159_v32 = vand.u32 4294901760, %v2158_v55  ;;  %v2171_v22 = vand.u32 4294901760, %v2170_v3  ;;  %v582_v42 = vsub.f32 %v7146_v5, %v6645_v24  ;;  %v7150_v3 = vld [vmem:[#allocation90_spill] sm:$0xff] }
  0xb8   :  { %v6648_v37 = vand.u32 4294901760, %v7148_v15  ;;  %v3498_v23 = vpack.c.bf16 %v577_v1, %v565_v38  ;;  %v571_v53 = vand.u32 4294901760, %v570_v49  ;;  %v2164_v20 = vsub.f32 %v7147_v47, %v6646_v21  ;;  %v7152_v49 = vld [vmem:[#allocation93_spill] sm:$0xff] }
  0xb9   :  { %3881 = vmatpush1.bf16.msra.mxu0 %v3880_v57  ;;  %v6650_v26 = vand.u32 4294901760, %v7149_v11  ;;  %v3882_v0 = vpack.c.bf16 %v2171_v22, %v2159_v32  ;;  %v583_v9 = vand.u32 4294901760, %v582_v42  ;;  %v6652_v18 = vand.u32 4294901760, %v7150_v3  ;;  %v7151_v57 = vld [vmem:[#allocation91_spill] sm:$0xff] }
  0xba   :  { %v2176_v55 = vsub.f32 %v7148_v15, %v6648_v37  ;;  %3499 = vmatprep.subr.bf16.mxu1 %v3498_v23  ;;  %v2165_v24 = vand.u32 4294901760, %v2164_v20  ;;  %v6654_v1 = vand.u32 4294901760, %v7151_v57  ;;  %v6657_v21 = vand.u32 4294901760, %v7152_v49  ;;  %v7153_v32 = vld [vmem:[#allocation95_spill] sm:$0xff] }
  0xbb   :  { %v588_v38 = vsub.f32 %v7149_v11, %v6650_v26  ;;  %3883 = vmatprep.subr.bf16.mxu0 %v3882_v0  ;;  %v3500_v47 = vpack.c.bf16 %v583_v9, %v571_v53  ;;  %v600_v42 = vsub.f32 %v7150_v3, %v6652_v18  ;;  %v6659_v37 = vand.u32 4294901760, %v7153_v32  ;;  %v7154_v26 = vld [vmem:[#allocation96_spill] sm:$0xff] }
  0xbc   :  { %v2177_v22 = vand.u32 4294901760, %v2176_v55  ;;  %v2182_v23 = vsub.f32 %v7151_v57, %v6654_v1  ;;  %v2194_v20 = vsub.f32 %v7152_v49, %v6657_v21  ;;  %v6661_v11 = vand.u32 4294901760, %v7154_v26  ;;  %v7155_v55 = vld [vmem:[#allocation98_spill] sm:$0xff]  ;;  %v7156_v57 = vld [vmem:[#allocation99_spill] sm:$0xff] }
  0xbd   :  { %v589_v15 = vand.u32 4294901760, %v588_v38  ;;  %3501 = vmatpush1.bf16.msra.mxu1 %v3500_v47  ;;  %v601_v53 = vand.u32 4294901760, %v600_v42  ;;  %v594_v0 = vsub.f32 %v7153_v32, %v6659_v37  ;;  %v6662_v18 = vand.u32 4294901760, %v7155_v55  ;;  %v7157_v47 = vld [vmem:[#allocation101_spill] sm:$0xff] }
  0xbe   :  { %v3884_v9 = vpack.c.bf16 %v2177_v22, %v2165_v24  ;;  %v2183_v38 = vand.u32 4294901760, %v2182_v23  ;;  %v2195_v3 = vand.u32 4294901760, %v2194_v20  ;;  %v606_v1 = vsub.f32 %v7154_v26, %v6661_v11  ;;  %v7158_v20 = vld [vmem:[#allocation102_spill] sm:$0xff] }
  0xbf   :  { %v6664_v5 = vand.u32 4294901760, %v7156_v57  ;;  %v3502_v21 = vpack.c.bf16 %v601_v53, %v589_v15  ;;  %v595_v49 = vand.u32 4294901760, %v594_v0  ;;  %v2188_v24 = vsub.f32 %v7155_v55, %v6662_v18  ;;  %v7160_v0 = vld [vmem:[#allocation105_spill] sm:$0xff] }
  0xc0   :  { %3885 = vmatpush1.bf16.msra.mxu0 %v3884_v9  ;;  %v6666_v22 = vand.u32 4294901760, %v7157_v47  ;;  %v3886_v42 = vpack.c.bf16 %v2195_v3, %v2183_v38  ;;  %v607_v37 = vand.u32 4294901760, %v606_v1  ;;  %v6668_v32 = vand.u32 4294901760, %v7158_v20  ;;  %v7159_v9 = vld [vmem:[#allocation103_spill] sm:$0xff] }
  0xc1   :  { %v2200_v23 = vsub.f32 %v7156_v57, %v6664_v5  ;;  %3503 = vmatprep.subr.bf16.mxu1 %v3502_v21  ;;  %v2189_v11 = vand.u32 4294901760, %v2188_v24  ;;  %v6670_v53 = vand.u32 4294901760, %v7159_v9  ;;  %v6673_v18 = vand.u32 4294901760, %v7160_v0  ;;  %v7161_v38 = vld [vmem:[#allocation107_spill] sm:$0xff] }
  0xc2   :  { %v612_v15 = vsub.f32 %v7157_v47, %v6666_v22  ;;  %3887 = vmatprep.subr.bf16.mxu0 %v3886_v42  ;;  %v3504_v55 = vpack.c.bf16 %v607_v37, %v595_v49  ;;  %v624_v1 = vsub.f32 %v7158_v20, %v6668_v32  ;;  %v6675_v5 = vand.u32 4294901760, %v7161_v38  ;;  %v7162_v22 = vld [vmem:[#allocation108_spill] sm:$0xff] }
  0xc3   :  { %v2201_v3 = vand.u32 4294901760, %v2200_v23  ;;  %v2206_v21 = vsub.f32 %v7159_v9, %v6670_v53  ;;  %v2218_v24 = vsub.f32 %v7160_v0, %v6673_v18  ;;  %v6677_v47 = vand.u32 4294901760, %v7162_v22  ;;  %v7163_v23 = vld [vmem:[#allocation110_spill] sm:$0xff]  ;;  %v7164_v9 = vld [vmem:[#allocation111_spill] sm:$0xff] }
  0xc4   :  { %v613_v57 = vand.u32 4294901760, %v612_v15  ;;  %3505 = vmatpush1.bf16.msra.mxu1 %v3504_v55  ;;  %v625_v49 = vand.u32 4294901760, %v624_v1  ;;  %v618_v42 = vsub.f32 %v7161_v38, %v6675_v5  ;;  %v6678_v32 = vand.u32 4294901760, %v7163_v23  ;;  %v7165_v55 = vld [vmem:[#allocation113_spill] sm:$0xff] }
  0xc5   :  { %v3888_v37 = vpack.c.bf16 %v2201_v3, %v2189_v11  ;;  %v2207_v15 = vand.u32 4294901760, %v2206_v21  ;;  %v2219_v20 = vand.u32 4294901760, %v2218_v24  ;;  %v630_v53 = vsub.f32 %v7162_v22, %v6677_v47  ;;  %v7166_v24 = vld [vmem:[#allocation114_spill] sm:$0xff] }
  0xc6   :  { %v6680_v26 = vand.u32 4294901760, %v7164_v9  ;;  %v3506_v18 = vpack.c.bf16 %v625_v49, %v613_v57  ;;  %v619_v0 = vand.u32 4294901760, %v618_v42  ;;  %v2212_v11 = vsub.f32 %v7163_v23, %v6678_v32  ;;  %v7168_v42 = vld [vmem:[#allocation117_spill] sm:$0xff] }
  0xc7   :  { %3889 = vmatpush1.bf16.msra.mxu0 %v3888_v37  ;;  %v6682_v3 = vand.u32 4294901760, %v7165_v55  ;;  %v3890_v1 = vpack.c.bf16 %v2219_v20, %v2207_v15  ;;  %v631_v5 = vand.u32 4294901760, %v630_v53  ;;  %v6684_v38 = vand.u32 4294901760, %v7166_v24  ;;  %v7167_v37 = vld [vmem:[#allocation115_spill] sm:$0xff] }
  0xc8   :  { %v2224_v21 = vsub.f32 %v7164_v9, %v6680_v26  ;;  %3507 = vmatprep.subr.bf16.mxu1 %v3506_v18  ;;  %v2213_v47 = vand.u32 4294901760, %v2212_v11  ;;  %v6686_v49 = vand.u32 4294901760, %v7167_v37  ;;  %v6689_v32 = vand.u32 4294901760, %v7168_v42  ;;  %v7169_v15 = vld [vmem:[#allocation119_spill] sm:$0xff] }
  0xc9   :  { %v636_v57 = vsub.f32 %v7165_v55, %v6682_v3  ;;  %3891 = vmatprep.subr.bf16.mxu0 %v3890_v1  ;;  %v3508_v23 = vpack.c.bf16 %v631_v5, %v619_v0  ;;  %v648_v53 = vsub.f32 %v7166_v24, %v6684_v38  ;;  %v6691_v26 = vand.u32 4294901760, %v7169_v15  ;;  %v7170_v3 = vld [vmem:[#allocation120_spill] sm:$0xff] }
  0xca   :  { %v2225_v20 = vand.u32 4294901760, %v2224_v21  ;;  %v2230_v18 = vsub.f32 %v7167_v37, %v6686_v49  ;;  %v2242_v11 = vsub.f32 %v7168_v42, %v6689_v32  ;;  %v6693_v55 = vand.u32 4294901760, %v7170_v3  ;;  %v7171_v21 = vld [vmem:[#allocation122_spill] sm:$0xff]  ;;  %v7172_v37 = vld [vmem:[#allocation123_spill] sm:$0xff] }
  0xcb   :  { %v637_v9 = vand.u32 4294901760, %v636_v57  ;;  %3509 = vmatpush1.bf16.msra.mxu1 %v3508_v23  ;;  %v649_v0 = vand.u32 4294901760, %v648_v53  ;;  %v642_v1 = vsub.f32 %v7169_v15, %v6691_v26  ;;  %v6694_v38 = vand.u32 4294901760, %v7171_v21  ;;  %v7173_v23 = vld [vmem:[#allocation125_spill] sm:$0xff] }
  0xcc   :  { %v3892_v5 = vpack.c.bf16 %v2225_v20, %v2213_v47  ;;  %v2231_v57 = vand.u32 4294901760, %v2230_v18  ;;  %v2243_v24 = vand.u32 4294901760, %v2242_v11  ;;  %v654_v49 = vsub.f32 %v7170_v3, %v6693_v55  ;;  %v7174_v11 = vld [vmem:[#allocation126_spill] sm:$0xff] }
  0xcd   :  { %v6696_v22 = vand.u32 4294901760, %v7172_v37  ;;  %v3510_v32 = vpack.c.bf16 %v649_v0, %v637_v9  ;;  %v643_v42 = vand.u32 4294901760, %v642_v1  ;;  %v2236_v47 = vsub.f32 %v7171_v21, %v6694_v38  ;;  %v7176_v1 = vld [vmem:[#allocation129_spill] sm:$0xff] }
  0xce   :  { %3893 = vmatpush1.bf16.msra.mxu0 %v3892_v5  ;;  %v6698_v20 = vand.u32 4294901760, %v7173_v23  ;;  %v3894_v53 = vpack.c.bf16 %v2243_v24, %v2231_v57  ;;  %v655_v26 = vand.u32 4294901760, %v654_v49  ;;  %v6700_v15 = vand.u32 4294901760, %v7174_v11  ;;  %v7175_v5 = vld [vmem:[#allocation127_spill] sm:$0xff] }
  0xcf   :  { %v2248_v18 = vsub.f32 %v7172_v37, %v6696_v22  ;;  %3511 = vmatprep.subr.bf16.mxu1 %v3510_v32  ;;  %v2237_v55 = vand.u32 4294901760, %v2236_v47  ;;  %v6703_v0 = vand.u32 4294901760, %v7175_v5  ;;  %v6705_v38 = vand.u32 4294901760, %v7176_v1  ;;  %v7177_v57 = vld [vmem:[#allocation131_spill] sm:$0xff] }
  0xd0   :  { %v660_v9 = vsub.f32 %v7173_v23, %v6698_v20  ;;  %3895 = vmatprep.subr.bf16.mxu0 %v3894_v53  ;;  %v3512_v21 = vpack.c.bf16 %v655_v26, %v643_v42  ;;  %v672_v49 = vsub.f32 %v7174_v11, %v6700_v15  ;;  %v6709_v22 = vand.u32 4294901760, %v7177_v57  ;;  %v7178_v20 = vld [vmem:[#allocation132_spill] sm:$0xff]  ;;  %v7179_v15 = vld [vmem:[#allocation134_spill] sm:$0xff] }
  0xd1   :  { %v2249_v24 = vand.u32 4294901760, %v2248_v18  ;;  %v2254_v32 = vsub.f32 %v7175_v5, %v6703_v0  ;;  %v2266_v47 = vsub.f32 %v7176_v1, %v6705_v38  ;;  %v6710_v23 = vand.u32 4294901760, %v7178_v20  ;;  %v45_v53 = vld [vmem:[#allocation2 + $0x28] sm:$0xff]  ;;  %v7180_v5 = vld [vmem:[#allocation135_spill] sm:$0xff]  ;;  %v47_v1 = vld [vmem:[#allocation2 + $0x38] sm:$0xff] }
  0xd2   :  { %v661_v37 = vand.u32 4294901760, %v660_v9  ;;  %3513 = vmatpush1.bf16.msra.mxu1 %v3512_v21  ;;  %v673_v42 = vand.u32 4294901760, %v672_v49  ;;  %v666_v18 = vsub.f32 %v7177_v57, %v6709_v22  ;;  %v6712_v9 = vand.u32 4294901760, %v7179_v15 }
  0xd3   :  { %v3896_v26 = vpack.c.bf16 %v2249_v24, %v2237_v55  ;;  %v2255_v11 = vand.u32 4294901760, %v2254_v32  ;;  %v2267_v3 = vand.u32 4294901760, %v2266_v47  ;;  %v678_v0 = vsub.f32 %v7178_v20, %v6710_v23  ;;  %v7182_v47 = vld [vmem:[#allocation137_spill] sm:$0xff] }
  0xd4   :  { %v6714_v38 = vand.u32 4294901760, %v7180_v5  ;;  %v3514_v30 = vpack.c.bf16 %v673_v42, %v661_v37  ;;  %v667_v21 = vand.u32 4294901760, %v666_v18  ;;  %v2260_v55 = vsub.f32 %v7179_v15, %v6712_v9  ;;  %v7184_v37 = vld [vmem:[#allocation138_spill] sm:$0xff]  ;;  %v44_v9 = vld [vmem:[#allocation2 + $0x20] sm:$0xff] }
  0xd5   :  { %3897 = vmatpush1.bf16.msra.mxu0 %v3896_v26  ;;  %v5271_v24 = vand.u32 4294901760, %v45_v53  ;;  %v3898_v49 = vpack.c.bf16 %v2267_v3, %v2255_v11  ;;  %v679_v22 = vand.u32 4294901760, %v678_v0  ;;  %v6717_v23 = vand.u32 4294901760, %v7182_v47  ;;  %v7186_v0 = vld [vmem:[#allocation139_spill] sm:$0xff] }
  0xd6   :  { %v2272_v32 = vsub.f32 %v7180_v5, %v6714_v38  ;;  %3515 = vmatprep.subr.bf16.mxu1 %v3514_v30  ;;  %v2261_v20 = vand.u32 4294901760, %v2260_v55  ;;  %v6719_v42 = vand.u32 4294901760, %v7184_v37  ;;  %v5281_v18 = vand.u32 4294901760, %v47_v1  ;;  %v7188_v5 = vld [vmem:[#allocation141_spill] sm:$0xff] }
  0xd7   :  { %7181 = vst [vmem:[#allocation204_spill] sm:$0xff] %v5271_v24  ;;  %v5278_v26 = vsub.f32 %v45_v53, %v5271_v24  ;;  %3899 = vmatprep.subr.bf16.mxu0 %v3898_v49  ;;  %v3516_v15 = vpack.c.bf16 %v679_v22, %v667_v21  ;;  %v684_v11 = vsub.f32 %v7182_v47, %v6717_v23  ;;  %v6720_v38 = vand.u32 4294901760, %v7186_v0 }
  0xd8   :  { %7185 = vst [vmem:[#allocation206_spill] sm:$0xff] %v5281_v18  ;;  %v2273_v3 = vand.u32 4294901760, %v2272_v32  ;;  %v696_v53 = vsub.f32 %v7184_v37, %v6719_v42  ;;  %v5292_v55 = vsub.f32 %v47_v1, %v5281_v18  ;;  %v6730_v57 = vand.u32 4294901760, %v7188_v5 }
  0xd9   :  { %7183 = vst [vmem:[#allocation205_spill] sm:$0xff] %v5278_v26  ;;  %v6727_v30 = vand.u32 4294901760, %v5278_v26  ;;  %3517 = vmatpush1.bf16.msra.mxu1 %v3516_v15  ;;  %v685_v21 = vand.u32 4294901760, %v684_v11  ;;  %v2278_v49 = vsub.f32 %v7186_v0, %v6720_v38  ;;  %v5298_v32 = vand.u32 4294901760, %v44_v9  ;;  %v46_v15 = vld [vmem:[#allocation2 + $0x30] sm:$0xff]  ;;  %v7191_v11 = vld [vmem:[#allocation143_spill] sm:$0xff] }
  0xda   :  { %7187 = vst [vmem:[#allocation207_spill] sm:$0xff] %v5292_v55  ;;  %v3900_v22 = vpack.c.bf16 %v2273_v3, %v2261_v20  ;;  %v697_v47 = vand.u32 4294901760, %v696_v53  ;;  %v6731_v42 = vand.u32 4294901760, %v5292_v55  ;;  %v2290_v1 = vsub.f32 %v7188_v5, %v6730_v57  ;;  %v7192_v0 = vld [vmem:[#allocation144_spill] sm:$0xff] }
  0xdb   :  { %7189 = vst [vmem:[#allocation208_spill] sm:$0xff] %v5298_v32  ;;  %v339_v23 = vsub.f32 %v5278_v26, %v6727_v30  ;;  %v2279_v20 = vand.u32 4294901760, %v2278_v49  ;;  %v5308_v3 = vsub.f32 %v44_v9, %v5298_v32  ;;  %v6735_v38 = vand.u32 4294901760, %v7191_v11  ;;  %v49_v57 = vld [vmem:[#allocation2 + $0x48] sm:$0xff] }
  0xdc   :  { %3901 = vmatpush1.bf16.msra.mxu0 %v3900_v22  ;;  %v6739_v37 = vand.u32 4294901760, %v7192_v0  ;;  %v3518_v35 = vpack.c.bf16 %v697_v47, %v685_v21  ;;  %v1933_v53 = vsub.f32 %v5292_v55, %v6731_v42  ;;  %v2291_v30 = vand.u32 4294901760, %v2290_v1  ;;  %v7194_v21 = vld [vmem:[#allocation146_spill] sm:$0xff]  ;;  %v7195_v1 = vld [vmem:[#allocation147_spill] sm:$0xff] }
  0xdd   :  { %7190 = vst [vmem:[#allocation209_spill] sm:$0xff] %v5308_v3  ;;  %v340_v18 = vand.u32 4294901760, %v339_v23  ;;  %v6740_v26 = vand.u32 4294901760, %v5308_v3  ;;  %v690_v22 = vsub.f32 %v7191_v11, %v6735_v38  ;;  %v5322_v49 = vand.u32 4294901760, %v46_v15 }
  0xde   :  { %v702_v9 = vsub.f32 %v7192_v0, %v6739_v37  ;;  %3519 = vmatprep.subr.bf16.mxu1 %v3518_v35  ;;  %v1934_v23 = vand.u32 4294901760, %v1933_v53  ;;  %v3902_v47 = vpack.c.bf16 %v2291_v30, %v2279_v20  ;;  %v6745_v42 = vand.u32 4294901760, %v7194_v21  ;;  %v7198_v20 = vld [vmem:[#allocation149_spill] sm:$0xff]  ;;  %v51_v37 = vld [vmem:[#allocation2 + $0x58] sm:$0xff] }
  0xdf   :  { %7193 = vst [vmem:[#allocation210_spill] sm:$0xff] %v5322_v49  ;;  %341 = vmatprep.mubr.f32.mxu1 %v340_v18  ;;  %v6744_v55 = vand.u32 4294901760, %v7195_v1  ;;  %v345_v5 = vsub.f32 %v5308_v3, %v6740_v26  ;;  %v691_v38 = vand.u32 4294901760, %v690_v22  ;;  %v5330_v32 = vsub.f32 %v46_v15, %v5322_v49  ;;  %v7199_v26 = vld [vmem:[#allocation150_spill] sm:$0xff] }
  0xe0   :  { %v703_v11 = vand.u32 4294901760, %v702_v9  ;;  %1935 = vmatprep.mubr.f32.mxu0 %v1934_v23  ;;  %3903 = vmatprep.subr.bf16.mxu0 %v3902_v47  ;;  %v2284_v35 = vsub.f32 %v7194_v21, %v6745_v42  ;;  %v5338_v30 = vand.u32 4294901760, %v49_v57  ;;  %v6748_v53 = vand.u32 4294901760, %v7198_v20 }
  0xe1   :  { %7196 = vst [vmem:[#allocation211_spill] sm:$0xff] %v5330_v32  ;;  %v2296_v18 = vsub.f32 %v7195_v1, %v6744_v55  ;;  %v346_v22 = vand.u32 4294901760, %v345_v5  ;;  %v6752_v15 = vand.u32 4294901760, %v5330_v32  ;;  %v6753_v23 = vand.u32 4294901760, %v7199_v26 }
  0xe2   :  { %7197 = vst [vmem:[#allocation212_spill] sm:$0xff] %v5338_v30  ;;  %v3520_v9 = vpack.c.bf16 %v703_v11, %v691_v38  ;;  %v2285_v47 = vand.u32 4294901760, %v2284_v35  ;;  %v5344_v0 = vsub.f32 %v49_v57, %v5338_v30  ;;  %v708_v55 = vsub.f32 %v7198_v20, %v6748_v53  ;;  %v7202_v11 = vld [vmem:[#allocation151_spill] sm:$0xff]  ;;  %v7203_v53 = vld [vmem:[#allocation153_spill] sm:$0xff] }
  0xe3   :  { %v2297_v3 = vand.u32 4294901760, %v2296_v18  ;;  %347 = vmatmul.mubr.f32.gmra.mrb[2].mxu1 %v346_v22  ;;  %v1939_v42 = vsub.f32 %v5330_v32, %v6752_v15  ;;  %v720_v38 = vsub.f32 %v7199_v26, %v6753_v23  ;;  %v5355_v5 = vand.u32 4294901760, %v51_v37  ;;  %v48_v18 = vld [vmem:[#allocation2 + $0x40] sm:$0xff] }
  0xe4   :  { %7200 = vst [vmem:[#allocation213_spill] sm:$0xff] %v5344_v0  ;;  %v6758_v35 = vand.u32 4294901760, %v7202_v11  ;;  %3521 = vmatpush1.bf16.msra.mxu1 %v3520_v9  ;;  %v6761_v1 = vand.u32 4294901760, %v5344_v0  ;;  %v709_v21 = vand.u32 4294901760, %v708_v55  ;;  %v6762_v22 = vand.u32 4294901760, %v7203_v53 }
  0xe5   :  { %7201 = vst [vmem:[#allocation214_spill] sm:$0xff] %v5355_v5  ;;  %v3904_v57 = vpack.c.bf16 %v2297_v3, %v2285_v47  ;;  %v1940_v49 = vand.u32 4294901760, %v1939_v42  ;;  %v721_v20 = vand.u32 4294901760, %v720_v38  ;;  %v5361_v15 = vsub.f32 %v51_v37, %v5355_v5  ;;  %v7206_v42 = vld [vmem:[#allocation155_spill] sm:$0xff]  ;;  %v50_v38 = vld [vmem:[#allocation2 + $0x50] sm:$0xff] }
  0xe6   :  { %v2302_v23 = vsub.f32 %v7202_v11, %v6758_v35  ;;  %v355_v9 = vsub.f32 %v5344_v0, %v6761_v1  ;;  %v2314_v55 = vsub.f32 %v7203_v53, %v6762_v22  ;;  %v5372_v3 = vand.u32 4294901760, %v48_v18  ;;  %v7207_v35 = vld [vmem:[#allocation156_spill] sm:$0xff] }
  0xe7   :  { %7204 = vst [vmem:[#allocation215_spill] sm:$0xff] %v5361_v15  ;;  %3905 = vmatpush1.bf16.msra.mxu0 %v3904_v57  ;;  %v6767_v47 = vand.u32 4294901760, %v7206_v42  ;;  %v3522_v37 = vpack.c.bf16 %v721_v20, %v709_v21  ;;  %v6770_v32 = vand.u32 4294901760, %v5361_v15  ;;  %v6771_v57 = vand.u32 4294901760, %v7207_v35 }
  0xe8   :  { %7205 = vst [vmem:[#allocation216_spill] sm:$0xff] %v5372_v3  ;;  %1941 = vmatmul.mubr.f32.gmra.mrb[2].mxu0 %v1940_v49  ;;  %v2303_v5 = vand.u32 4294901760, %v2302_v23  ;;  %v356_v11 = vand.u32 4294901760, %v355_v9  ;;  %v2315_v26 = vand.u32 4294901760, %v2314_v55  ;;  %v5378_v1 = vsub.f32 %v48_v18, %v5372_v3  ;;  %v7210_v23 = vld [vmem:[#allocation158_spill] sm:$0xff]  ;;  %v53_v55 = vld [vmem:[#allocation2 + $0x68] sm:$0xff] }
  0xe9   :  { %v714_v22 = vsub.f32 %v7206_v42, %v6767_v47  ;;  %3523 = vmatprep.subr.bf16.mxu1 %v3522_v37  ;;  %v1949_v49 = vsub.f32 %v5361_v15, %v6770_v32  ;;  %v726_v21 = vsub.f32 %v7207_v35, %v6771_v57  ;;  %v5389_v20 = vand.u32 4294901760, %v50_v38  ;;  %v7211_v47 = vld [vmem:[#allocation159_spill] sm:$0xff] }
  0xea   :  { %7208 = vst [vmem:[#allocation217_spill] sm:$0xff] %v5378_v1  ;;  %v6776_v9 = vand.u32 4294901760, %v7210_v23  ;;  %357 = vmatprep.mubr.f32.mxu1 %v356_v11  ;;  %v3906_v18 = vpack.c.bf16 %v2315_v26, %v2303_v5  ;;  %v6779_v0 = vand.u32 4294901760, %v5378_v1  ;;  %v6780_v37 = vand.u32 4294901760, %v7211_v47 }
  0xeb   :  { %7209 = vst [vmem:[#allocation218_spill] sm:$0xff] %v5389_v20  ;;  %v715_v3 = vand.u32 4294901760, %v714_v22  ;;  %v1950_v42 = vand.u32 4294901760, %v1949_v49  ;;  %v727_v53 = vand.u32 4294901760, %v726_v21  ;;  %v5395_v32 = vsub.f32 %v50_v38, %v5389_v20  ;;  %v7214_v22 = vld [vmem:[#allocation161_spill] sm:$0xff]  ;;  %v55_v21 = vld [vmem:[#allocation2 + $0x78] sm:$0xff] }
  0xec   :  { %v2308_v57 = vsub.f32 %v7210_v23, %v6776_v9  ;;  %3907 = vmatprep.subr.bf16.mxu0 %v3906_v18  ;;  %v361_v11 = vsub.f32 %v5378_v1, %v6779_v0  ;;  %v2320_v26 = vsub.f32 %v7211_v47, %v6780_v37  ;;  %v5406_v5 = vand.u32 4294901760, %v53_v55  ;;  %v7215_v9 = vld [vmem:[#allocation162_spill] sm:$0xff] }
  0xed   :  { %7212 = vst [vmem:[#allocation219_spill] sm:$0xff] %v5395_v32  ;;  %v6785_v49 = vand.u32 4294901760, %v7214_v22  ;;  %1951 = vmatprep.mubr.f32.mxu0 %v1950_v42  ;;  %v3524_v38 = vpack.c.bf16 %v727_v53, %v715_v3  ;;  %v6787_v15 = vand.u32 4294901760, %v5395_v32  ;;  %v6788_v18 = vand.u32 4294901760, %v7215_v9 }
  0xee   :  { %7213 = vst [vmem:[#allocation220_spill] sm:$0xff] %v5406_v5  ;;  %v2309_v20 = vand.u32 4294901760, %v2308_v57  ;;  %v362_v23 = vand.u32 4294901760, %v361_v11  ;;  %v2321_v35 = vand.u32 4294901760, %v2320_v26  ;;  %v5412_v0 = vsub.f32 %v53_v55, %v5406_v5  ;;  %v7218_v57 = vld [vmem:[#allocation163_spill] sm:$0xff] }
  0xef   :  { %v732_v37 = vsub.f32 %v7214_v22, %v6785_v49  ;;  %3525 = vmatpush1.bf16.msra.mxu1 %v3524_v38  ;;  %v1955_v42 = vsub.f32 %v5395_v32, %v6787_v15  ;;  %v744_v53 = vsub.f32 %v7215_v9, %v6788_v18  ;;  %v5423_v3 = vand.u32 4294901760, %v55_v21  ;;  %v52_v26 = vld [vmem:[#allocation2 + $0x60] sm:$0xff] }
  0xf0   :  { %7216 = vst [vmem:[#allocation221_spill] sm:$0xff] %v5412_v0  ;;  %v6793_v11 = vand.u32 4294901760, %v7218_v57  ;;  %363 = vmatmul.mubr.f32.gmra.mrb[4].mxu1 %v362_v23  ;;  %v3908_v55 = vpack.c.bf16 %v2321_v35, %v2309_v20  ;;  %v6796_v1 = vand.u32 4294901760, %v5412_v0  ;;  %v6797_v38 = vand.u32 4294901760, %v4813_v54 }
  0xf1   :  { %7217 = vst [vmem:[#allocation222_spill] sm:$0xff] %v5423_v3  ;;  %v733_v5 = vand.u32 4294901760, %v732_v37  ;;  %v1956_v49 = vand.u32 4294901760, %v1955_v42  ;;  %v745_v22 = vand.u32 4294901760, %v744_v53  ;;  %v5429_v15 = vsub.f32 %v55_v21, %v5423_v3  ;;  %v7221_v37 = vld [vmem:[#allocation167_spill] sm:$0xff]  ;;  %v54_v53 = vld [vmem:[#allocation2 + $0x70] sm:$0xff] }
  0xf2   :  { %v2326_v18 = vsub.f32 %v7218_v57, %v6793_v11  ;;  %3909 = vmatpush1.bf16.msra.mxu0 %v3908_v55  ;;  %v371_v23 = vsub.f32 %v5412_v0, %v6796_v1  ;;  %v2338_v35 = vsub.f32 %v4813_v54, %v6797_v38  ;;  %v5440_v20 = vand.u32 4294901760, %v52_v26  ;;  %v7222_v11 = vld [vmem:[#allocation168_spill] sm:$0xff] }
  0xf3   :  { %7219 = vst [vmem:[#allocation223_spill] sm:$0xff] %v5429_v15  ;;  %v6802_v42 = vand.u32 4294901760, %v7221_v37  ;;  %1957 = vmatmul.mubr.f32.gmra.mrb[4].mxu0 %v1956_v49  ;;  %v3526_v21 = vpack.c.bf16 %v745_v22, %v733_v5  ;;  %v6806_v32 = vand.u32 4294901760, %v5429_v15  ;;  %v6807_v55 = vand.u32 4294901760, %v7222_v11 }
  0xf4   :  { %7220 = vst [vmem:[#allocation224_spill] sm:$0xff] %v5440_v20  ;;  %v2327_v3 = vand.u32 4294901760, %v2326_v18  ;;  %v372_v57 = vand.u32 4294901760, %v371_v23  ;;  %v2339_v9 = vand.u32 4294901760, %v2338_v35  ;;  %v5446_v1 = vsub.f32 %v52_v26, %v5440_v20  ;;  %v7225_v18 = vld [vmem:[#allocation170_spill] sm:$0xff]  ;;  %v57_v35 = vld [vmem:[#allocation2 + $0x88] sm:$0xff] }
  0xf5   :  { %v738_v38 = vsub.f32 %v7221_v37, %v6802_v42  ;;  %3527 = vmatprep.subr.bf16.mxu1 %v3526_v21  ;;  %v1965_v49 = vsub.f32 %v5429_v15, %v6806_v32  ;;  %v750_v5 = vsub.f32 %v7222_v11, %v6807_v55  ;;  %v5457_v22 = vand.u32 4294901760, %v54_v53  ;;  %v7226_v42 = vld [vmem:[#allocation171_spill] sm:$0xff] }
  0xf6   :  { %7223 = vst [vmem:[#allocation225_spill] sm:$0xff] %v5446_v1  ;;  %v6812_v23 = vand.u32 4294901760, %v7225_v18  ;;  %373 = vmatprep.mubr.f32.mxu1 %v372_v57  ;;  %v3910_v26 = vpack.c.bf16 %v2339_v9, %v2327_v3  ;;  %v6815_v0 = vand.u32 4294901760, %v5446_v1  ;;  %v6816_v21 = vand.u32 4294901760, %v7226_v42 }
  0xf7   :  { %7224 = vst [vmem:[#allocation226_spill] sm:$0xff] %v5457_v22  ;;  %v739_v20 = vand.u32 4294901760, %v738_v38  ;;  %v1966_v37 = vand.u32 4294901760, %v1965_v49  ;;  %v751_v54 = vand.u32 4294901760, %v750_v5  ;;  %v5463_v32 = vsub.f32 %v54_v53, %v5457_v22  ;;  %v7229_v38 = vld [vmem:[#allocation173_spill] sm:$0xff]  ;;  %v59_v5 = vld [vmem:[#allocation2 + $0x98] sm:$0xff] }
  0xf8   :  { %v2332_v55 = vsub.f32 %v7225_v18, %v6812_v23  ;;  %3911 = vmatprep.subr.bf16.mxu0 %v3910_v26  ;;  %v377_v57 = vsub.f32 %v5446_v1, %v6815_v0  ;;  %v2344_v9 = vsub.f32 %v7226_v42, %v6816_v21  ;;  %v5474_v3 = vand.u32 4294901760, %v57_v35  ;;  %v7230_v23 = vld [vmem:[#allocation174_spill] sm:$0xff] }
  0xf9   :  { %7227 = vst [vmem:[#allocation227_spill] sm:$0xff] %v5463_v32  ;;  %v6821_v49 = vand.u32 4294901760, %v7229_v38  ;;  %1967 = vmatprep.mubr.f32.mxu0 %v1966_v37  ;;  %v3528_v53 = vpack.c.bf16 %v751_v54, %v739_v20  ;;  %v6823_v15 = vand.u32 4294901760, %v5463_v32  ;;  %v6824_v26 = vand.u32 4294901760, %v7230_v23 }
  0xfa   :  { %7228 = vst [vmem:[#allocation228_spill] sm:$0xff] %v5474_v3  ;;  %v2333_v22 = vand.u32 4294901760, %v2332_v55  ;;  %v378_v18 = vand.u32 4294901760, %v377_v57  ;;  %v2345_v11 = vand.u32 4294901760, %v2344_v9  ;;  %v5480_v0 = vsub.f32 %v57_v35, %v5474_v3  ;;  %v7233_v55 = vld [vmem:[#allocation175_spill] sm:$0xff] }
  0xfb   :  { %v756_v21 = vsub.f32 %v7229_v38, %v6821_v49  ;;  %3529 = vmatpush1.bf16.msra.mxu1 %v3528_v53  ;;  %v1971_v37 = vsub.f32 %v5463_v32, %v6823_v15  ;;  %v768_v54 = vsub.f32 %v7230_v23, %v6824_v26  ;;  %v5491_v20 = vand.u32 4294901760, %v59_v5  ;;  %v56_v9 = vld [vmem:[#allocation2 + $0x80] sm:$0xff] }
  0xfc   :  { %7231 = vst [vmem:[#allocation229_spill] sm:$0xff] %v5480_v0  ;;  %v6827_v57 = vand.u32 4294901760, %v7233_v55  ;;  %379 = vmatmul.mubr.f32.gmra.mrb[6].mxu1 %v378_v18  ;;  %v3912_v35 = vpack.c.bf16 %v2345_v11, %v2333_v22  ;;  %v6830_v1 = vand.u32 4294901760, %v5480_v0  ;;  %v6831_v53 = vand.u32 4294901760, %v4841_v60 }
  0xfd   :  { %7232 = vst [vmem:[#allocation230_spill] sm:$0xff] %v5491_v20  ;;  %v757_v3 = vand.u32 4294901760, %v756_v21  ;;  %v1972_v49 = vand.u32 4294901760, %v1971_v37  ;;  %v769_v38 = vand.u32 4294901760, %v768_v54  ;;  %v5497_v15 = vsub.f32 %v59_v5, %v5491_v20  ;;  %v58_v37 = vld [vmem:[#allocation2 + $0x90] sm:$0xff] }
  0xfe   :  { %v2350_v26 = vsub.f32 %v7233_v55, %v6827_v57  ;;  %3913 = vmatpush1.bf16.msra.mxu0 %v3912_v35  ;;  %v387_v18 = vsub.f32 %v5480_v0, %v6830_v1  ;;  %v2362_v11 = vsub.f32 %v4841_v60, %v6831_v53  ;;  %v5508_v22 = vand.u32 4294901760, %v56_v9 }
  0xff   :  { %7234 = vst [vmem:[#allocation231_spill] sm:$0xff] %v5497_v15  ;;  %v6834_v21 = vand.u32 4294901760, %v4845_v31  ;;  %1973 = vmatmul.mubr.f32.gmra.mrb[6].mxu0 %v1972_v49  ;;  %v3530_v5 = vpack.c.bf16 %v769_v38, %v757_v3  ;;  %v6837_v54 = vand.u32 4294901760, %v5497_v15  ;;  %v6838_v35 = vand.u32 4294901760, %v4847_v45 }
 0x100   :  { %7235 = vst [vmem:[#allocation232_spill] sm:$0xff] %v5508_v22  ;;  %v2351_v32 = vand.u32 4294901760, %v2350_v26  ;;  %v388_v57 = vand.u32 4294901760, %v387_v18  ;;  %v2363_v20 = vand.u32 4294901760, %v2362_v11  ;;  %v5514_v1 = vsub.f32 %v56_v9, %v5508_v22  ;;  %v61_v18 = vld [vmem:[#allocation2 + $0xa8] sm:$0xff] }
 0x101   :  { %v762_v53 = vsub.f32 %v4845_v31, %v6834_v21  ;;  %3531 = vmatprep.subr.bf16.mxu1 %v3530_v5  ;;  %v1981_v49 = vsub.f32 %v5497_v15, %v6837_v54  ;;  %v774_v3 = vsub.f32 %v4847_v45, %v6838_v35  ;;  %v5525_v38 = vand.u32 4294901760, %v58_v37 }
 0x102   :  { %7236 = vst [vmem:[#allocation233_spill] sm:$0xff] %v5514_v1  ;;  %v6843_v26 = vand.u32 4294901760, %v4851_v14  ;;  %389 = vmatprep.mubr.f32.mxu1 %v388_v57  ;;  %v3914_v9 = vpack.c.bf16 %v2363_v20, %v2351_v32  ;;  %v6848_v11 = vand.u32 4294901760, %v5514_v1  ;;  %v6849_v5 = vand.u32 4294901760, %v4853_v36 }
 0x103   :  { %7237 = vst [vmem:[#allocation234_spill] sm:$0xff] %v5525_v38  ;;  %v763_v0 = vand.u32 4294901760, %v762_v53  ;;  %v1982_v21 = vand.u32 4294901760, %v1981_v49  ;;  %v775_v22 = vand.u32 4294901760, %v774_v3  ;;  %v5531_v54 = vsub.f32 %v58_v37, %v5525_v38  ;;  %v7240_v53 = vld [vmem:[#allocation185_spill] sm:$0xff]  ;;  %v63_v3 = vld [vmem:[#allocation2 + $0xb8] sm:$0xff] }
 0x104   :  { %v2356_v35 = vsub.f32 %v4851_v14, %v6843_v26  ;;  %3915 = vmatprep.subr.bf16.mxu0 %v3914_v9  ;;  %v393_v57 = vsub.f32 %v5514_v1, %v6848_v11  ;;  %v2368_v32 = vsub.f32 %v4853_v36, %v6849_v5  ;;  %v5542_v20 = vand.u32 4294901760, %v61_v18  ;;  %v7241_v26 = vld [vmem:[#allocation186_spill] sm:$0xff] }
 0x105   :  { %7238 = vst [vmem:[#allocation235_spill] sm:$0xff] %v5531_v54  ;;  %v6854_v49 = vand.u32 4294901760, %v7240_v53  ;;  %1983 = vmatprep.mubr.f32.mxu0 %v1982_v21  ;;  %v3532_v37 = vpack.c.bf16 %v775_v22, %v763_v0  ;;  %v6856_v15 = vand.u32 4294901760, %v5531_v54  ;;  %v6857_v9 = vand.u32 4294901760, %v7241_v26 }
 0x106   :  { %7239 = vst [vmem:[#allocation236_spill] sm:$0xff] %v5542_v20  ;;  %v2357_v38 = vand.u32 4294901760, %v2356_v35  ;;  %v394_v14 = vand.u32 4294901760, %v393_v57  ;;  %v2369_v45 = vand.u32 4294901760, %v2368_v32  ;;  %v5548_v11 = vsub.f32 %v61_v18, %v5542_v20  ;;  %v7244_v35 = vld [vmem:[#allocation187_spill] sm:$0xff] }
 0x107   :  { %v780_v5 = vsub.f32 %v7240_v53, %v6854_v49  ;;  %3533 = vmatpush1.bf16.msra.mxu1 %v3532_v37  ;;  %v1987_v21 = vsub.f32 %v5531_v54, %v6856_v15  ;;  %v792_v0 = vsub.f32 %v7241_v26, %v6857_v9  ;;  %v5559_v22 = vand.u32 4294901760, %v63_v3  ;;  %v60_v32 = vld [vmem:[#allocation2 + $0xa0] sm:$0xff] }
 0x108   :  { %7242 = vst [vmem:[#allocation237_spill] sm:$0xff] %v5548_v11  ;;  %v6860_v57 = vand.u32 4294901760, %v7244_v35  ;;  %395 = vmatmul.mubr.f32.gmra.mrb[8].mxu1 %v394_v14  ;;  %v3916_v18 = vpack.c.bf16 %v2369_v45, %v2357_v38  ;;  %v6863_v1 = vand.u32 4294901760, %v5548_v11  ;;  %v6864_v37 = vand.u32 4294901760, %v4872_v59 }
 0x109   :  { %7243 = vst [vmem:[#allocation238_spill] sm:$0xff] %v5559_v22  ;;  %v781_v20 = vand.u32 4294901760, %v780_v5  ;;  %v1988_v49 = vand.u32 4294901760, %v1987_v21  ;;  %v793_v53 = vand.u32 4294901760, %v792_v0  ;;  %v5565_v15 = vsub.f32 %v63_v3, %v5559_v22  ;;  %v62_v21 = vld [vmem:[#allocation2 + $0xb0] sm:$0xff] }
 0x10a   :  { %v2374_v9 = vsub.f32 %v7244_v35, %v6860_v57  ;;  %3917 = vmatpush1.bf16.msra.mxu0 %v3916_v18  ;;  %v403_v14 = vsub.f32 %v5548_v11, %v6863_v1  ;;  %v2386_v45 = vsub.f32 %v4872_v59, %v6864_v37  ;;  %v5576_v38 = vand.u32 4294901760, %v60_v32 }
 0x10b   :  { %7245 = vst [vmem:[#allocation239_spill] sm:$0xff] %v5565_v15  ;;  %v6865_v5 = vand.u32 4294901760, %v4876_v28  ;;  %1989 = vmatmul.mubr.f32.gmra.mrb[8].mxu0 %v1988_v49  ;;  %v3534_v3 = vpack.c.bf16 %v793_v53, %v781_v20  ;;  %v6871_v0 = vand.u32 4294901760, %v5565_v15  ;;  %v6870_v18 = vand.u32 4294901760, %v4878_v2 }
 0x10c   :  { %7246 = vst [vmem:[#allocation240_spill] sm:$0xff] %v5576_v38  ;;  %v2375_v54 = vand.u32 4294901760, %v2374_v9  ;;  %v404_v57 = vand.u32 4294901760, %v403_v14  ;;  %v2387_v22 = vand.u32 4294901760, %v2386_v45  ;;  %v5582_v1 = vsub.f32 %v60_v32, %v5576_v38 }
 0x10d   :  { %v786_v37 = vsub.f32 %v4876_v28, %v6865_v5  ;;  %3535 = vmatprep.subr.bf16.mxu1 %v3534_v3  ;;  %v1997_v49 = vsub.f32 %v5565_v15, %v6871_v0  ;;  %v798_v20 = vsub.f32 %v4878_v2, %v6870_v18  ;;  %v5593_v53 = vand.u32 4294901760, %v62_v21 }
 0x10e   :  { %7247 = vst [vmem:[#allocation241_spill] sm:$0xff] %v5582_v1  ;;  %v6872_v9 = vand.u32 4294901760, %v4882_v29  ;;  %405 = vmatprep.mubr.f32.mxu1 %v404_v57  ;;  %v3918_v32 = vpack.c.bf16 %v2387_v22, %v2375_v54  ;;  %v6873_v14 = vand.u32 4294901760, %v5582_v1  ;;  %v6876_v5 = vand.u32 4294901760, %v4884_v8 }
 0x10f   :  { %7248 = vst [vmem:[#allocation242_spill] sm:$0xff] %v5593_v53  ;;  %v787_v45 = vand.u32 4294901760, %v786_v37  ;;  %v1998_v3 = vand.u32 4294901760, %v1997_v49  ;;  %v799_v11 = vand.u32 4294901760, %v798_v20  ;;  %v5599_v38 = vsub.f32 %v62_v21, %v5593_v53 }
 0x110   :  { %v2380_v18 = vsub.f32 %v4882_v29, %v6872_v9  ;;  %3919 = vmatprep.subr.bf16.mxu0 %v3918_v32  ;;  %v409_v57 = vsub.f32 %v5582_v1, %v6873_v14  ;;  %v2392_v54 = vsub.f32 %v4884_v8, %v6876_v5  ;;  %v3538_v22 = vpack.c.bf16 %v4442_v17, %v4440_v16  ;;  %v7249_v9 = vld [vmem:[#allocation13_spill] sm:$0xff]  ;;  %v7250_v14 = vld [vmem:[#allocation15_spill] sm:$0xff]  ;;  %v7251_v17 = vld [vmem:[#allocation188_spill] sm:$0xff] }
 0x111   :  { %1999 = vmatprep.mubr.f32.mxu0 %v1998_v3  ;;  %v3536_v37 = vpack.c.bf16 %v799_v11, %v787_v45  ;;  %v6880_v21 = vand.u32 4294901760, %v5599_v38  ;;  %v3922_v1 = vpack.c.bf16 %v7250_v14, %v7249_v9  ;;  %v3540_v11 = vpack.c.bf16 %v4455_v27, %v4452_v25  ;;  %v7252_v45 = vld [vmem:[#allocation198_spill] sm:$0xff]  ;;  %v7253_v3 = vld [vmem:[#allocation199_spill] sm:$0xff] }
 0x112   :  { %v2381_v49 = vand.u32 4294901760, %v2380_v18  ;;  %v410_v20 = vand.u32 4294901760, %v409_v57  ;;  %v2393_v0 = vand.u32 4294901760, %v2392_v54  ;;  %v3542_v18 = vpack.c.bf16 %v4469_v46, %v4465_v41 }
 0x113   :  { %3537 = vmatpush1.bf16.msra.mxu1 %v3536_v37  ;;  %v2003_v32 = vsub.f32 %v5599_v38, %v6880_v21  ;;  %v3926_v57 = vpack.c.bf16 %v4476_v50, %v4473_v48  ;;  %v3544_v54 = vpack.c.bf16 %v4484_v61, %v4478_v52  ;;  %v3932_v37 = vpack.c.bf16 %v4518_v44, %v4516_v43  ;;  %v7258_v21 = vld [vmem:[#allocation54_spill] sm:$0xff]  ;;  %v7281_v44 = vld [vmem:[#allocation220_spill] sm:$0xff]  ;;  %v7282_v43 = vld [vmem:[#allocation185_spill] sm:$0xff] }
 0x114   :  { %411 = vmatmul.mubr.f32.gmra.mrb[10].mxu1 %v410_v20  ;;  %v3920_v5 = vpack.c.bf16 %v2393_v0, %v2381_v49  ;;  %3539 = vmatprep.subr.bf16.mxu1 %v3538_v22  ;;  %v3924_v0 = vpack.c.bf16 %v4463_v40, %v4461_v39  ;;  %v3548_v22 = vpack.c.bf16 %v4512_v34, %v4510_v33  ;;  %v7275_v34 = vld [vmem:[#allocation170_spill] sm:$0xff]  ;;  %v7298_v61 = vld [vmem:[#allocation72_spill] sm:$0xff] }
 0x115   :  { %v2004_v15 = vand.u32 4294901760, %v2003_v32  ;;  %802 = vmatprep.mubr.f32.mxu1 %v7251_v17  ;;  %v3550_v49 = vpack.c.bf16 %v4526_v56, %v4522_v51  ;;  %v3934_v20 = vpack.c.bf16 %v4533_v63, %v4530_v58  ;;  %v7254_v32 = vld [vmem:[#allocation48_spill] sm:$0xff]  ;;  %v7262_v17 = vld [vmem:[#allocation150_spill] sm:$0xff]  ;;  %v7264_v58 = vld [vmem:[#allocation153_spill] sm:$0xff] }
 0x116   :  { %3921 = vmatpush1.bf16.msra.mxu0 %v3920_v5  ;;  %v3546_v5 = vpack.c.bf16 %v4497_v10, %v4494_v6  ;;  %v7272_v56 = vld [vmem:[#allocation210_spill] sm:$0xff]  ;;  %v7273_v63 = vld [vmem:[#allocation167_spill] sm:$0xff]  ;;  %v7274_v51 = vld [vmem:[#allocation168_spill] sm:$0xff] }
 0x117   :  { %2005 = vmatmul.mubr.f32.gmra.mrb[10].mxu0 %v2004_v15  ;;  %3923 = vmatprep.subr.bf16.mxu0 %v3922_v1  ;;  %v3928_v1 = vpack.c.bf16 %v4490_v4, %v4486_v62  ;;  %v3930_v15 = vpack.c.bf16 %v4503_v13, %v4501_v12  ;;  %v7277_v33 = vld [vmem:[#allocation214_spill] sm:$0xff]  ;;  %v7285_v4 = vld [vmem:[#allocation59_spill] sm:$0xff]  ;;  %v7286_v62 = vld [vmem:[#allocation60_spill] sm:$0xff] }
 0x118   :  { %2396 = vmatprep.mubr.f32.mxu0 %v7252_v45  ;;  %804 = vmatmul.mubr.f32.vlgmr.msra.gmra.mrb[0].mxu1 %v7253_v3  ;;  %v7260_v3 = vld [vmem:[#allocation208_spill] sm:$0xff]  ;;  %v7261_v45 = vld [vmem:[#allocation149_spill] sm:$0xff]  ;;  %v3556_v13 = vpack.c.bf16 %v7286_v62, %v7285_v4  ;;  %v7288_v12 = vld [vmem:[#allocation66_spill] sm:$0xff] }
 0x119   :  { %3541 = vmatpush1.bf16.msra.mxu1 %v3540_v11  ;;  %810 = vmatprep.mubr.f32.mxu1 %v5271_v24  ;;  %v3552_v11 = vpack.c.bf16 %v7254_v32, %v4536_v19  ;;  %v7263_v24 = vld [vmem:[#allocation151_spill] sm:$0xff]  ;;  %v7266_v19 = vld [vmem:[#allocation156_spill] sm:$0xff]  ;;  %v7289_v6 = vld [vmem:[#allocation218_spill] sm:$0xff] }
 0x11a   :  { %3543 = vmatprep.subr.bf16.mxu1 %v3542_v18  ;;  %v7255_v18 = vld [vmem:[#allocation50_spill] sm:$0xff]  ;;  %v7265_v32 = vld [vmem:[#allocation155_spill] sm:$0xff] }
 0x11b   :  { %2398 = vmatmul.mubr.f32.vlgmr.msra.gmra.mrb[0].mxu0 %v4937_v7  ;;  %v7259_v7 = vld [vmem:[#allocation206_spill] sm:$0xff]  ;;  %v7295_v62 = vld [vmem:[#allocation67_spill] sm:$0xff] }
 0x11c   :  { %3925 = vmatpush1.bf16.msra.mxu0 %v3924_v0  ;;  %v7256_v0 = vld [vmem:[#allocation51_spill] sm:$0xff]  ;;  %2404 = vmatprep.mubr.f32.mxu0 %v7259_v7  ;;  %v7268_v7 = vld [vmem:[#allocation161_spill] sm:$0xff]  ;;  %v7301_v52 = vld [vmem:[#allocation226_spill] sm:$0xff] }
 0x11d   :  { %3927 = vmatprep.subr.bf16.mxu0 %v3926_v57  ;;  %3545 = vmatpush1.bf16.msra.mxu1 %v3544_v54  ;;  %v3936_v57 = vpack.c.bf16 %v7256_v0, %v7255_v18  ;;  %v7257_v54 = vld [vmem:[#allocation53_spill] sm:$0xff]  ;;  %v7267_v0 = vld [vmem:[#allocation158_spill] sm:$0xff]  ;;  %v7278_v18 = vld [vmem:[#allocation216_spill] sm:$0xff] }
 0x11e   :  { %3547 = vmatprep.subr.bf16.mxu1 %v3546_v5  ;;  %v3554_v5 = vpack.c.bf16 %v7258_v21, %v7257_v54  ;;  %812 = vmatmul.mubr.f32.gmra.mrb[2].mxu1 %v7260_v3  ;;  %v7269_v21 = vld [vmem:[#allocation162_spill] sm:$0xff]  ;;  %v7271_v54 = vld [vmem:[#allocation165_spill] sm:$0xff]  ;;  %v7283_v3 = vld [vmem:[#allocation55_spill] sm:$0xff] }
 0x11f   :  { %818 = vmatprep.mubr.f32.mxu1 %v5338_v30  ;;  %2406 = vmatmul.mubr.f32.gmra.mrb[2].mxu0 %v7272_v56  ;;  %v7280_v56 = vld [vmem:[#allocation182_spill] sm:$0xff]  ;;  %v7297_v4 = vld [vmem:[#allocation71_spill] sm:$0xff] }
 0x120   :  { %3929 = vmatpush1.bf16.msra.mxu0 %v3928_v1  ;;  %v7270_v1 = vld [vmem:[#allocation163_spill] sm:$0xff]  ;;  %2412 = vmatprep.mubr.f32.mxu0 %v7277_v33  ;;  %v7284_v33 = vld [vmem:[#allocation57_spill] sm:$0xff] }
 0x121   :  { %3931 = vmatprep.subr.bf16.mxu0 %v3930_v15  ;;  %3549 = vmatpush1.bf16.msra.mxu1 %v3548_v22  ;;  %v7276_v15 = vld [vmem:[#allocation173_spill] sm:$0xff]  ;;  %v3938_v30 = vpack.c.bf16 %v7284_v33, %v7283_v3  ;;  %v7290_v22 = vld [vmem:[#allocation222_spill] sm:$0xff]  ;;  %v7294_v3 = vld [vmem:[#allocation228_spill] sm:$0xff] }
 0x122   :  { %3551 = vmatprep.subr.bf16.mxu1 %v3550_v49  ;;  %820 = vmatmul.mubr.f32.gmra.mrb[4].mxu1 %v7278_v18  ;;  %v7279_v49 = vld [vmem:[#allocation180_spill] sm:$0xff] }
 0x123   :  { %826 = vmatprep.mubr.f32.mxu1 %v7281_v44  ;;  %v7287_v44 = vld [vmem:[#allocation65_spill] sm:$0xff]  ;;  %2414 = vmatmul.mubr.f32.gmra.mrb[4].mxu0 %v7289_v6  ;;  %v7291_v18 = vld [vmem:[#allocation224_spill] sm:$0xff] }
 0x124   :  { %3933 = vmatpush1.bf16.msra.mxu0 %v3932_v37  ;;  %v3558_v10 = vpack.c.bf16 %v7288_v12, %v7287_v44  ;;  %2420 = vmatprep.mubr.f32.mxu0 %v7290_v22  ;;  %v7296_v37 = vld [vmem:[#allocation69_spill] sm:$0xff]  ;;  %v3560_v12 = vpack.c.bf16 %v7298_v61, %v7297_v4  ;;  %v7300_v44 = vld [vmem:[#allocation78_spill] sm:$0xff]  ;;  %v7309_v4 = vld [vmem:[#allocation83_spill] sm:$0xff] }
 0x125   :  { %3935 = vmatprep.subr.bf16.mxu0 %v3934_v20  ;;  %3553 = vmatpush1.bf16.msra.mxu1 %v3552_v11  ;;  %v7292_v20 = vld [vmem:[#allocation62_spill] sm:$0xff]  ;;  %v7293_v11 = vld [vmem:[#allocation63_spill] sm:$0xff]  ;;  %v7299_v6 = vld [vmem:[#allocation77_spill] sm:$0xff] }
 0x126   :  { %3555 = vmatprep.subr.bf16.mxu1 %v3554_v5  ;;  %828 = vmatmul.mubr.f32.gmra.mrb[6].mxu1 %v7291_v18  ;;  %v3940_v33 = vpack.c.bf16 %v7293_v11, %v7292_v20  ;;  %v3942_v5 = vpack.c.bf16 %v7296_v37, %v7295_v62  ;;  %v3562_v22 = vpack.c.bf16 %v7300_v44, %v7299_v6  ;;  %v7303_v18 = vld [vmem:[#allocation232_spill] sm:$0xff]  ;;  %v7307_v37 = vld [vmem:[#allocation79_spill] sm:$0xff]  ;;  %v7308_v61 = vld [vmem:[#allocation81_spill] sm:$0xff] }
 0x127   :  { %834 = vmatprep.mubr.f32.mxu1 %v7294_v3  ;;  %2422 = vmatmul.mubr.f32.gmra.mrb[6].mxu0 %v7301_v52  ;;  %v7304_v3 = vld [vmem:[#allocation74_spill] sm:$0xff]  ;;  %v7306_v11 = vld [vmem:[#allocation236_spill] sm:$0xff]  ;;  %v7311_v52 = vld [vmem:[#allocation89_spill] sm:$0xff] }
 0x128   :  { %3937 = vmatpush1.bf16.msra.mxu0 %v3936_v57  ;;  %v7302_v57 = vld [vmem:[#allocation230_spill] sm:$0xff]  ;;  %v7310_v62 = vld [vmem:[#allocation84_spill] sm:$0xff] }
 0x129   :  { %3939 = vmatprep.subr.bf16.mxu0 %v3938_v30  ;;  %3557 = vmatpush1.bf16.msra.mxu1 %v3556_v13  ;;  %v7305_v30 = vld [vmem:[#allocation75_spill] sm:$0xff]  ;;  %v3564_v44 = vpack.c.bf16 %v7310_v62, %v7309_v4  ;;  %v7312_v6 = vld [vmem:[#allocation90_spill] sm:$0xff]  ;;  %v7320_v62 = vld [vmem:[#allocation93_spill] sm:$0xff] }
 0x12a   :  { %3559 = vmatprep.subr.bf16.mxu1 %v3558_v10  ;;  %2428 = vmatprep.mubr.f32.mxu0 %v7302_v57  ;;  %v3944_v13 = vpack.c.bf16 %v7305_v30, %v7304_v3  ;;  %v3946_v10 = vpack.c.bf16 %v7308_v61, %v7307_v37  ;;  %v3566_v57 = vpack.c.bf16 %v7312_v6, %v7311_v52  ;;  %v7313_v20 = vld [vmem:[#allocation234_spill] sm:$0xff]  ;;  %v7318_v30 = vld [vmem:[#allocation197_spill] sm:$0xff]  ;;  %v7319_v61 = vld [vmem:[#allocation91_spill] sm:$0xff] }
 0x12b   :  { %836 = vmatmul.mubr.f32.gmra.mrb[8].mxu1 %v7303_v18  ;;  %2430 = vmatmul.mubr.f32.gmra.mrb[8].mxu0 %v7313_v20  ;;  %v7315_v18 = vld [vmem:[#allocation240_spill] sm:$0xff]  ;;  %v7321_v4 = vld [vmem:[#allocation95_spill] sm:$0xff]  ;;  %v7323_v20 = vld [vmem:[#allocation101_spill] sm:$0xff] }
 0x12c   :  { %3941 = vmatpush1.bf16.msra.mxu0 %v3940_v33  ;;  %842 = vmatprep.mubr.f32.mxu1 %v7306_v11  ;;  %v7314_v33 = vld [vmem:[#allocation238_spill] sm:$0xff]  ;;  %v7322_v37 = vld [vmem:[#allocation96_spill] sm:$0xff] }
 0x12d   :  { %3943 = vmatprep.subr.bf16.mxu0 %v3942_v5  ;;  %3561 = vmatpush1.bf16.msra.mxu1 %v3560_v12  ;;  %v7316_v11 = vld [vmem:[#allocation86_spill] sm:$0xff]  ;;  %v7317_v5 = vld [vmem:[#allocation87_spill] sm:$0xff]  ;;  %v3568_v6 = vpack.c.bf16 %v7322_v37, %v7321_v4  ;;  %v7331_v3 = vld [vmem:[#allocation108_spill] sm:$0xff] }
 0x12e   :  { %3563 = vmatprep.subr.bf16.mxu1 %v3562_v22  ;;  %2436 = vmatprep.mubr.f32.mxu0 %v7314_v33  ;;  %v3948_v12 = vpack.c.bf16 %v7317_v5, %v7316_v11  ;;  %v3950_v22 = vpack.c.bf16 %v7320_v62, %v7319_v61  ;;  %v7324_v52 = vld [vmem:[#allocation102_spill] sm:$0xff]  ;;  %v7327_v5 = vld [vmem:[#allocation99_spill] sm:$0xff] }
 0x12f   :  { %844 = vmatmul.mubr.f32.gmra.mrb[10].mxu1 %v7315_v18  ;;  %v3570_v33 = vpack.c.bf16 %v7324_v52, %v7323_v20  ;;  %2438 = vmatmul.mubr.f32.gmra.mrb[10].mxu0 %v5593_v53  ;;  %v7326_v18 = vld [vmem:[#allocation98_spill] sm:$0xff]  ;;  %v7330_v61 = vld [vmem:[#allocation107_spill] sm:$0xff] }
 0x130   :  { %3945 = vmatpush1.bf16.msra.mxu0 %v3944_v13  ;;  %1044 = vmatprep.mubr.f32.mxu1 %v7318_v30  ;;  %v7325_v13 = vld [vmem:[#allocation200_spill] sm:$0xff]  ;;  %v3952_v11 = vpack.c.bf16 %v7327_v5, %v7326_v18  ;;  %v3572_v37 = vpack.c.bf16 %v7331_v3, %v7330_v61  ;;  %v7333_v4 = vld [vmem:[#allocation114_spill] sm:$0xff]  ;;  %v7335_v20 = vld [vmem:[#allocation111_spill] sm:$0xff] }
 0x131   :  { %3947 = vmatprep.subr.bf16.mxu0 %v3946_v10  ;;  %3565 = vmatpush1.bf16.msra.mxu1 %v3564_v44  ;;  %v7328_v44 = vld [vmem:[#allocation103_spill] sm:$0xff]  ;;  %v7329_v10 = vld [vmem:[#allocation105_spill] sm:$0xff]  ;;  %v7334_v53 = vld [vmem:[#allocation110_spill] sm:$0xff] }
 0x132   :  { %3567 = vmatprep.subr.bf16.mxu1 %v3566_v57  ;;  %2638 = vmatprep.mubr.f32.mxu0 %v7325_v13  ;;  %v3954_v62 = vpack.c.bf16 %v7329_v10, %v7328_v44  ;;  %v7332_v57 = vld [vmem:[#allocation113_spill] sm:$0xff]  ;;  %v3956_v50 = vpack.c.bf16 %v7335_v20, %v7334_v53  ;;  %v7339_v18 = vld [vmem:[#allocation120_spill] sm:$0xff]  ;;  %v7341_v44 = vld [vmem:[#allocation126_spill] sm:$0xff] }
 0x133   :  { %v3574_v52 = vpack.c.bf16 %v7333_v4, %v7332_v57  ;;  %v7337_v5 = vld [vmem:[#allocation117_spill] sm:$0xff]  ;;  %v7343_v61 = vld [vmem:[#allocation123_spill] sm:$0xff]  ;;  %v7347_v53 = vld [vmem:[#allocation132_spill] sm:$0xff] }
 0x134   :  { %3949 = vmatpush1.bf16.msra.mxu0 %v3948_v12  ;;  %v7336_v12 = vld [vmem:[#allocation115_spill] sm:$0xff]  ;;  %v7340_v10 = vld [vmem:[#allocation125_spill] sm:$0xff] }
 0x135   :  { %3951 = vmatprep.subr.bf16.mxu0 %v3950_v22  ;;  %3569 = vmatpush1.bf16.msra.mxu1 %v3568_v6  ;;  %v3958_v22 = vpack.c.bf16 %v7337_v5, %v7336_v12  ;;  %v7338_v6 = vld [vmem:[#allocation119_spill] sm:$0xff]  ;;  %v3578_v3 = vpack.c.bf16 %v7341_v44, %v7340_v10  ;;  %v7345_v20 = vld [vmem:[#allocation129_spill] sm:$0xff]  ;;  %v7349_v12 = vld [vmem:[#allocation138_spill] sm:$0xff] }
 0x136   :  { %3571 = vmatprep.subr.bf16.mxu1 %v3570_v33  ;;  %v3576_v48 = vpack.c.bf16 %v7339_v18, %v7338_v6  ;;  %v7342_v33 = vld [vmem:[#allocation122_spill] sm:$0xff]  ;;  %v7348_v5 = vld [vmem:[#allocation137_spill] sm:$0xff]  ;;  %v7351_v6 = vld [vmem:[#allocation135_spill] sm:$0xff] }
 0x137   :  { %v3960_v4 = vpack.c.bf16 %v7343_v61, %v7342_v33  ;;  %v3582_v18 = vpack.c.bf16 %v7349_v12, %v7348_v5  ;;  %v7353_v61 = vld [vmem:[#allocation141_spill] sm:$0xff]  ;;  %v7355_v33 = vld [vmem:[#allocation144_spill] sm:$0xff] }
 0x138   :  { %3953 = vmatpush1.bf16.msra.mxu0 %v3952_v11  ;;  %v7344_v11 = vld [vmem:[#allocation127_spill] sm:$0xff] }
 0x139   :  { %3955 = vmatprep.subr.bf16.mxu0 %v3954_v62  ;;  %3573 = vmatpush1.bf16.msra.mxu1 %v3572_v37  ;;  %v3962_v62 = vpack.c.bf16 %v7345_v20, %v7344_v11  ;;  %v7346_v37 = vld [vmem:[#allocation131_spill] sm:$0xff]  ;;  %v7356_v20 = vld [vmem:[#allocation146_spill] sm:$0xff] }
 0x13a   :  { %3575 = vmatprep.subr.bf16.mxu1 %v3574_v52  ;;  %v3580_v57 = vpack.c.bf16 %v7347_v53, %v7346_v37  ;;  %v7350_v52 = vld [vmem:[#allocation134_spill] sm:$0xff]  ;;  %v7357_v53 = vld [vmem:[#allocation147_spill] sm:$0xff] }
 0x13b   :  { %v3964_v44 = vpack.c.bf16 %v7351_v6, %v7350_v52 }
 0x13c   :  { %3957 = vmatpush1.bf16.msra.mxu0 %v3956_v50  ;;  %v7352_v50 = vld [vmem:[#allocation139_spill] sm:$0xff] }
 0x13d   :  { %3959 = vmatprep.subr.bf16.mxu0 %v3958_v22  ;;  %3577 = vmatpush1.bf16.msra.mxu1 %v3576_v48  ;;  %v3966_v22 = vpack.c.bf16 %v7353_v61, %v7352_v50  ;;  %v7354_v48 = vld [vmem:[#allocation143_spill] sm:$0xff] }
 0x13e   :  { %3579 = vmatprep.subr.bf16.mxu1 %v3578_v3  ;;  %v3584_v10 = vpack.c.bf16 %v7355_v33, %v7354_v48  ;;  %v3968_v3 = vpack.c.bf16 %v7357_v53, %v7356_v20 }
 0x140   :  { %3961 = vmatpush1.bf16.msra.mxu0 %v3960_v4  ;;  %v7358_v4 = vpack.c.bf16 %v7262_v17, %v7261_v45 }
 0x141   :  { %3963 = vmatprep.subr.bf16.mxu0 %v3962_v62  ;;  %3581 = vmatpush1.bf16.msra.mxu1 %v3580_v57  ;;  %v7359_v57 = vpack.c.bf16 %v7264_v58, %v7263_v24  ;;  %v7360_v62 = vpack.c.bf16 %v7266_v19, %v7265_v32 }
 0x142   :  { %3583 = vmatprep.subr.bf16.mxu1 %v3582_v18  ;;  %v7361_v18 = vpack.c.bf16 %v7269_v21, %v7268_v7 }
 0x144   :  { %3965 = vmatpush1.bf16.msra.mxu0 %v3964_v44  ;;  %v7362_v44 = vpack.c.bf16 %v7211_v47, %v7267_v0  ;;  %v7428_v47 = vld [vmem:[#allocation100_spill] sm:$0xff] }
 0x145   :  { %3967 = vmatprep.subr.bf16.mxu0 %v3966_v22  ;;  %3585 = vmatpush1.bf16.msra.mxu1 %v3584_v10  ;;  %v7363_v10 = vpack.c.bf16 %v7271_v54, %v7270_v1  ;;  %v7364_v22 = vpack.c.bf16 %v7274_v51, %v7273_v63  ;;  %v7417_v51 = vld [vmem:[#allocation76_spill] sm:$0xff]  ;;  %v7421_v63 = vand.u32 4294901760, %v7325_v13  ;;  %v7423_v54 = vld [vmem:[#allocation82_spill] sm:$0xff] }
 0x146   :  { %3587 = vmatprep.subr.bf16.mxu1 %v7358_v4  ;;  %v7366_v4 = vpack.c.bf16 %v7226_v42, %v7275_v34  ;;  %v7409_v42 = vld [vmem:[#allocation64_spill] sm:$0xff]  ;;  %v7413_v34 = vld [vmem:[#allocation61_spill] sm:$0xff]  ;;  %v7427_v1 = vld [vmem:[#allocation94_spill] sm:$0xff] }
 0x147   :  { %v7431_v13 = vld [vmem:[#allocation106_spill] sm:$0xff] }
 0x148   :  { %3969 = vmatpush1.bf16.msra.mxu0 %v3968_v3  ;;  %v7365_v3 = vpack.c.bf16 %v7230_v23, %v7276_v15  ;;  %v7414_v23 = vld [vmem:[#allocation239_spill] sm:$0xff]  ;;  %v7415_v15 = vld [vmem:[#allocation68_spill] sm:$0xff] }
 0x149   :  { %3971 = vmatprep.subr.bf16.mxu0 %v7359_v57  ;;  %3589 = vmatpush1.bf16.msra.mxu1 %v7360_v62  ;;  %v7367_v57 = vpack.c.bf16 %v4841_v60, %v7233_v55  ;;  %v7368_v62 = vpack.c.bf16 %v7279_v49, %v4845_v31  ;;  %v7401_v49 = vld [vmem:[#allocation52_spill] sm:$0xff]  ;;  %v7405_v31 = vld [vmem:[#allocation49_spill] sm:$0xff]  ;;  %v7406_v60 = vld [vmem:[#allocation231_spill] sm:$0xff] }
 0x14a   :  { %3591 = vmatprep.subr.bf16.mxu1 %v7361_v18  ;;  %v7369_v18 = vpack.c.bf16 %v7241_v26, %v7282_v43  ;;  %v7398_v26 = vld [vmem:[#allocation223_spill] sm:$0xff]  ;;  %v7407_v55 = vld [vmem:[#allocation56_spill] sm:$0xff] }
 0x14b   :  { %v7399_v43 = vld [vmem:[#allocation43_spill] sm:$0xff] }
 0x14c   :  { %3973 = vmatpush1.bf16.msra.mxu0 %v7362_v44  ;;  %v7370_v44 = vpack.c.bf16 %v4853_v36, %v7280_v56  ;;  %v7393_v36 = vld [vmem:[#allocation40_spill] sm:$0xff]  ;;  %v7397_v56 = vld [vmem:[#allocation37_spill] sm:$0xff] }
 0x14d   :  { %3975 = vmatprep.subr.bf16.mxu0 %v7363_v10  ;;  %3593 = vmatpush1.bf16.msra.mxu1 %v7364_v22  ;;  %v7371_v10 = vpack.c.bf16 %v4872_v59, %v7244_v35  ;;  %v7372_v22 = vpack.c.bf16 %v4878_v2, %v4876_v28  ;;  %v7379_v59 = vld [vmem:[#allocation205_spill] sm:$0xff]  ;;  %v7390_v28 = vld [vmem:[#allocation215_spill] sm:$0xff] }
 0x14e   :  { %3595 = vmatprep.subr.bf16.mxu1 %v7365_v3  ;;  %v7373_v3 = vld [vmem:[#allocation11_spill] sm:$0xff]  ;;  %v7381_v2 = vld [vmem:[#allocation17_spill] sm:$0xff] }
 0x14f   :  { %v7391_v35 = vld [vmem:[#allocation31_spill] sm:$0xff] }
 0x150   :  { %3977 = vmatpush1.bf16.msra.mxu0 %v7366_v4  ;;  %v7374_v4 = vpack.c.bf16 %v4884_v8, %v4882_v29  ;;  %v7384_v8 = vld [vmem:[#allocation23_spill] sm:$0xff]  ;;  %v7386_v29 = vld [vmem:[#allocation209_spill] sm:$0xff] }
 0x151   :  { %3979 = vmatprep.subr.bf16.mxu0 %v7367_v57  ;;  %3597 = vmatpush1.bf16.msra.mxu1 %v7368_v62  ;;  %v7375_v57 = vld [vmem:[#allocation201_spill] sm:$0xff]  ;;  %v7376_v62 = vld [vmem:[#allocation14_spill] sm:$0xff] }
 0x152   :  { %3599 = vmatprep.subr.bf16.mxu1 %v7369_v18  ;;  %v7377_v18 = vld [vmem:[#allocation16_spill] sm:$0xff] }
 0x154   :  { %3981 = vmatpush1.bf16.msra.mxu0 %v7370_v44  ;;  %v7378_v44 = vld [vmem:[#allocation18_spill] sm:$0xff] }
 0x155   :  { %3983 = vmatprep.subr.bf16.mxu0 %v7371_v10  ;;  %3601 = vmatpush1.bf16.msra.mxu1 %v7372_v22  ;;  %v7380_v10 = vld [vmem:[#allocation203_spill] sm:$0xff] }
 0x156   :  { %3603 = vmatprep.subr.bf16.mxu1 %v7373_v3  ;;  %v7382_v22 = vld [vmem:[#allocation207_spill] sm:$0xff] }
 0x157   :  { %v7383_v3 = vld [vmem:[#allocation19_spill] sm:$0xff] }
 0x158   :  { %3985 = vmatpush1.bf16.msra.mxu0 %v7374_v4  ;;  %1047 = vmatmul.mubr.f32.vlgmr.msra.gmra.mrb[0].mxu1 %v7375_v57  ;;  %v7385_v4 = vld [vmem:[#allocation28_spill] sm:$0xff] }
 0x159   :  { %3987 = vmatprep.subr.bf16.mxu0 %v7376_v62  ;;  %3605 = vmatpush1.bf16.msra.mxu1 %v7377_v18  ;;  %v7387_v62 = vld [vmem:[#allocation211_spill] sm:$0xff]  ;;  %v7388_v18 = vld [vmem:[#allocation213_spill] sm:$0xff] }
 0x15a   :  { %3607 = vmatprep.subr.bf16.mxu1 %v7378_v44  ;;  %1054 = vmatprep.mubr.f32.mxu1 %v7379_v59  ;;  %v7389_v44 = vld [vmem:[#allocation26_spill] sm:$0xff] }
 0x15b   :  { %2641 = vmatmul.mubr.f32.vlgmr.msra.gmra.mrb[0].mxu0 %v7380_v10 }
 0x15c   :  { %3989 = vmatpush1.bf16.msra.mxu0 %v7381_v2  ;;  %2648 = vmatprep.mubr.f32.mxu0 %v7382_v22  ;;  %v7392_v2 = vld [vmem:[#allocation34_spill] sm:$0xff] }
 0x15d   :  { %3991 = vmatprep.subr.bf16.mxu0 %v7383_v3  ;;  %3609 = vmatpush1.bf16.msra.mxu1 %v7384_v8  ;;  %v7394_v3 = vld [vmem:[#allocation217_spill] sm:$0xff]  ;;  %v7395_v8 = vld [vmem:[#allocation219_spill] sm:$0xff] }
 0x15e   :  { %3611 = vmatprep.subr.bf16.mxu1 %v7385_v4  ;;  %1057 = vmatmul.mubr.f32.gmra.mrb[2].mxu1 %v7386_v29  ;;  %v7396_v4 = vld [vmem:[#allocation221_spill] sm:$0xff] }
 0x15f   :  { %2651 = vmatmul.mubr.f32.gmra.mrb[2].mxu0 %v7387_v62  ;;  %1064 = vmatprep.mubr.f32.mxu1 %v7388_v18 }
 0x160   :  { %3993 = vmatpush1.bf16.msra.mxu0 %v7389_v44  ;;  %2658 = vmatprep.mubr.f32.mxu0 %v7390_v28  ;;  %v7400_v44 = vld [vmem:[#allocation47_spill] sm:$0xff] }
 0x161   :  { %3995 = vmatprep.subr.bf16.mxu0 %v7391_v35  ;;  %3613 = vmatpush1.bf16.msra.mxu1 %v7392_v2  ;;  %v7402_v35 = vld [vmem:[#allocation225_spill] sm:$0xff]  ;;  %v7403_v2 = vld [vmem:[#allocation227_spill] sm:$0xff] }
 0x162   :  { %3615 = vmatprep.subr.bf16.mxu1 %v7393_v36  ;;  %1067 = vmatmul.mubr.f32.gmra.mrb[4].mxu1 %v7394_v3  ;;  %v7404_v36 = vld [vmem:[#allocation229_spill] sm:$0xff] }
 0x163   :  { %2661 = vmatmul.mubr.f32.gmra.mrb[4].mxu0 %v7395_v8  ;;  %1074 = vmatprep.mubr.f32.mxu1 %v7396_v4 }
 0x164   :  { %3997 = vmatpush1.bf16.msra.mxu0 %v7397_v56  ;;  %2668 = vmatprep.mubr.f32.mxu0 %v7398_v26  ;;  %v7408_v56 = vld [vmem:[#allocation58_spill] sm:$0xff] }
 0x165   :  { %3999 = vmatprep.subr.bf16.mxu0 %v7399_v43  ;;  %3617 = vmatpush1.bf16.msra.mxu1 %v7400_v44  ;;  %v7410_v43 = vld [vmem:[#allocation233_spill] sm:$0xff]  ;;  %v7411_v44 = vld [vmem:[#allocation235_spill] sm:$0xff] }
 0x166   :  { %3619 = vmatprep.subr.bf16.mxu1 %v7401_v49  ;;  %1077 = vmatmul.mubr.f32.gmra.mrb[6].mxu1 %v7402_v35  ;;  %v7412_v49 = vld [vmem:[#allocation237_spill] sm:$0xff] }
 0x167   :  { %2671 = vmatmul.mubr.f32.gmra.mrb[6].mxu0 %v7403_v2  ;;  %1084 = vmatprep.mubr.f32.mxu1 %v7404_v36 }
 0x168   :  { %4001 = vmatpush1.bf16.msra.mxu0 %v7405_v31  ;;  %2678 = vmatprep.mubr.f32.mxu0 %v7406_v60  ;;  %v7416_v31 = vld [vmem:[#allocation70_spill] sm:$0xff] }
 0x169   :  { %4003 = vmatprep.subr.bf16.mxu0 %v7407_v55  ;;  %3621 = vmatpush1.bf16.msra.mxu1 %v7408_v56  ;;  %v7418_v55 = vld [vmem:[#allocation241_spill] sm:$0xff] }
 0x16a   :  { %3623 = vmatprep.subr.bf16.mxu1 %v7409_v42  ;;  %1087 = vmatmul.mubr.f32.gmra.mrb[8].mxu1 %v7410_v43  ;;  %v7419_v42 = vand.u32 4294901760, %v7318_v30  ;;  %v7420_v56 = vld [vmem:[#allocation73_spill] sm:$0xff]  ;;  %v7430_v30 = vld [vmem:[#allocation104_spill] sm:$0xff] }
 0x16b   :  { %2681 = vmatmul.mubr.f32.gmra.mrb[8].mxu0 %v7411_v44  ;;  %1094 = vmatprep.mubr.f32.mxu1 %v7412_v49 }
 0x16c   :  { %4005 = vmatpush1.bf16.msra.mxu0 %v7413_v34  ;;  %2688 = vmatprep.mubr.f32.mxu0 %v7414_v23  ;;  %v7422_v34 = vld [vmem:[#allocation80_spill] sm:$0xff] }
 0x16d   :  { %4007 = vmatprep.subr.bf16.mxu0 %v7415_v15  ;;  %3625 = vmatpush1.bf16.msra.mxu1 %v7416_v31  ;;  %v7424_v15 = vld [vmem:[#allocation88_spill] sm:$0xff]  ;;  %v7425_v31 = vld [vmem:[#allocation85_spill] sm:$0xff] }
 0x16e   :  { %3627 = vmatprep.subr.bf16.mxu1 %v7417_v51  ;;  %1097 = vmatmul.mubr.f32.gmra.mrb[10].mxu1 %v7418_v55  ;;  %v7426_v51 = vld [vmem:[#allocation92_spill] sm:$0xff] }
 0x16f   :  { %2691 = vmatmul.mubr.f32.gmra.mrb[10].mxu0 %v5599_v38  ;;  %1234 = vmatprep.mubr.f32.mxu1 %v7419_v42  ;;  %v7429_v42 = vld [vmem:[#allocation97_spill] sm:$0xff] }
 0x170   :  { %4009 = vmatpush1.bf16.msra.mxu0 %v7420_v56  ;;  %2828 = vmatprep.mubr.f32.mxu0 %v7421_v63  ;;  %v7432_v63 = vld [vmem:[#allocation112_spill] sm:$0xff] }
 0x171   :  { %4011 = vmatprep.subr.bf16.mxu0 %v7422_v34  ;;  %3629 = vmatpush1.bf16.msra.mxu1 %v7423_v54  ;;  %v7433_v34 = vld [vmem:[#allocation109_spill] sm:$0xff]  ;;  %v7434_v54 = vld [vmem:[#allocation116_spill] sm:$0xff] }
 0x172   :  { %3631 = vmatprep.subr.bf16.mxu1 %v7424_v15  ;;  %v7435_v15 = vld [vmem:[#allocation118_spill] sm:$0xff] }
 0x174   :  { %4013 = vmatpush1.bf16.msra.mxu0 %v7425_v31  ;;  %v7436_v31 = vld [vmem:[#allocation124_spill] sm:$0xff] }
 0x175   :  { %4015 = vmatprep.subr.bf16.mxu0 %v7426_v51  ;;  %3633 = vmatpush1.bf16.msra.mxu1 %v7427_v1  ;;  %v7437_v51 = vld [vmem:[#allocation121_spill] sm:$0xff]  ;;  %v7438_v1 = vld [vmem:[#allocation128_spill] sm:$0xff] }
 0x176   :  { %3635 = vmatprep.subr.bf16.mxu1 %v7428_v47  ;;  %v7439_v47 = vld [vmem:[#allocation130_spill] sm:$0xff] }
 0x178   :  { %4017 = vmatpush1.bf16.msra.mxu0 %v7429_v42  ;;  %v7440_v42 = vld [vmem:[#allocation136_spill] sm:$0xff] }
 0x179   :  { %4019 = vmatprep.subr.bf16.mxu0 %v7430_v30  ;;  %3637 = vmatpush1.bf16.msra.mxu1 %v7431_v13  ;;  %v7441_v30 = vld [vmem:[#allocation133_spill] sm:$0xff]  ;;  %v7442_v13 = vld [vmem:[#allocation140_spill] sm:$0xff] }
 0x17a   :  { %3639 = vmatprep.subr.bf16.mxu1 %v7432_v63  ;;  %v7443_v63 = vld [vmem:[#allocation142_spill] sm:$0xff] }
 0x17c   :  { %4021 = vmatpush1.bf16.msra.mxu0 %v7433_v34  ;;  %v7444_v34 = vld [vmem:[#allocation148_spill] sm:$0xff] }
 0x17d   :  { %4023 = vmatprep.subr.bf16.mxu0 %v7434_v54  ;;  %3641 = vmatpush1.bf16.msra.mxu1 %v7435_v15  ;;  %v7445_v54 = vld [vmem:[#allocation145_spill] sm:$0xff]  ;;  %v7446_v15 = vld [vmem:[#allocation152_spill] sm:$0xff] }
 0x17e   :  { %3643 = vmatprep.subr.bf16.mxu1 %v7436_v31  ;;  %v7447_v31 = vld [vmem:[#allocation154_spill] sm:$0xff] }
 0x180   :  { %4025 = vmatpush1.bf16.msra.mxu0 %v7437_v51  ;;  %v7448_v51 = vld [vmem:[#allocation160_spill] sm:$0xff] }
 0x181   :  { %4027 = vmatprep.subr.bf16.mxu0 %v7438_v1  ;;  %3645 = vmatpush1.bf16.msra.mxu1 %v7439_v47  ;;  %v7449_v1 = vld [vmem:[#allocation157_spill] sm:$0xff]  ;;  %v7450_v47 = vld [vmem:[#allocation164_spill] sm:$0xff] }
 0x182   :  { %3647 = vmatprep.subr.bf16.mxu1 %v7440_v42  ;;  %v7451_v42 = vld [vmem:[#allocation166_spill] sm:$0xff] }
 0x184   :  { %4029 = vmatpush1.bf16.msra.mxu0 %v7441_v30  ;;  %v7452_v30 = vld [vmem:[#allocation172_spill] sm:$0xff] }
 0x185   :  { %4031 = vmatprep.subr.bf16.mxu0 %v7442_v13  ;;  %3649 = vmatpush1.bf16.msra.mxu1 %v7443_v63  ;;  %v7453_v13 = vld [vmem:[#allocation169_spill] sm:$0xff]  ;;  %v7454_v63 = vld [vmem:[#allocation176_spill] sm:$0xff] }
 0x186   :  { %3651 = vmatprep.subr.bf16.mxu1 %v7444_v34  ;;  %v7455_v34 = vld [vmem:[#allocation178_spill] sm:$0xff] }
 0x188   :  { %4033 = vmatpush1.bf16.msra.mxu0 %v7445_v54  ;;  %v7456_v54 = vld [vmem:[#allocation184_spill] sm:$0xff] }
 0x189   :  { %4035 = vmatprep.subr.bf16.mxu0 %v7446_v15  ;;  %3653 = vmatpush1.bf16.msra.mxu1 %v7447_v31  ;;  %v7457_v31 = vand.u32 4294901760, %v4440_v16  ;;  %v7458_v15 = vld [vmem:[#allocation12_spill] sm:$0xff]  ;;  %v7467_v16 = vand.u32 4294901760, %v4465_v41 }
 0x18a   :  { %3655 = vmatprep.subr.bf16.mxu1 %v7448_v51  ;;  %v7459_v51 = vand.u32 4294901760, %v7458_v15  ;;  %v7469_v15 = vld [vmem:[#allocation194_spill] sm:$0xff] }
 0x18c   :  { %4037 = vmatpush1.bf16.msra.mxu0 %v7449_v1  ;;  %v3666_v56 = vpack.c.bf16 %v7459_v51, %v7457_v31  ;;  %v7460_v1 = vld [vmem:[#allocation181_spill] sm:$0xff]  ;;  %v7468_v51 = vand.u32 4294901760, %v4469_v46 }
 0x18d   :  { %4039 = vmatprep.subr.bf16.mxu0 %v7450_v47  ;;  %3657 = vmatpush1.bf16.msra.mxu1 %v7451_v42  ;;  %v7461_v47 = vld [vmem:[#allocation189_spill] sm:$0xff]  ;;  %v7462_v42 = vld [vmem:[#allocation191_spill] sm:$0xff] }
 0x18e   :  { %3659 = vmatprep.subr.bf16.mxu1 %v7452_v30  ;;  %v7463_v30 = vand.u32 4294901760, %v7249_v9  ;;  %v3670_v31 = vpack.c.bf16 %v7468_v51, %v7467_v16  ;;  %v7471_v9 = vand.u32 4294901760, %v4461_v39 }
 0x190   :  { %4041 = vmatpush1.bf16.msra.mxu0 %v7453_v13  ;;  %v7464_v13 = vand.u32 4294901760, %v7250_v14  ;;  %v7472_v14 = vand.u32 4294901760, %v4463_v40  ;;  %v7485_v40 = vand.u32 4294901760, %v7379_v59 }
 0x191   :  { %4043 = vmatprep.subr.bf16.mxu0 %v7454_v63  ;;  %3661 = vmatpush1.bf16.msra.mxu1 %v7455_v34  ;;  %v7465_v34 = vand.u32 4294901760, %v4452_v25  ;;  %v7473_v25 = vld [vmem:[#allocation20_spill] sm:$0xff] }
 0x192   :  { %3663 = vmatprep.subr.bf16.mxu1 %v7456_v54  ;;  %v4050_v63 = vpack.c.bf16 %v7464_v13, %v7463_v30  ;;  %v7466_v54 = vand.u32 4294901760, %v4455_v27  ;;  %v4052_v30 = vpack.c.bf16 %v7472_v14, %v7471_v9  ;;  %v7474_v27 = vand.u32 4294901760, %v7473_v25  ;;  %v7479_v13 = vld [vmem:[#allocation24_spill] sm:$0xff]  ;;  %v7489_v14 = vld [vmem:[#allocation27_spill] sm:$0xff] }
 0x193   :  { %v7480_v16 = vand.u32 4294901760, %v7479_v13  ;;  %v7490_v25 = vand.u32 4294901760, %v7489_v14  ;;  %v7509_v14 = vld [vmem:[#allocation39_spill] sm:$0xff] }
 0x194   :  { %4045 = vmatpush1.bf16.msra.mxu0 %v7460_v1  ;;  %v3668_v0 = vpack.c.bf16 %v7466_v54, %v7465_v34  ;;  %v7475_v34 = vld [vmem:[#allocation21_spill] sm:$0xff]  ;;  %v7477_v54 = vld [vmem:[#allocation22_spill] sm:$0xff] }
 0x195   :  { %4047 = vmatprep.subr.bf16.mxu0 %v7461_v47  ;;  %3665 = vmatpush1.bf16.msra.mxu1 %v7462_v42  ;;  %v7470_v42 = vand.u32 4294901760, %v7375_v57  ;;  %v7478_v46 = vand.u32 4294901760, %v7477_v54  ;;  %v7481_v57 = vld [vmem:[#allocation29_spill] sm:$0xff] }
 0x196   :  { %3667 = vmatprep.subr.bf16.mxu1 %v3666_v56  ;;  %v7476_v56 = vand.u32 4294901760, %v7475_v34  ;;  %v7491_v34 = vand.u32 4294901760, %v7382_v22  ;;  %v7504_v22 = vand.u32 4294901760, %v7386_v29 }
 0x197   :  { %v3672_v51 = vpack.c.bf16 %v7480_v16, %v7478_v46  ;;  %v7496_v46 = vld [vmem:[#allocation35_spill] sm:$0xff] }
 0x198   :  { %4049 = vmatpush1.bf16.msra.mxu0 %v7469_v15  ;;  %1238 = vmatmul.mubr.f32.vlgmr.msra.gmra.mrb[0].mxu1 %v7470_v42  ;;  %v4054_v41 = vpack.c.bf16 %v7476_v56, %v7474_v27  ;;  %v7482_v42 = vand.u32 4294901760, %v7481_v57  ;;  %v7483_v15 = vld [vmem:[#allocation30_spill] sm:$0xff]  ;;  %v7494_v56 = vld [vmem:[#allocation33_spill] sm:$0xff]  ;;  %v7497_v13 = vand.u32 4294901760, %v7496_v46 }
 0x199   :  { %4051 = vmatprep.subr.bf16.mxu0 %v4050_v63  ;;  %3669 = vmatpush1.bf16.msra.mxu1 %v3668_v0  ;;  %v7484_v39 = vand.u32 4294901760, %v7483_v15  ;;  %v7486_v0 = vand.u32 4294901760, %v7380_v10  ;;  %v7487_v63 = vld [vmem:[#allocation25_spill] sm:$0xff]  ;;  %v7495_v54 = vand.u32 4294901760, %v7494_v56  ;;  %v7498_v10 = vld [vmem:[#allocation36_spill] sm:$0xff] }
 0x19a   :  { %3671 = vmatprep.subr.bf16.mxu1 %v3670_v31  ;;  %1246 = vmatprep.mubr.f32.mxu1 %v7485_v40  ;;  %v7488_v9 = vand.u32 4294901760, %v7487_v63  ;;  %v7492_v31 = vld [vmem:[#allocation32_spill] sm:$0xff]  ;;  %v7499_v16 = vand.u32 4294901760, %v7498_v10  ;;  %v7500_v57 = vld [vmem:[#allocation41_spill] sm:$0xff]  ;;  %v7507_v63 = vld [vmem:[#allocation38_spill] sm:$0xff] }
 0x19b   :  { %v3674_v47 = vpack.c.bf16 %v7484_v39, %v7482_v42  ;;  %2832 = vmatmul.mubr.f32.vlgmr.msra.gmra.mrb[0].mxu0 %v7486_v0  ;;  %v7493_v15 = vand.u32 4294901760, %v7492_v31  ;;  %v7501_v42 = vand.u32 4294901760, %v7500_v57  ;;  %v7502_v39 = vld [vmem:[#allocation42_spill] sm:$0xff]  ;;  %v7512_v31 = vld [vmem:[#allocation44_spill] sm:$0xff]  ;;  %v7520_v10 = vld [vmem:[#allocation53_spill] sm:$0xff] }
 0x19c   :  { %4053 = vmatpush1.bf16.msra.mxu0 %v4052_v30  ;;  %v4056_v27 = vpack.c.bf16 %v7490_v25, %v7488_v9  ;;  %2840 = vmatprep.mubr.f32.mxu0 %v7491_v34  ;;  %v3676_v30 = vpack.c.bf16 %v7499_v16, %v7497_v13  ;;  %v7503_v40 = vand.u32 4294901760, %v7502_v39  ;;  %v7508_v9 = vand.u32 4294901760, %v7507_v63  ;;  %v7522_v57 = vld [vmem:[#allocation54_spill] sm:$0xff] }
 0x19d   :  { %4055 = vmatprep.subr.bf16.mxu0 %v4054_v41  ;;  %3673 = vmatpush1.bf16.msra.mxu1 %v3672_v51  ;;  %v4058_v59 = vpack.c.bf16 %v7495_v54, %v7493_v15  ;;  %v7505_v41 = vand.u32 4294901760, %v7387_v62  ;;  %v7506_v51 = vand.u32 4294901760, %v7388_v18  ;;  %v7510_v25 = vand.u32 4294901760, %v7509_v14  ;;  %v7514_v15 = vld [vmem:[#allocation45_spill] sm:$0xff]  ;;  %v7516_v54 = vld [vmem:[#allocation46_spill] sm:$0xff]  ;;  %v7518_v18 = vld [vmem:[#allocation48_spill] sm:$0xff] }
 0x19e   :  { %3675 = vmatprep.subr.bf16.mxu1 %v3674_v47  ;;  %v3678_v0 = vpack.c.bf16 %v7503_v40, %v7501_v42  ;;  %1250 = vmatmul.mubr.f32.gmra.mrb[2].mxu1 %v7504_v22  ;;  %v7511_v34 = vand.u32 4294901760, %v7390_v28  ;;  %v7513_v29 = vand.u32 4294901760, %v7512_v31  ;;  %v7515_v56 = vand.u32 4294901760, %v7514_v15  ;;  %v7527_v40 = vld [vmem:[#allocation50_spill] sm:$0xff]  ;;  %v7534_v14 = vld [vmem:[#allocation57_spill] sm:$0xff] }
 0x19f   :  { %2844 = vmatmul.mubr.f32.gmra.mrb[2].mxu0 %v7505_v41  ;;  %1258 = vmatprep.mubr.f32.mxu1 %v7506_v51  ;;  %v4060_v47 = vpack.c.bf16 %v7510_v25, %v7508_v9  ;;  %v7517_v46 = vand.u32 4294901760, %v7516_v54  ;;  %v7519_v13 = vand.u32 4294901760, %v7518_v18  ;;  %v7521_v16 = vand.u32 4294901760, %v7520_v10  ;;  %v7529_v41 = vld [vmem:[#allocation51_spill] sm:$0xff]  ;;  %v7540_v15 = vld [vmem:[#allocation65_spill] sm:$0xff]  ;;  %v7542_v54 = vld [vmem:[#allocation66_spill] sm:$0xff] }
 0x1a0   :  { %4057 = vmatpush1.bf16.msra.mxu0 %v4056_v27  ;;  %2852 = vmatprep.mubr.f32.mxu0 %v7511_v34  ;;  %v4062_v62 = vpack.c.bf16 %v7515_v56, %v7513_v29  ;;  %v7523_v42 = vand.u32 4294901760, %v7522_v57  ;;  %v7524_v28 = vand.u32 4294901760, %v7394_v3  ;;  %v7528_v22 = vand.u32 4294901760, %v7527_v40  ;;  %v7532_v9 = vld [vmem:[#allocation55_spill] sm:$0xff] }
 0x1a1   :  { %4059 = vmatprep.subr.bf16.mxu0 %v4058_v59  ;;  %3677 = vmatpush1.bf16.msra.mxu1 %v3676_v30  ;;  %v3680_v27 = vpack.c.bf16 %v7519_v13, %v7517_v46  ;;  %v7525_v59 = vand.u32 4294901760, %v7395_v8  ;;  %v7526_v30 = vand.u32 4294901760, %v7396_v4  ;;  %v7530_v51 = vand.u32 4294901760, %v7529_v41  ;;  %v7536_v34 = vld [vmem:[#allocation59_spill] sm:$0xff]  ;;  %v7538_v4 = vld [vmem:[#allocation60_spill] sm:$0xff] }
 0x1a2   :  { %3679 = vmatprep.subr.bf16.mxu1 %v3678_v0  ;;  %v3682_v39 = vpack.c.bf16 %v7523_v42, %v7521_v16  ;;  %1262 = vmatmul.mubr.f32.gmra.mrb[4].mxu1 %v7524_v28  ;;  %v7531_v63 = vand.u32 4294901760, %v7398_v26  ;;  %v7533_v3 = vand.u32 4294901760, %v7532_v9  ;;  %v7535_v25 = vand.u32 4294901760, %v7534_v14  ;;  %v7549_v16 = vld [vmem:[#allocation63_spill] sm:$0xff]  ;;  %v7562_v9 = vld [vmem:[#allocation78_spill] sm:$0xff] }
 0x1a3   :  { %2856 = vmatmul.mubr.f32.gmra.mrb[4].mxu0 %v7525_v59  ;;  %1270 = vmatprep.mubr.f32.mxu1 %v7526_v30  ;;  %v4064_v0 = vpack.c.bf16 %v7530_v51, %v7528_v22  ;;  %v7537_v31 = vand.u32 4294901760, %v7536_v34  ;;  %v7539_v29 = vand.u32 4294901760, %v7538_v4  ;;  %v7541_v56 = vand.u32 4294901760, %v7540_v15  ;;  %v7552_v28 = vld [vmem:[#allocation67_spill] sm:$0xff]  ;;  %v7554_v59 = vld [vmem:[#allocation69_spill] sm:$0xff]  ;;  %v7567_v34 = vld [vmem:[#allocation74_spill] sm:$0xff] }
 0x1a4   :  { %4061 = vmatpush1.bf16.msra.mxu0 %v4060_v47  ;;  %2864 = vmatprep.mubr.f32.mxu0 %v7531_v63  ;;  %v4066_v8 = vpack.c.bf16 %v7535_v25, %v7533_v3  ;;  %v7543_v46 = vand.u32 4294901760, %v7542_v54  ;;  %v7544_v26 = vand.u32 4294901760, %v7402_v35  ;;  %v7546_v13 = vand.u32 4294901760, %v7404_v36  ;;  %v7556_v40 = vld [vmem:[#allocation71_spill] sm:$0xff]  ;;  %v7558_v36 = vld [vmem:[#allocation72_spill] sm:$0xff]  ;;  %v7574_v54 = vld [vmem:[#allocation81_spill] sm:$0xff] }
 0x1a5   :  { %4063 = vmatprep.subr.bf16.mxu0 %v4062_v62  ;;  %3681 = vmatpush1.bf16.msra.mxu1 %v3680_v27  ;;  %v3684_v47 = vpack.c.bf16 %v7539_v29, %v7537_v31  ;;  %v7545_v62 = vand.u32 4294901760, %v7403_v2  ;;  %v7547_v27 = vld [vmem:[#allocation62_spill] sm:$0xff]  ;;  %v7550_v57 = vand.u32 4294901760, %v7549_v16  ;;  %v7553_v35 = vand.u32 4294901760, %v7552_v28  ;;  %v7569_v4 = vld [vmem:[#allocation75_spill] sm:$0xff]  ;;  %v7586_v28 = vld [vmem:[#allocation188_spill] sm:$0xff] }
 0x1a6   :  { %3683 = vmatprep.subr.bf16.mxu1 %v3682_v39  ;;  %v3686_v18 = vpack.c.bf16 %v7543_v46, %v7541_v56  ;;  %1274 = vmatmul.mubr.f32.gmra.mrb[6].mxu1 %v7544_v26  ;;  %v7548_v10 = vand.u32 4294901760, %v7547_v27  ;;  %v7551_v39 = vand.u32 4294901760, %v7406_v60  ;;  %v7555_v30 = vand.u32 4294901760, %v7554_v59  ;;  %v7572_v56 = vld [vmem:[#allocation79_spill] sm:$0xff]  ;;  %v7580_v27 = vld [vmem:[#allocation89_spill] sm:$0xff]  ;;  %v7582_v16 = vld [vmem:[#allocation90_spill] sm:$0xff] }
 0x1a7   :  { %2868 = vmatmul.mubr.f32.gmra.mrb[6].mxu0 %v7545_v62  ;;  %1282 = vmatprep.mubr.f32.mxu1 %v7546_v13  ;;  %v7557_v22 = vand.u32 4294901760, %v7556_v40  ;;  %v7559_v41 = vand.u32 4294901760, %v7558_v36  ;;  %v7563_v3 = vand.u32 4294901760, %v7562_v9  ;;  %v7564_v60 = vand.u32 4294901760, %v7410_v43  ;;  %v7592_v36 = vld [vmem:[#allocation91_spill] sm:$0xff]  ;;  %v7598_v9 = vld [vmem:[#allocation96_spill] sm:$0xff] }
 0x1a8   :  { %4065 = vmatpush1.bf16.msra.mxu0 %v4064_v0  ;;  %v4068_v42 = vpack.c.bf16 %v7550_v57, %v7548_v10  ;;  %2876 = vmatprep.mubr.f32.mxu0 %v7551_v39  ;;  %v4070_v2 = vpack.c.bf16 %v7555_v30, %v7553_v35  ;;  %v7560_v0 = vld [vmem:[#allocation77_spill] sm:$0xff]  ;;  %v7565_v25 = vand.u32 4294901760, %v7411_v44  ;;  %v7568_v31 = vand.u32 4294901760, %v7567_v34  ;;  %v7587_v35 = vld [vmem:[#allocation86_spill] sm:$0xff]  ;;  %v7589_v30 = vld [vmem:[#allocation87_spill] sm:$0xff] }
 0x1a9   :  { %4067 = vmatprep.subr.bf16.mxu0 %v4066_v8  ;;  %3685 = vmatpush1.bf16.msra.mxu1 %v3684_v47  ;;  %v3688_v51 = vpack.c.bf16 %v7559_v41, %v7557_v22  ;;  %v7561_v63 = vand.u32 4294901760, %v7560_v0  ;;  %v7566_v8 = vand.u32 4294901760, %v7412_v49  ;;  %v7570_v29 = vand.u32 4294901760, %v7569_v4  ;;  %v7578_v49 = vld [vmem:[#allocation84_spill] sm:$0xff]  ;;  %v7591_v22 = vld [vmem:[#allocation198_spill] sm:$0xff] }
 0x1aa   :  { %3687 = vmatprep.subr.bf16.mxu1 %v3686_v18  ;;  %1286 = vmatmul.mubr.f32.gmra.mrb[8].mxu1 %v7564_v60  ;;  %v7571_v15 = vand.u32 4294901760, %v7414_v23  ;;  %v7573_v43 = vand.u32 4294901760, %v7572_v56  ;;  %v7575_v46 = vand.u32 4294901760, %v7574_v54  ;;  %v7576_v18 = vld [vmem:[#allocation83_spill] sm:$0xff]  ;;  %v7579_v62 = vand.u32 4294901760, %v7578_v49  ;;  %v7600_v60 = vld [vmem:[#allocation101_spill] sm:$0xff] }
 0x1ab   :  { %v3690_v14 = vpack.c.bf16 %v7563_v3, %v7561_v63  ;;  %2880 = vmatmul.mubr.f32.gmra.mrb[8].mxu0 %v7565_v25  ;;  %1294 = vmatprep.mubr.f32.mxu1 %v7566_v8  ;;  %v4072_v47 = vpack.c.bf16 %v7570_v29, %v7568_v31  ;;  %v7577_v26 = vand.u32 4294901760, %v7576_v18  ;;  %v7581_v10 = vand.u32 4294901760, %v7580_v27  ;;  %v7596_v63 = vld [vmem:[#allocation95_spill] sm:$0xff]  ;;  %v7602_v8 = vld [vmem:[#allocation102_spill] sm:$0xff] }
 0x1ac   :  { %4069 = vmatpush1.bf16.msra.mxu0 %v4068_v42  ;;  %2888 = vmatprep.mubr.f32.mxu0 %v7571_v15  ;;  %v4074_v44 = vpack.c.bf16 %v7575_v46, %v7573_v43  ;;  %v7583_v57 = vand.u32 4294901760, %v7582_v16  ;;  %v7584_v23 = vand.u32 4294901760, %v7418_v55  ;;  %v7585_v39 = vand.u32 4294901760, %v5599_v38  ;;  %v7604_v4 = vld [vmem:[#allocation98_spill] sm:$0xff]  ;;  %v7608_v43 = vld [vmem:[#allocation103_spill] sm:$0xff]  ;;  %v7610_v46 = vld [vmem:[#allocation105_spill] sm:$0xff] }
 0x1ad   :  { %4071 = vmatprep.subr.bf16.mxu0 %v4070_v2  ;;  %3689 = vmatpush1.bf16.msra.mxu1 %v3688_v51  ;;  %v3692_v13 = vpack.c.bf16 %v7579_v62, %v7577_v26  ;;  %v7588_v59 = vand.u32 4294901760, %v7587_v35  ;;  %v7590_v2 = vand.u32 4294901760, %v7589_v30  ;;  %v7593_v41 = vand.u32 4294901760, %v7592_v36  ;;  %v7594_v51 = vld [vmem:[#allocation93_spill] sm:$0xff]  ;;  %v7612_v26 = vld [vmem:[#allocation107_spill] sm:$0xff]  ;;  %v7614_v62 = vld [vmem:[#allocation108_spill] sm:$0xff] }
 0x1ae   :  { %3691 = vmatprep.subr.bf16.mxu1 %v3690_v14  ;;  %v3694_v42 = vpack.c.bf16 %v7583_v57, %v7581_v10  ;;  %1298 = vmatmul.mubr.f32.gmra.mrb[10].mxu1 %v7584_v23  ;;  %v7595_v55 = vand.u32 4294901760, %v7594_v51  ;;  %v7597_v38 = vand.u32 4294901760, %v7596_v63  ;;  %v7599_v3 = vand.u32 4294901760, %v7598_v9  ;;  %v7616_v10 = vld [vmem:[#allocation113_spill] sm:$0xff]  ;;  %v7618_v57 = vld [vmem:[#allocation114_spill] sm:$0xff] }
 0x1af   :  { %2892 = vmatmul.mubr.f32.gmra.mrb[10].mxu0 %v7585_v39  ;;  %1561 = vmatprep.mubr.f32.mxu1 %v7586_v28  ;;  %v4076_v40 = vpack.c.bf16 %v7590_v2, %v7588_v59  ;;  %v7601_v25 = vand.u32 4294901760, %v7600_v60  ;;  %v7603_v34 = vand.u32 4294901760, %v7602_v8  ;;  %v7605_v29 = vand.u32 4294901760, %v7604_v4  ;;  %v7620_v39 = vld [vmem:[#allocation110_spill] sm:$0xff]  ;;  %v7622_v59 = vld [vmem:[#allocation111_spill] sm:$0xff] }
 0x1b0   :  { %4073 = vmatpush1.bf16.msra.mxu0 %v4072_v47  ;;  %3155 = vmatprep.mubr.f32.mxu0 %v7591_v22  ;;  %v4078_v0 = vpack.c.bf16 %v7595_v55, %v7593_v41  ;;  %v3696_v14 = vpack.c.bf16 %v7599_v3, %v7597_v38  ;;  %v7606_v47 = vld [vmem:[#allocation99_spill] sm:$0xff]  ;;  %v7609_v54 = vand.u32 4294901760, %v7608_v43  ;;  %v7613_v49 = vand.u32 4294901760, %v7612_v26  ;;  %v7626_v41 = vld [vmem:[#allocation117_spill] sm:$0xff]  ;;  %v7630_v38 = vld [vmem:[#allocation120_spill] sm:$0xff] }
 0x1b1   :  { %4075 = vmatprep.subr.bf16.mxu0 %v4074_v44  ;;  %3693 = vmatpush1.bf16.msra.mxu1 %v3692_v13  ;;  %v3698_v31 = vpack.c.bf16 %v7603_v34, %v7601_v25  ;;  %v7607_v15 = vand.u32 4294901760, %v7606_v47  ;;  %v7611_v44 = vand.u32 4294901760, %v7610_v46  ;;  %v7615_v13 = vand.u32 4294901760, %v7614_v62  ;;  %v7634_v25 = vld [vmem:[#allocation126_spill] sm:$0xff]  ;;  %v7641_v43 = vld [vmem:[#allocation129_spill] sm:$0xff] }
 0x1b2   :  { %3695 = vmatprep.subr.bf16.mxu1 %v3694_v42  ;;  %v7617_v16 = vand.u32 4294901760, %v7616_v10  ;;  %v7619_v42 = vand.u32 4294901760, %v7618_v57  ;;  %v7621_v35 = vand.u32 4294901760, %v7620_v39  ;;  %v7623_v30 = vand.u32 4294901760, %v7622_v59 }
 0x1b3   :  { %v4080_v56 = vpack.c.bf16 %v7607_v15, %v7605_v29  ;;  %v4082_v18 = vpack.c.bf16 %v7611_v44, %v7609_v54  ;;  %v3700_v27 = vpack.c.bf16 %v7615_v13, %v7613_v49  ;;  %v7627_v51 = vand.u32 4294901760, %v7626_v41  ;;  %v7638_v29 = vld [vmem:[#allocation123_spill] sm:$0xff] }
 0x1b4   :  { %4077 = vmatpush1.bf16.msra.mxu0 %v4076_v40  ;;  %v3702_v23 = vpack.c.bf16 %v7619_v42, %v7617_v16  ;;  %v4084_v2 = vpack.c.bf16 %v7623_v30, %v7621_v35  ;;  %v7624_v40 = vld [vmem:[#allocation115_spill] sm:$0xff]  ;;  %v7631_v9 = vand.u32 4294901760, %v7630_v38  ;;  %v7635_v8 = vand.u32 4294901760, %v7634_v25 }
 0x1b5   :  { %4079 = vmatprep.subr.bf16.mxu0 %v4078_v0  ;;  %3697 = vmatpush1.bf16.msra.mxu1 %v3696_v14  ;;  %v7625_v36 = vand.u32 4294901760, %v7624_v40  ;;  %v7628_v0 = vld [vmem:[#allocation119_spill] sm:$0xff]  ;;  %v7632_v14 = vld [vmem:[#allocation125_spill] sm:$0xff]  ;;  %v7639_v47 = vand.u32 4294901760, %v7638_v29  ;;  %v7642_v54 = vand.u32 4294901760, %v7641_v43  ;;  %v7643_v44 = vand.u32 4294901760, %v7346_v37 }
 0x1b6   :  { %3699 = vmatprep.subr.bf16.mxu1 %v3698_v31  ;;  %v7629_v63 = vand.u32 4294901760, %v7628_v0  ;;  %v7633_v60 = vand.u32 4294901760, %v7632_v14  ;;  %v7636_v31 = vld [vmem:[#allocation122_spill] sm:$0xff]  ;;  %v7646_v62 = vand.u32 4294901760, %v7348_v5  ;;  %v7647_v13 = vand.u32 4294901760, %v7349_v12  ;;  %v7666_v41 = vld [vmem:[#allocation159_spill] sm:$0xff] }
 0x1b7   :  { %v4086_v55 = vpack.c.bf16 %v7627_v51, %v7625_v36  ;;  %v7637_v4 = vand.u32 4294901760, %v7636_v31  ;;  %v7648_v10 = vand.u32 4294901760, %v7350_v52  ;;  %v7649_v16 = vand.u32 4294901760, %v7351_v6  ;;  %v7686_v43 = vld [vmem:[#allocation177_spill] sm:$0xff] }
 0x1b8   :  { %4081 = vmatpush1.bf16.msra.mxu0 %v4080_v56  ;;  %v3704_v3 = vpack.c.bf16 %v7631_v9, %v7629_v63  ;;  %v3706_v34 = vpack.c.bf16 %v7635_v8, %v7633_v60  ;;  %v7640_v56 = vand.u32 4294901760, %v7344_v11  ;;  %v7650_v57 = vand.u32 4294901760, %v7352_v50  ;;  %v7672_v63 = vld [vmem:[#allocation167_spill] sm:$0xff]  ;;  %v7674_v9 = vld [vmem:[#allocation168_spill] sm:$0xff]  ;;  %v7678_v60 = vld [vmem:[#allocation174_spill] sm:$0xff] }
 0x1b9   :  { %4083 = vmatprep.subr.bf16.mxu0 %v4082_v18  ;;  %3701 = vmatpush1.bf16.msra.mxu1 %v3700_v27  ;;  %v4088_v15 = vpack.c.bf16 %v7639_v47, %v7637_v4  ;;  %v7644_v18 = vld [vmem:[#allocation132_spill] sm:$0xff]  ;;  %v3710_v27 = vpack.c.bf16 %v7647_v13, %v7646_v62  ;;  %v4092_v11 = vpack.c.bf16 %v7649_v16, %v7648_v10  ;;  %v7651_v37 = vand.u32 4294901760, %v7353_v61  ;;  %v7682_v4 = vld [vmem:[#allocation171_spill] sm:$0xff]  ;;  %v7692_v13 = vld [vmem:[#allocation185_spill] sm:$0xff] }
 0x1ba   :  { %3703 = vmatprep.subr.bf16.mxu1 %v3702_v23  ;;  %v4090_v46 = vpack.c.bf16 %v7642_v54, %v7640_v56  ;;  %v7645_v26 = vand.u32 4294901760, %v7644_v18  ;;  %v7652_v23 = vand.u32 4294901760, %v7354_v48  ;;  %v7653_v5 = vand.u32 4294901760, %v7355_v33  ;;  %v7694_v10 = vld [vmem:[#allocation186_spill] sm:$0xff] }
 0x1bb   :  { %v4094_v42 = vpack.c.bf16 %v7651_v37, %v7650_v57  ;;  %v7654_v12 = vand.u32 4294901760, %v7261_v45  ;;  %v7655_v52 = vand.u32 4294901760, %v7262_v17  ;;  %v7656_v6 = vand.u32 4294901760, %v7356_v20  ;;  %v7696_v57 = vld [vmem:[#allocation182_spill] sm:$0xff] }
 0x1bc   :  { %4085 = vmatpush1.bf16.msra.mxu0 %v4084_v2  ;;  %v3708_v49 = vpack.c.bf16 %v7645_v26, %v7643_v44  ;;  %v3712_v39 = vpack.c.bf16 %v7653_v5, %v7652_v23  ;;  %v7657_v59 = vand.u32 4294901760, %v7357_v53  ;;  %v7658_v61 = vand.u32 4294901760, %v7263_v24  ;;  %v7664_v53 = vld [vmem:[#allocation158_spill] sm:$0xff]  ;;  %v7688_v44 = vld [vmem:[#allocation179_spill] sm:$0xff]  ;;  %v7690_v26 = vld [vmem:[#allocation180_spill] sm:$0xff] }
 0x1bd   :  { %4087 = vmatprep.subr.bf16.mxu0 %v4086_v55  ;;  %3705 = vmatpush1.bf16.msra.mxu1 %v3704_v3  ;;  %v3714_v35 = vpack.c.bf16 %v7655_v52, %v7654_v12  ;;  %v7659_v48 = vand.u32 4294901760, %v7264_v58  ;;  %v7660_v30 = vand.u32 4294901760, %v7265_v32  ;;  %v7661_v45 = vand.u32 4294901760, %v7266_v19  ;;  %v7668_v58 = vld [vmem:[#allocation163_spill] sm:$0xff]  ;;  %v7670_v32 = vld [vmem:[#allocation165_spill] sm:$0xff]  ;;  %v7702_v52 = vld [vmem:[#allocation190_spill] sm:$0xff] }
 0x1be   :  { %3707 = vmatprep.subr.bf16.mxu1 %v3706_v34  ;;  %v4096_v50 = vpack.c.bf16 %v7657_v59, %v7656_v6  ;;  %v7662_v17 = vand.u32 4294901760, %v7268_v7  ;;  %v7663_v20 = vand.u32 4294901760, %v7269_v21  ;;  %v7665_v36 = vand.u32 4294901760, %v7664_v53  ;;  %v7676_v21 = vld [vmem:[#allocation173_spill] sm:$0xff]  ;;  %v7680_v34 = vld [vmem:[#allocation170_spill] sm:$0xff]  ;;  %v7704_v59 = vld [vmem:[#allocation192_spill] sm:$0xff] }
 0x1bf   :  { %v4098_v33 = vpack.c.bf16 %v7659_v48, %v7658_v61  ;;  %v3716_v2 = vpack.c.bf16 %v7661_v45, %v7660_v30  ;;  %v7667_v51 = vand.u32 4294901760, %v7666_v41  ;;  %v7669_v55 = vand.u32 4294901760, %v7668_v58  ;;  %v7706_v61 = vld [vmem:[#allocation193_spill] sm:$0xff]  ;;  %v7708_v30 = vld [vmem:[#allocation195_spill] sm:$0xff]  ;;  %v7715_v41 = vld [vmem:[#allocation16_spill] sm:$0xff] }
 0x1c0   :  { %4089 = vmatpush1.bf16.msra.mxu0 %v4088_v15  ;;  %v3718_v40 = vpack.c.bf16 %v7663_v20, %v7662_v17  ;;  %v7671_v0 = vand.u32 4294901760, %v7670_v32  ;;  %v7673_v38 = vand.u32 4294901760, %v7672_v63  ;;  %v7675_v7 = vand.u32 4294901760, %v7674_v9  ;;  %v7684_v15 = vld [vmem:[#allocation175_spill] sm:$0xff]  ;;  %v7718_v58 = vld [vmem:[#allocation202_spill] sm:$0xff]  ;;  %v7723_v63 = vld [vmem:[#allocation28_spill] sm:$0xff] }
 0x1c1   :  { %4091 = vmatprep.subr.bf16.mxu0 %v4090_v46  ;;  %3709 = vmatpush1.bf16.msra.mxu1 %v3708_v49  ;;  %v4100_v24 = vpack.c.bf16 %v7667_v51, %v7665_v36  ;;  %v7677_v14 = vand.u32 4294901760, %v7676_v21  ;;  %v7679_v25 = vand.u32 4294901760, %v7678_v60  ;;  %v7681_v31 = vand.u32 4294901760, %v7680_v34  ;;  %v7713_v53 = vld [vmem:[#allocation199_spill] sm:$0xff]  ;;  %v7714_v36 = vld [vmem:[#allocation14_spill] sm:$0xff] }
 0x1c2   :  { %3711 = vmatprep.subr.bf16.mxu1 %v3710_v27  ;;  %v4102_v19 = vpack.c.bf16 %v7671_v0, %v7669_v55  ;;  %v3720_v3 = vpack.c.bf16 %v7675_v7, %v7673_v38  ;;  %v7683_v29 = vand.u32 4294901760, %v7682_v4  ;;  %v7685_v56 = vand.u32 4294901760, %v7684_v15  ;;  %v7716_v51 = vld [vmem:[#allocation18_spill] sm:$0xff]  ;;  %v7719_v55 = vld [vmem:[#allocation17_spill] sm:$0xff]  ;;  %v7721_v0 = vld [vmem:[#allocation19_spill] sm:$0xff] }
 0x1c3   :  { %v3722_v8 = vpack.c.bf16 %v7679_v25, %v7677_v14  ;;  %v7687_v54 = vand.u32 4294901760, %v7686_v43  ;;  %v7689_v18 = vand.u32 4294901760, %v7688_v44  ;;  %v7691_v49 = vand.u32 4294901760, %v7690_v26  ;;  %v7720_v32 = vld [vmem:[#allocation206_spill] sm:$0xff]  ;;  %v7724_v38 = vld [vmem:[#allocation208_spill] sm:$0xff]  ;;  %v7729_v14 = vld [vmem:[#allocation31_spill] sm:$0xff] }
 0x1c4   :  { %4093 = vmatpush1.bf16.msra.mxu0 %v4092_v11  ;;  %v4104_v47 = vpack.c.bf16 %v7683_v29, %v7681_v31  ;;  %v7693_v27 = vand.u32 4294901760, %v7692_v13  ;;  %v7695_v16 = vand.u32 4294901760, %v7694_v10  ;;  %v7697_v37 = vand.u32 4294901760, %v7696_v57  ;;  %v7725_v9 = vld [vmem:[#allocation210_spill] sm:$0xff]  ;;  %v7726_v7 = vld [vmem:[#allocation212_spill] sm:$0xff]  ;;  %v7735_v4 = vld [vmem:[#allocation37_spill] sm:$0xff] }
 0x1c5   :  { %4095 = vmatprep.subr.bf16.mxu0 %v4094_v42  ;;  %3713 = vmatpush1.bf16.msra.mxu1 %v3712_v39  ;;  %v4106_v46 = vpack.c.bf16 %v7687_v54, %v7685_v56  ;;  %v3724_v62 = vpack.c.bf16 %v7691_v49, %v7689_v18  ;;  %v7698_v42 = vld [vmem:[#allocation183_spill] sm:$0xff]  ;;  %v7707_v48 = vand.u32 4294901760, %v7706_v61  ;;  %v7709_v45 = vand.u32 4294901760, %v7708_v30  ;;  %v7728_v21 = vld [vmem:[#allocation214_spill] sm:$0xff]  ;;  %v7731_v25 = vld [vmem:[#allocation40_spill] sm:$0xff] }
 0x1c6   :  { %3715 = vmatprep.subr.bf16.mxu1 %v3714_v35  ;;  %v3726_v11 = vpack.c.bf16 %v7695_v16, %v7693_v27  ;;  %v7699_v23 = vand.u32 4294901760, %v7698_v42  ;;  %v7700_v39 = vld [vmem:[#allocation187_spill] sm:$0xff]  ;;  %v7703_v35 = vand.u32 4294901760, %v7702_v52  ;;  %v7730_v60 = vld [vmem:[#allocation34_spill] sm:$0xff]  ;;  %v7734_v31 = vld [vmem:[#allocation220_spill] sm:$0xff] }
 0x1c7   :  { %v7701_v12 = vand.u32 4294901760, %v7700_v39  ;;  %v7733_v34 = vld [vmem:[#allocation218_spill] sm:$0xff]  ;;  %v7738_v15 = vld [vmem:[#allocation47_spill] sm:$0xff]  ;;  %v7739_v56 = vld [vmem:[#allocation52_spill] sm:$0xff] }
 0x1c8   :  { %4097 = vmatpush1.bf16.msra.mxu0 %v4096_v50  ;;  %v4108_v5 = vpack.c.bf16 %v7699_v23, %v7697_v37  ;;  %v7705_v50 = vand.u32 4294901760, %v7704_v59  ;;  %v7736_v29 = vld [vmem:[#allocation222_spill] sm:$0xff]  ;;  %v7740_v43 = vld [vmem:[#allocation224_spill] sm:$0xff]  ;;  %v7743_v44 = vld [vmem:[#allocation49_spill] sm:$0xff] }
 0x1c9   :  { %4099 = vmatprep.subr.bf16.mxu0 %v4098_v33  ;;  %3717 = vmatpush1.bf16.msra.mxu1 %v3716_v2  ;;  %v4110_v6 = vpack.c.bf16 %v7703_v35, %v7701_v12  ;;  %v7710_v2 = vld [vmem:[#allocation196_spill] sm:$0xff]  ;;  %v7741_v54 = vld [vmem:[#allocation226_spill] sm:$0xff]  ;;  %v7751_v16 = vld [vmem:[#allocation61_spill] sm:$0xff] }
 0x1ca   :  { %3719 = vmatprep.subr.bf16.mxu1 %v3718_v40  ;;  %v3728_v33 = vpack.c.bf16 %v7707_v48, %v7705_v50  ;;  %v7711_v17 = vand.u32 4294901760, %v7710_v2  ;;  %v7712_v40 = vld [vmem:[#allocation11_spill] sm:$0xff]  ;;  %v7744_v18 = vld [vmem:[#allocation230_spill] sm:$0xff]  ;;  %v7745_v26 = vld [vmem:[#allocation56_spill] sm:$0xff] }
 0x1cb   :  { %v7746_v49 = vld [vmem:[#allocation58_spill] sm:$0xff]  ;;  %v7748_v13 = vld [vmem:[#allocation232_spill] sm:$0xff]  ;;  %v7758_v39 = vld [vmem:[#allocation73_spill] sm:$0xff] }
 0x1cc   :  { %4101 = vmatpush1.bf16.msra.mxu0 %v4100_v24  ;;  %v4112_v20 = vpack.c.bf16 %v7711_v17, %v7709_v45  ;;  %v7717_v24 = vld [vmem:[#allocation204_spill] sm:$0xff]  ;;  %v7749_v27 = vld [vmem:[#allocation234_spill] sm:$0xff]  ;;  %v7766_v48 = vld [vmem:[#allocation97_spill] sm:$0xff] }
 0x1cd   :  { %4103 = vmatprep.subr.bf16.mxu0 %v4102_v19  ;;  %3721 = vmatpush1.bf16.msra.mxu1 %v3720_v3  ;;  %v7722_v19 = vld [vmem:[#allocation23_spill] sm:$0xff]  ;;  %v7727_v3 = vld [vmem:[#allocation26_spill] sm:$0xff]  ;;  %v7750_v10 = vld [vmem:[#allocation236_spill] sm:$0xff] }
 0x1ce   :  { %3723 = vmatprep.subr.bf16.mxu1 %v3722_v8  ;;  %v7732_v8 = vld [vmem:[#allocation216_spill] sm:$0xff]  ;;  %v7754_v37 = vld [vmem:[#allocation70_spill] sm:$0xff]  ;;  %v7770_v30 = vld [vmem:[#allocation109_spill] sm:$0xff] }
 0x1cf   :  { %v7753_v57 = vld [vmem:[#allocation68_spill] sm:$0xff]  ;;  %v7760_v52 = vld [vmem:[#allocation82_spill] sm:$0xff] }
 0x1d0   :  { %4105 = vmatpush1.bf16.msra.mxu0 %v4104_v47  ;;  %v7737_v47 = vld [vmem:[#allocation43_spill] sm:$0xff]  ;;  %v7755_v42 = vld [vmem:[#allocation76_spill] sm:$0xff]  ;;  %v7764_v50 = vld [vmem:[#allocation94_spill] sm:$0xff] }
 0x1d1   :  { %4107 = vmatprep.subr.bf16.mxu0 %v4106_v46  ;;  %3725 = vmatpush1.bf16.msra.mxu1 %v3724_v62  ;;  %v7742_v46 = vld [vmem:[#allocation228_spill] sm:$0xff]  ;;  %v7772_v2 = vld [vmem:[#allocation118_spill] sm:$0xff] }
 0x1d2   :  { %3727 = vmatprep.subr.bf16.mxu1 %v3726_v11  ;;  %v7747_v62 = vld [vmem:[#allocation64_spill] sm:$0xff]  ;;  %v7752_v11 = vld [vmem:[#allocation238_spill] sm:$0xff] }
 0x1d3   :  { %v7756_v23 = vld [vmem:[#allocation240_spill] sm:$0xff] }
 0x1d4   :  { %4109 = vmatpush1.bf16.msra.mxu0 %v4108_v5  ;;  %v7757_v5 = vld [vmem:[#allocation242_spill] sm:$0xff]  ;;  %v7759_v12 = vld [vmem:[#allocation80_spill] sm:$0xff] }
 0x1d5   :  { %4111 = vmatprep.subr.bf16.mxu0 %v4110_v6  ;;  %3729 = vmatpush1.bf16.msra.mxu1 %v3728_v33  ;;  %v7761_v35 = vld [vmem:[#allocation88_spill] sm:$0xff]  ;;  %v7762_v6 = vld [vmem:[#allocation85_spill] sm:$0xff]  ;;  %v7768_v33 = vld [vmem:[#allocation106_spill] sm:$0xff] }
 0x1d6   :  { %3731 = vmatprep.subr.bf16.mxu1 %v7712_v40  ;;  %v7763_v59 = vld [vmem:[#allocation92_spill] sm:$0xff] }
 0x1d7   :  { %v7765_v61 = vld [vmem:[#allocation100_spill] sm:$0xff] }
 0x1d8   :  { %4113 = vmatpush1.bf16.msra.mxu0 %v4112_v20  ;;  %1563 = vmatmul.mubr.f32.vlgmr.msra.gmra.mrb[0].mxu1 %v7713_v53  ;;  %v7771_v45 = vld [vmem:[#allocation116_spill] sm:$0xff]  ;;  %v7774_v20 = vld [vmem:[#allocation121_spill] sm:$0xff] }
 0x1d9   :  { %4115 = vmatprep.subr.bf16.mxu0 %v7714_v36  ;;  %3733 = vmatpush1.bf16.msra.mxu1 %v7715_v41  ;;  %v7773_v17 = vld [vmem:[#allocation124_spill] sm:$0xff]  ;;  %v7776_v36 = vld [vmem:[#allocation130_spill] sm:$0xff] }
 0x1da   :  { %3735 = vmatprep.subr.bf16.mxu1 %v7716_v51  ;;  %1569 = vmatprep.mubr.f32.mxu1 %v7717_v24  ;;  %v7775_v40 = vld [vmem:[#allocation128_spill] sm:$0xff]  ;;  %v7778_v51 = vld [vmem:[#allocation133_spill] sm:$0xff] }
 0x1db   :  { %3157 = vmatmul.mubr.f32.vlgmr.msra.gmra.mrb[0].mxu0 %v7718_v58  ;;  %v7777_v41 = vld [vmem:[#allocation136_spill] sm:$0xff] }
 0x1dc   :  { %4117 = vmatpush1.bf16.msra.mxu0 %v7719_v55  ;;  %3163 = vmatprep.mubr.f32.mxu0 %v7720_v32  ;;  %v7779_v55 = vld [vmem:[#allocation140_spill] sm:$0xff] }
 0x1dd   :  { %4119 = vmatprep.subr.bf16.mxu0 %v7721_v0  ;;  %3737 = vmatpush1.bf16.msra.mxu1 %v7722_v19  ;;  %v7780_v0 = vld [vmem:[#allocation142_spill] sm:$0xff]  ;;  %v7781_v19 = vld [vmem:[#allocation148_spill] sm:$0xff] }
 0x1de   :  { %3739 = vmatprep.subr.bf16.mxu1 %v7723_v63  ;;  %1571 = vmatmul.mubr.f32.gmra.mrb[2].mxu1 %v7724_v38  ;;  %v7782_v63 = vld [vmem:[#allocation145_spill] sm:$0xff] }
 0x1df   :  { %3165 = vmatmul.mubr.f32.gmra.mrb[2].mxu0 %v7725_v9  ;;  %1577 = vmatprep.mubr.f32.mxu1 %v7726_v7 }
 0x1e0   :  { %4121 = vmatpush1.bf16.msra.mxu0 %v7727_v3  ;;  %3171 = vmatprep.mubr.f32.mxu0 %v7728_v21  ;;  %v7783_v3 = vld [vmem:[#allocation152_spill] sm:$0xff] }
 0x1e1   :  { %4123 = vmatprep.subr.bf16.mxu0 %v7729_v14  ;;  %3741 = vmatpush1.bf16.msra.mxu1 %v7730_v60  ;;  %v7784_v14 = vld [vmem:[#allocation154_spill] sm:$0xff]  ;;  %v7785_v60 = vld [vmem:[#allocation160_spill] sm:$0xff] }
 0x1e2   :  { %3743 = vmatprep.subr.bf16.mxu1 %v7731_v25  ;;  %1579 = vmatmul.mubr.f32.gmra.mrb[4].mxu1 %v7732_v8  ;;  %v7786_v25 = vld [vmem:[#allocation157_spill] sm:$0xff] }
 0x1e3   :  { %3173 = vmatmul.mubr.f32.gmra.mrb[4].mxu0 %v7733_v34  ;;  %1585 = vmatprep.mubr.f32.mxu1 %v7734_v31 }
 0x1e4   :  { %4125 = vmatpush1.bf16.msra.mxu0 %v7735_v4  ;;  %3179 = vmatprep.mubr.f32.mxu0 %v7736_v29  ;;  %v7787_v4 = vld [vmem:[#allocation164_spill] sm:$0xff] }
 0x1e5   :  { %4127 = vmatprep.subr.bf16.mxu0 %v7737_v47  ;;  %3745 = vmatpush1.bf16.msra.mxu1 %v7738_v15  ;;  %v7788_v47 = vld [vmem:[#allocation166_spill] sm:$0xff]  ;;  %v7789_v15 = vld [vmem:[#allocation172_spill] sm:$0xff] }
 0x1e6   :  { %3747 = vmatprep.subr.bf16.mxu1 %v7739_v56  ;;  %1587 = vmatmul.mubr.f32.gmra.mrb[6].mxu1 %v7740_v43  ;;  %v7790_v56 = vld [vmem:[#allocation169_spill] sm:$0xff] }
 0x1e7   :  { %3181 = vmatmul.mubr.f32.gmra.mrb[6].mxu0 %v7741_v54  ;;  %1593 = vmatprep.mubr.f32.mxu1 %v7742_v46 }
 0x1e8   :  { %4129 = vmatpush1.bf16.msra.mxu0 %v7743_v44  ;;  %3187 = vmatprep.mubr.f32.mxu0 %v7744_v18  ;;  %v7791_v44 = vld [vmem:[#allocation176_spill] sm:$0xff] }
 0x1e9   :  { %4131 = vmatprep.subr.bf16.mxu0 %v7745_v26  ;;  %3749 = vmatpush1.bf16.msra.mxu1 %v7746_v49  ;;  %v7792_v26 = vld [vmem:[#allocation178_spill] sm:$0xff]  ;;  %v7793_v49 = vld [vmem:[#allocation184_spill] sm:$0xff] }
 0x1ea   :  { %3751 = vmatprep.subr.bf16.mxu1 %v7747_v62  ;;  %1595 = vmatmul.mubr.f32.gmra.mrb[8].mxu1 %v7748_v13  ;;  %v7794_v62 = vld [vmem:[#allocation189_spill] sm:$0xff] }
 0x1eb   :  { %3189 = vmatmul.mubr.f32.gmra.mrb[8].mxu0 %v7749_v27  ;;  %1601 = vmatprep.mubr.f32.mxu1 %v7750_v10 }
 0x1ec   :  { %4133 = vmatpush1.bf16.msra.mxu0 %v7751_v16  ;;  %3195 = vmatprep.mubr.f32.mxu0 %v7752_v11  ;;  %v7795_v16 = vld [vmem:[#allocation191_spill] sm:$0xff] }
 0x1ed   :  { %4135 = vmatprep.subr.bf16.mxu0 %v7753_v57  ;;  %3753 = vmatpush1.bf16.msra.mxu1 %v7754_v37  ;;  %v7796_v57 = vld [vmem:[#allocation194_spill] sm:$0xff] }
 0x1ee   :  { %3755 = vmatprep.subr.bf16.mxu1 %v7755_v42  ;;  %1603 = vmatmul.mubr.f32.gmra.mrb[10].mxu1 %v7756_v23 }
 0x1ef   :  { %3197 = vmatmul.mubr.f32.gmra.mrb[10].mxu0 %v7757_v5  ;;  %1738 = vmatprep.mubr.f32.mxu1 %v7586_v28  ;;  %v7767_v28 = vld [vmem:[#allocation104_spill] sm:$0xff] }
 0x1f0   :  { %4137 = vmatpush1.bf16.msra.mxu0 %v7758_v39  ;;  %3332 = vmatprep.mubr.f32.mxu0 %v7591_v22  ;;  %v7769_v22 = vld [vmem:[#allocation112_spill] sm:$0xff] }
 0x1f1   :  { %4139 = vmatprep.subr.bf16.mxu0 %v7759_v12  ;;  %3757 = vmatpush1.bf16.msra.mxu1 %v7760_v52 }
 0x1f2   :  { %3759 = vmatprep.subr.bf16.mxu1 %v7761_v35 }
 0x1f4   :  { %4141 = vmatpush1.bf16.msra.mxu0 %v7762_v6 }
 0x1f5   :  { %4143 = vmatprep.subr.bf16.mxu0 %v7763_v59  ;;  %3761 = vmatpush1.bf16.msra.mxu1 %v7764_v50 }
 0x1f6   :  { %3763 = vmatprep.subr.bf16.mxu1 %v7765_v61 }
 0x1f8   :  { %4145 = vmatpush1.bf16.msra.mxu0 %v7766_v48 }
 0x1f9   :  { %4147 = vmatprep.subr.bf16.mxu0 %v7767_v28  ;;  %3765 = vmatpush1.bf16.msra.mxu1 %v7768_v33 }
 0x1fa   :  { %3767 = vmatprep.subr.bf16.mxu1 %v7769_v22 }
 0x1fc   :  { %4149 = vmatpush1.bf16.msra.mxu0 %v7770_v30 }
 0x1fd   :  { %4151 = vmatprep.subr.bf16.mxu0 %v7771_v45  ;;  %3769 = vmatpush1.bf16.msra.mxu1 %v7772_v2 }
 0x1fe   :  { %3771 = vmatprep.subr.bf16.mxu1 %v7773_v17 }
 0x200   :  { %4153 = vmatpush1.bf16.msra.mxu0 %v7774_v20 }
 0x201   :  { %4155 = vmatprep.subr.bf16.mxu0 %v7775_v40  ;;  %3773 = vmatpush1.bf16.msra.mxu1 %v7776_v36 }
 0x202   :  { %3775 = vmatprep.subr.bf16.mxu1 %v7777_v41 }
 0x204   :  { %4157 = vmatpush1.bf16.msra.mxu0 %v7778_v51 }
 0x205   :  { %4159 = vmatprep.subr.bf16.mxu0 %v7779_v55  ;;  %3777 = vmatpush1.bf16.msra.mxu1 %v7780_v0 }
 0x206   :  { %3779 = vmatprep.subr.bf16.mxu1 %v7781_v19 }
 0x208   :  { %4161 = vmatpush1.bf16.msra.mxu0 %v7782_v63 }
 0x209   :  { %4163 = vmatprep.subr.bf16.mxu0 %v7783_v3  ;;  %3781 = vmatpush1.bf16.msra.mxu1 %v7784_v14 }
 0x20a   :  { %3783 = vmatprep.subr.bf16.mxu1 %v7785_v60 }
 0x20c   :  { %4165 = vmatpush1.bf16.msra.mxu0 %v7786_v25 }
 0x20d   :  { %4167 = vmatprep.subr.bf16.mxu0 %v7787_v4  ;;  %3785 = vmatpush1.bf16.msra.mxu1 %v7788_v47 }
 0x20e   :  { %3787 = vmatprep.subr.bf16.mxu1 %v7789_v15 }
 0x210   :  { %4169 = vmatpush1.bf16.msra.mxu0 %v7790_v56 }
 0x211   :  { %4171 = vmatprep.subr.bf16.mxu0 %v7791_v44  ;;  %3789 = vmatpush1.bf16.msra.mxu1 %v7792_v26 }
 0x212   :  { %3791 = vmatprep.subr.bf16.mxu1 %v7793_v49 }
 0x214   :  { %4173 = vmatpush1.bf16.msra.mxu0 %v7460_v1 }
 0x215   :  { %4175 = vmatprep.subr.bf16.mxu0 %v7794_v62  ;;  %3793 = vmatpush1.bf16.msra.mxu1 %v7795_v16 }
 0x218   :  { %4177 = vmatpush1.bf16.msra.mxu0 %v7796_v57  ;;  %1740 = vmatmul.mubr.f32.vlgmr.msra.gmra.mrb[0].mxu1 %v7713_v53 }
 0x219   :  { %1746 = vmatprep.mubr.f32.mxu1 %v7717_v24 }
 0x21b   :  { %3334 = vmatmul.mubr.f32.vlgmr.msra.gmra.mrb[0].mxu0 %v7718_v58 }
 0x21c   :  { %3340 = vmatprep.mubr.f32.mxu0 %v7720_v32  ;;  %1748 = vmatmul.mubr.f32.gmra.mrb[2].mxu1 %v7724_v38 }
 0x21d   :  { %1754 = vmatprep.mubr.f32.mxu1 %v7726_v7 }
 0x21f   :  { %3342 = vmatmul.mubr.f32.gmra.mrb[2].mxu0 %v7725_v9 }
 0x220   :  { %3348 = vmatprep.mubr.f32.mxu0 %v7728_v21  ;;  %1756 = vmatmul.mubr.f32.gmra.mrb[4].mxu1 %v7732_v8 }
 0x221   :  { %1762 = vmatprep.mubr.f32.mxu1 %v7734_v31 }
 0x223   :  { %3350 = vmatmul.mubr.f32.gmra.mrb[4].mxu0 %v7733_v34 }
 0x224   :  { %3356 = vmatprep.mubr.f32.mxu0 %v7736_v29  ;;  %1764 = vmatmul.mubr.f32.gmra.mrb[6].mxu1 %v7740_v43 }
 0x225   :  { %1770 = vmatprep.mubr.f32.mxu1 %v7742_v46 }
 0x227   :  { %3358 = vmatmul.mubr.f32.gmra.mrb[6].mxu0 %v7741_v54 }
 0x228   :  { %3364 = vmatprep.mubr.f32.mxu0 %v7744_v18  ;;  %1772 = vmatmul.mubr.f32.gmra.mrb[8].mxu1 %v7748_v13 }
 0x229   :  { %1778 = vmatprep.mubr.f32.mxu1 %v7750_v10 }
 0x22b   :  { %3366 = vmatmul.mubr.f32.gmra.mrb[8].mxu0 %v7749_v27 }
 0x22c   :  { %3372 = vmatprep.mubr.f32.mxu0 %v7752_v11  ;;  %1780 = vmatmul.mubr.f32.gmra.mrb[10].mxu1 %v7756_v23 }
 0x22f   :  { %3374 = vmatmul.mubr.f32.gmra.mrb[10].mxu0 %v7757_v5 }
 0x2eb   :  { %v1741_v1 = vpop.f32.mrb[0].mxu1 }
 0x2ec   :  { %v1743_v53 = vpop.f32.mrb[1].mxu1 }
 0x2ee   :  { %v3335_v24 = vpop.f32.mrb[0].mxu0 }
 0x2ef   :  { %v4178_v58 = vadd.f32 %v3335_v24, %v1741_v1  ;;  %v3337_v32 = vpop.f32.mrb[1].mxu0  ;;  %v1749_v38 = vpop.f32.mrb[2].mxu1 }
 0x2f0   :  { %v4179_v9 = vadd.f32 %v3337_v32, %v1743_v53  ;;  %v1751_v7 = vpop.f32.mrb[3].mxu1 }
 0x2f1   :  { %3380 = vst [vmem:[#allocation7] sm:$0xff] %v4178_v58 }
 0x2f2   :  { %3381 = vst [vmem:[#allocation7 + $0x8] sm:$0xff] %v4179_v9  ;;  %v3343_v21 = vpop.f32.mrb[2].mxu0 }
 0x2f3   :  { %v4180_v8 = vadd.f32 %v3343_v21, %v1749_v38  ;;  %v3345_v34 = vpop.f32.mrb[3].mxu0  ;;  %v1757_v31 = vpop.f32.mrb[4].mxu1 }
 0x2f4   :  { %v4181_v29 = vadd.f32 %v3345_v34, %v1751_v7  ;;  %v1759_v43 = vpop.f32.mrb[5].mxu1 }
 0x2f5   :  { %3382 = vst [vmem:[#allocation7 + $0x10] sm:$0xff] %v4180_v8 }
 0x2f6   :  { %3383 = vst [vmem:[#allocation7 + $0x18] sm:$0xff] %v4181_v29  ;;  %v3351_v54 = vpop.f32.mrb[4].mxu0 }
 0x2f7   :  { %v4182_v46 = vadd.f32 %v3351_v54, %v1757_v31  ;;  %v3353_v18 = vpop.f32.mrb[5].mxu0  ;;  %v1765_v13 = vpop.f32.mrb[6].mxu1 }
 0x2f8   :  { %v4183_v27 = vadd.f32 %v3353_v18, %v1759_v43  ;;  %v1767_v10 = vpop.f32.mrb[7].mxu1 }
 0x2f9   :  { %3384 = vst [vmem:[#allocation7 + $0x20] sm:$0xff] %v4182_v46 }
 0x2fa   :  { %3385 = vst [vmem:[#allocation7 + $0x28] sm:$0xff] %v4183_v27  ;;  %v3359_v11 = vpop.f32.mrb[6].mxu0 }
 0x2fb   :  { %v4184_v37 = vadd.f32 %v3359_v11, %v1765_v13  ;;  %v3361_v42 = vpop.f32.mrb[7].mxu0  ;;  %v1773_v23 = vpop.f32.mrb[8].mxu1 }
 0x2fc   :  { %v4185_v5 = vadd.f32 %v3361_v42, %v1767_v10  ;;  %v1775_v39 = vpop.f32.mrb[9].mxu1 }
 0x2fd   :  { %3386 = vst [vmem:[#allocation7 + $0x30] sm:$0xff] %v4184_v37 }
 0x2fe   :  { %3387 = vst [vmem:[#allocation7 + $0x38] sm:$0xff] %v4185_v5  ;;  %v3367_v12 = vpop.f32.mrb[8].mxu0 }
 0x2ff   :  { %v4186_v52 = vadd.f32 %v3367_v12, %v1773_v23  ;;  %v3369_v35 = vpop.f32.mrb[9].mxu0  ;;  %v1781_v6 = vpop.f32.mrb[10].mxu1 }
 0x300   :  { %v4187_v59 = vadd.f32 %v3369_v35, %v1775_v39  ;;  %v1783_v50 = vpop.f32.mrb[11].mxu1 }
 0x301   :  { %3388 = vst [vmem:[#allocation7 + $0x40] sm:$0xff] %v4186_v52 }
 0x302   :  { %3389 = vst [vmem:[#allocation7 + $0x48] sm:$0xff] %v4187_v59  ;;  %v3375_v61 = vpop.f32.mrb[10].mxu0 }
 0x303   :  { %v4188_v48 = vadd.f32 %v3375_v61, %v1781_v6  ;;  %v3377_v28 = vpop.f32.mrb[11].mxu0 }
 0x304   :  { %v4189_v33 = vadd.f32 %v3377_v28, %v1783_v50 }
 0x305   :  { %3390 = vst [vmem:[#allocation7 + $0x50] sm:$0xff] %v4188_v48 }
 0x306   :  { %3391 = vst [vmem:[#allocation7 + $0x58] sm:$0xff] %v4189_v33 }
 0x307   :  { %4372 = shalt.err (!%p4369_p6)
}
 0x308   :  { %s4373_s12 = scalar_lea.hbm %s6335_s2, 1536 }
 0x309   :  { %p4374_p7 = scmp.ne.s32.totalorder %s6335_s2, %s4373_s12  ;;  %p4377_p8 = scmp.lt.u32.totalorder %s4373_s12, %s6335_s2 }
 0x30b   :  { %p4379_p9 = pnand %p4377_p8, %p4374_p7 }
 0x30d   :  { %4382 = shalt.err (!%p4379_p9)
}
 0x30e   :  { %3403 = dma.vmem_to_hbm [thread:$0]  %s3398_s8, 1536, %s6335_s2, [#allocation4], %s4393_s0, %s4393_s0, %s4394_s5  }
 0x30f   :  { %4387 = dma.done.wait [#allocation4], 1536  }
 0x310   :  { %4388 = vsyncadd [#allocation4], 4294965760 }
 0x311   :  { %3407 = vsyncpa [#allocation3], 1 }
 0x312   :  { %3408 = vsyncpa [#allocation6], 1 }
 0x313   :  { %3409 = vsyncpa [#allocation4], 1 }

</bundles_post_ra>
